<compile_context>
chip_gen: v6e
topology: v6e:2x2x1
jax: 0.10.0
libtpu: 0.0.40
codegen_flags: <defaults>
</compile_context>

<pallas_src>
import jax
import jax.numpy as jnp
from jax.experimental import pallas as pl
from jax.experimental.pallas import tpu as pltpu

# ---- model dimensions --------------------------------------------------------
BATCH = 2
LATENT = 32
HIDDEN = 128
OUT_POINTS = 2048
OUT_DIM = 3
OUT_FEATS = OUT_POINTS * OUT_DIM        # 6144 = 48 * 128 (lane-aligned)


def decoder_fc_kernel(x_ref, w1_ref, b1_ref, w2q_ref, w2s_ref, b2_ref, o_ref):
    """Fused 2-layer FC decoder + final ReLU for one (batch tile, feature tile).

    W2 arrives as int8 + per-column f32 scale (halved HBM traffic vs bf16);
    it is dequantized to bf16 on the VPU and accumulated in f32 on the MXU.
    """
    # FC1: (tile_b, LATENT) @ (LATENT, HIDDEN) + b1, then ReLU (tiny).
    h = jnp.dot(x_ref[...].astype(jnp.bfloat16), w1_ref[...],
                preferred_element_type=jnp.float32)
    h = jnp.maximum(h + b1_ref[...], 0.0)

    # Dequantize the int8 W2 tile -> bf16 (per-column scale).  VPU work; free filler.
    w2 = (w2q_ref[...].astype(jnp.float32) * w2s_ref[...]).astype(jnp.bfloat16)

    # FC2 tile: (tile_b, HIDDEN) @ (HIDDEN, tile_n) + b2
    y = jnp.dot(h.astype(jnp.bfloat16), w2,
                preferred_element_type=jnp.float32) + b2_ref[...]

    # rawGenerator.forward's ReLU
    o_ref[...] = jnp.maximum(y, 0.0)


def raw_generator_forward(x, w1, b1, w2_q, w2_scale, b2, *,
                          num_feature_tiles=1, tile_b=128, flat_output=False):
    """x: (B, LATENT) f32; w1 bf16; b1 f32; w2_q int8; w2_scale/b2 f32.

    Returns (B, 2048, 3) f32 (or lane-dense (B, 6144) if flat_output=True).

    num_feature_tiles=1 (default): single feature tile, best on 1-TC v5e/v6e.
    num_feature_tiles=2: shards the output-feature axis ("parallel") across the
    two TensorCores on v7x; do NOT use >1 on single-TC parts (pure overhead).
    """
    B = x.shape[0]
    assert OUT_FEATS % num_feature_tiles == 0
    tile_n = OUT_FEATS // num_feature_tiles
    assert tile_n % 128 == 0               # keep the output lane-dense (unmasked vst)

    # Pad batch to a multiple of 8 sublanes (and of the batch tile) so stores are
    # unmasked and the MXU rows are better filled; padded rows are discarded below.
    b_pad = ((B + 7) // 8) * 8
    tile_b_eff = min(tile_b, b_pad)
    tile_b_eff = ((tile_b_eff + 7) // 8) * 8
    b_pad = ((b_pad + tile_b_eff - 1) // tile_b_eff) * tile_b_eff
    if b_pad != B:
        x = jnp.pad(x, ((0, b_pad - B), (0, 0)))
    num_batch_tiles = b_pad // tile_b_eff

    # Grid order: feature axis OUTER, batch axis INNER.  The weight index_maps ignore
    # the batch index, so Pallas DMAs each weight block once and revisits it across all
    # batch tiles — the W2 stream is amortized over every latent in the call.
    out_flat = pl.pallas_call(
        decoder_fc_kernel,
        out_shape=jax.ShapeDtypeStruct((b_pad, OUT_FEATS), jnp.float32),
        grid=(num_feature_tiles, num_batch_tiles),
        in_specs=[
            pl.BlockSpec((tile_b_eff, LATENT), lambda j, i: (i, 0)),   # x batch tile
            pl.BlockSpec((LATENT, HIDDEN), lambda j, i: (0, 0)),       # W1 (full, bf16)
            pl.BlockSpec((1, HIDDEN), lambda j, i: (0, 0)),            # b1 (full)
            pl.BlockSpec((HIDDEN, tile_n), lambda j, i: (0, j)),       # W2 tile (int8)
            pl.BlockSpec((1, tile_n), lambda j, i: (0, j)),            # W2 scale tile
            pl.BlockSpec((1, tile_n), lambda j, i: (0, j)),            # b2 tile
        ],
        out_specs=pl.BlockSpec((tile_b_eff, tile_n), lambda j, i: (i, j)),
        compiler_params=pltpu.CompilerParams(
            dimension_semantics=("parallel", "parallel"),
        ),
    )(x, w1, b1, w2_q, w2_scale, b2)

    out_flat = out_flat[:B]
    if flat_output:
        # Lane-dense (B, 6144): preferred hot-path layout (no padded-tile relayout).
        return out_flat
    # Module contract: reshape(relu(out), (-1, 2048, 3)).  ReLU already fused in-kernel.
    return out_flat.reshape(-1, OUT_POINTS, OUT_DIM)


def _reference(x, w1, b1, w2_q, w2_scale, b2):
    """Same math path (int8 dequant -> bf16 operands, f32 accumulation) in plain JAX."""
    h = jnp.dot(x.astype(jnp.bfloat16), w1, preferred_element_type=jnp.float32)
    h = jnp.maximum(h + b1, 0.0)
    w2 = (w2_q.astype(jnp.float32) * w2_scale).astype(jnp.bfloat16)
    y = jnp.dot(h.astype(jnp.bfloat16), w2, preferred_element_type=jnp.float32) + b2
    y = jnp.maximum(y, 0.0)
    return y.reshape(-1, OUT_POINTS, OUT_DIM)


if __name__ == "__main__":
    key = jax.random.PRNGKey(0)
    kx, k1, k2, k3, k4 = jax.random.split(key, 5)

    # deterministic parameter init (small, Glorot-ish scales)
    x = jax.random.normal(kx, (BATCH, LATENT), dtype=jnp.float32)
    w1 = (jax.random.normal(k1, (LATENT, HIDDEN), dtype=jnp.float32)
          * (1.0 / LATENT**0.5)).astype(jnp.bfloat16)
    b1 = jax.random.normal(k2, (1, HIDDEN), dtype=jnp.float32) * 0.01
    w2_f32 = (jax.random.normal(k3, (HIDDEN, OUT_FEATS), dtype=jnp.float32)
              * (1.0 / HIDDEN**0.5))
    b2 = jax.random.normal(k4, (1, OUT_FEATS), dtype=jnp.float32) * 0.01

    # per-column symmetric int8 quantization of W2 (host-side, one-time)
    w2_scale = jnp.maximum(jnp.max(jnp.abs(w2_f32), axis=0, keepdims=True), 1e-8) / 127.0
    w2_q = jnp.clip(jnp.round(w2_f32 / w2_scale), -127, 127).astype(jnp.int8)

    out = raw_generator_forward(x, w1, b1, w2_q, w2_scale, b2)
    out = jax.block_until_ready(out)

    ref = _reference(x, w1, b1, w2_q, w2_scale, b2)
    assert out.shape == (BATCH, OUT_POINTS, OUT_DIM), out.shape
    assert jnp.allclose(out, ref, atol=1e-3, rtol=1e-3), "mismatch vs reference"

    print("KERNEL_OK")
</pallas_src>

<mosaic_0001>
module attributes {stable_mosaic.version = 11 : i64} {
  func.func @decoder_fc_kernel(%arg0: i32, %arg1: i32, %arg2: memref<8x32xf32, #tpu.memory_space<vmem>>, %arg3: memref<32x128xbf16, #tpu.memory_space<vmem>>, %arg4: memref<1x128xf32, #tpu.memory_space<vmem>>, %arg5: memref<128x6144xi8, #tpu.memory_space<vmem>>, %arg6: memref<1x6144xf32, #tpu.memory_space<vmem>>, %arg7: memref<1x6144xf32, #tpu.memory_space<vmem>>, %arg8: memref<8x6144xf32, #tpu.memory_space<vmem>>) attributes {dimension_semantics = [#tpu.dimension_semantics<parallel>, #tpu.dimension_semantics<parallel>], iteration_bounds = array<i64: 1, 1>, scalar_prefetch = 0 : i64, scratch_operands = 0 : i64, tpu.core_type = #tpu.core_type<tc>, window_params = [{transform_indices = @transform_0, window_bounds = array<i64: 8, 32>}, {pipeline_mode = #tpu.pipeline_mode<synchronous>, transform_indices = @transform_1, window_bounds = array<i64: 32, 128>}, {pipeline_mode = #tpu.pipeline_mode<synchronous>, transform_indices = @transform_2, window_bounds = array<i64: 1, 128>}, {transform_indices = @transform_3, window_bounds = array<i64: 128, 6144>}, {transform_indices = @transform_4, window_bounds = array<i64: 1, 6144>}, {transform_indices = @transform_5, window_bounds = array<i64: 1, 6144>}, {transform_indices = @transform_6, window_bounds = array<i64: 8, 6144>}]} {
    %c0 = arith.constant 0 : index
    %c0_0 = arith.constant 0 : index
    %0 = vector.load %arg2[%c0, %c0_0] : memref<8x32xf32, #tpu.memory_space<vmem>>, vector<8x32xf32>
    %1 = arith.truncf %0 : vector<8x32xf32> to vector<8x32xbf16>
    %c0_1 = arith.constant 0 : index
    %c0_2 = arith.constant 0 : index
    %2 = vector.load %arg3[%c0_1, %c0_2] : memref<32x128xbf16, #tpu.memory_space<vmem>>, vector<32x128xbf16>
    %cst = arith.constant dense<0.000000e+00> : vector<8x128xf32>
    %3 = tpu.matmul %1, %2, %cst {dimension_numbers = #tpu.dot_dimension_numbers<[1], [0], [0], [1], [0, 0, 1, 1], [], []>} : vector<8x32xbf16>, vector<32x128xbf16>, vector<8x128xf32> -> vector<8x128xf32>
    %c0_3 = arith.constant 0 : index
    %c0_4 = arith.constant 0 : index
    %4 = vector.load %arg4[%c0_3, %c0_4] : memref<1x128xf32, #tpu.memory_space<vmem>>, vector<1x128xf32>
    %5 = vector.broadcast %4 : vector<1x128xf32> to vector<8x128xf32>
    %6 = arith.addf %3, %5 : vector<8x128xf32>
    %cst_5 = arith.constant 0.000000e+00 : f32
    %7 = vector.broadcast %cst_5 : f32 to vector<8x128xf32>
    %8 = arith.maximumf %6, %7 : vector<8x128xf32>
    %c0_6 = arith.constant 0 : index
    %c0_7 = arith.constant 0 : index
    %9 = vector.load %arg5[%c0_6, %c0_7] : memref<128x6144xi8, #tpu.memory_space<vmem>>, vector<128x6144xi8>
    %10 = arith.sitofp %9 : vector<128x6144xi8> to vector<128x6144xf32>
    %c0_8 = arith.constant 0 : index
    %c0_9 = arith.constant 0 : index
    %11 = vector.load %arg6[%c0_8, %c0_9] : memref<1x6144xf32, #tpu.memory_space<vmem>>, vector<1x6144xf32>
    %12 = vector.broadcast %11 : vector<1x6144xf32> to vector<128x6144xf32>
    %13 = arith.mulf %10, %12 : vector<128x6144xf32>
    %14 = arith.truncf %13 : vector<128x6144xf32> to vector<128x6144xbf16>
    %15 = arith.truncf %8 : vector<8x128xf32> to vector<8x128xbf16>
    %cst_10 = arith.constant dense<0.000000e+00> : vector<8x6144xf32>
    %16 = tpu.matmul %15, %14, %cst_10 {dimension_numbers = #tpu.dot_dimension_numbers<[1], [0], [0], [1], [0, 0, 1, 1], [], []>} : vector<8x128xbf16>, vector<128x6144xbf16>, vector<8x6144xf32> -> vector<8x6144xf32>
    %c0_11 = arith.constant 0 : index
    %c0_12 = arith.constant 0 : index
    %17 = vector.load %arg7[%c0_11, %c0_12] : memref<1x6144xf32, #tpu.memory_space<vmem>>, vector<1x6144xf32>
    %18 = vector.broadcast %17 : vector<1x6144xf32> to vector<8x6144xf32>
    %19 = arith.addf %16, %18 : vector<8x6144xf32>
    %cst_13 = arith.constant 0.000000e+00 : f32
    %20 = vector.broadcast %cst_13 : f32 to vector<8x6144xf32>
    %21 = arith.maximumf %19, %20 : vector<8x6144xf32>
    %c0_14 = arith.constant 0 : index
    %c0_15 = arith.constant 0 : index
    %22 = vector.load %arg8[%c0_14, %c0_15] : memref<8x6144xf32, #tpu.memory_space<vmem>>, vector<8x6144xf32>
    tpu.vector_store %arg8[%c0_14, %c0_15], %21 {strides = array<i32>} : memref<8x6144xf32, #tpu.memory_space<vmem>>, vector<8x6144xf32>,
    return
  }
  func.func @transform_0(%arg0: i32, %arg1: i32) -> (i32, i32) {
    %c0_i32 = arith.constant 0 : i32
    %c0_i32_0 = arith.constant 0 : i32
    return %arg1, %c0_i32 : i32, i32
  }
  func.func @transform_1(%arg0: i32, %arg1: i32) -> (i32, i32) {
    %c0_i32 = arith.constant 0 : i32
    %c0_i32_0 = arith.constant 0 : i32
    %c0_i32_1 = arith.constant 0 : i32
    return %c0_i32, %c0_i32_0 : i32, i32
  }
  func.func @transform_2(%arg0: i32, %arg1: i32) -> (i32, i32) {
    %c0_i32 = arith.constant 0 : i32
    %c0_i32_0 = arith.constant 0 : i32
    %c0_i32_1 = arith.constant 0 : i32
    return %c0_i32, %c0_i32_0 : i32, i32
  }
  func.func @transform_3(%arg0: i32, %arg1: i32) -> (i32, i32) {
    %c0_i32 = arith.constant 0 : i32
    %c0_i32_0 = arith.constant 0 : i32
    return %c0_i32, %arg0 : i32, i32
  }
  func.func @transform_4(%arg0: i32, %arg1: i32) -> (i32, i32) {
    %c0_i32 = arith.constant 0 : i32
    %c0_i32_0 = arith.constant 0 : i32
    return %c0_i32, %arg0 : i32, i32
  }
  func.func @transform_5(%arg0: i32, %arg1: i32) -> (i32, i32) {
    %c0_i32 = arith.constant 0 : i32
    %c0_i32_0 = arith.constant 0 : i32
    return %c0_i32, %arg0 : i32, i32
  }
  func.func @transform_6(%arg0: i32, %arg1: i32) -> (i32, i32) {
    %c0_i32 = arith.constant 0 : i32
    return %arg1, %arg0 : i32, i32
  }
}

</mosaic_0001>

<bundles_post_ra>
// kernel: tpu_custom_call.1
= control target key start
LH: loop header
LB: loop body
LE: loop exit
PB: predicated region body
PF: predicated region fallthrough
CT: control target
= control target key end

     0   :  { %11 = vsyncpa [#allocation3], 0  ;;  %s7961_s0 = inlined_call_operand.hbm [shape: f32[8,32], index: 0, kind: input, shape index: {}]   ;;  %s7962_s1 = inlined_call_operand.hbm [shape: bf16[32,128], index: 1, kind: input, shape index: {}]   ;;  %s7963_s2 = inlined_call_operand.vmem [shape: f32[1,128], index: 2, kind: input, shape index: {}]   ;;  %s7964_s3 = inlined_call_operand.hbm [shape: s8[128,6144], index: 3, kind: input, shape index: {}]   ;;  %s7965_s4 = inlined_call_operand.hbm [shape: f32[1,6144], index: 4, kind: input, shape index: {}]   ;;  %s7966_s5 = inlined_call_operand.hbm [shape: f32[1,6144], index: 5, kind: input, shape index: {}]   ;;  %s7967_s6 = inlined_call_operand.hbm [shape: f32[8,6144], index: 6, kind: output, shape index: {}]  }
   0x1   :  { %12 = vsyncpa [#allocation6], 0 }
   0x2   :  { %13 = vsyncpa [#allocation9], 0 }
   0x3   :  { %14 = vsyncpa [#allocation4], 0  ;;  %s4797_s21 = smov [#allocation5]  }
   0x4   :  { %s30_s22 = sshll.u32 %s4797_s21, 4  ;;  %s31_s22 = int_to_ptr.vmem [resolvable:$true] %s30_s22 }
   0x5   :  { %s4677_s23 = scalar_lea.vmem %s31_s22, 256  ;;  %p4682_p1 = scmp.lt.s32.totalorder %s31_s22, %s31_s22 }
   0x6   :  { %p4678_p0 = scmp.ne.s32.totalorder %s31_s22, %s4677_s23  ;;  %p4683_p2 = scmp.lt.s32.totalorder %s4677_s23, %s4677_s23 }
   0x8   :  { %p4684_p3 = por %p4683_p2, %p4682_p1 }
   0xa   :  { %p4685_p4 = pnand %p4684_p3, %p4678_p0 }
   0xc   :  { %4688 = shalt.err (!%p4685_p4)
}
   0xd   :  { %s4798_s24 = smov 64   ;;  %s4799_s25 = smov 4  }
   0xe   :  { %36 = dma.hbm_to_vmem [thread:$0]  %s7962_s1, 256, %s31_s22, [#allocation6], %s4798_s24, %s4798_s24, %s4799_s25  }
   0xf   :  { %s4800_s28 = smov [#allocation8]   ;;  %s4801_s30 = smov [#allocation2]  }
  0x10   :  { %s57_s29 = sshll.u32 %s4800_s28, 4  ;;  %s21_s7 = sshll.u32 %s4801_s30, 4  ;;  %s58_s29 = int_to_ptr.vmem [resolvable:$true] %s57_s29  ;;  %s22_s7 = int_to_ptr.vmem [resolvable:$true] %s21_s7 }
  0x11   :  { %s4697_s8 = scalar_lea.vmem %s58_s29, 768  ;;  %p4702_p6 = scmp.lt.s32.totalorder %s58_s29, %s58_s29 }
  0x12   :  { %p4698_p5 = scmp.ne.s32.totalorder %s58_s29, %s4697_s8  ;;  %p4703_p7 = scmp.lt.s32.totalorder %s4697_s8, %s4697_s8 }
  0x14   :  { %p4704_p8 = por %p4703_p7, %p4702_p6 }
  0x16   :  { %p4705_p9 = pnand %p4704_p8, %p4698_p5 }
  0x18   :  { %4708 = shalt.err (!%p4705_p9)
}
  0x19   :  { %60 = dma.hbm_to_vmem [thread:$0]  %s7965_s4, 768, %s58_s29, [#allocation9]  }
  0x1a   :  { %s4717_s11 = scalar_lea.vmem %s22_s7, 128  ;;  %p4722_p11 = scmp.lt.s32.totalorder %s22_s7, %s22_s7 }
  0x1b   :  { %p4718_p10 = scmp.ne.s32.totalorder %s22_s7, %s4717_s11  ;;  %p4723_p12 = scmp.lt.s32.totalorder %s4717_s11, %s4717_s11 }
  0x1d   :  { %p4724_p13 = por %p4723_p12, %p4722_p11 }
  0x1f   :  { %p4725_p0 = pnand %p4724_p13, %p4718_p10 }
  0x21   :  { %4728 = shalt.err (!%p4725_p0)
}
  0x22   :  { %24 = dma.hbm_to_vmem [thread:$0]  %s7961_s0, 128, %s22_s7, [#allocation3]  }
  0x23   :  { %s4802_s13 = smov [#allocation7]  }
  0x24   :  { %s44_s14 = sshll.u32 %s4802_s13, 4  ;;  %s45_s14 = int_to_ptr.vmem [resolvable:$true] %s44_s14 }
  0x25   :  { %s4737_s15 = scalar_lea.vmem %s45_s14, 24576  ;;  %p4742_p2 = scmp.lt.s32.totalorder %s45_s14, %s45_s14 }
  0x26   :  { %p4738_p1 = scmp.ne.s32.totalorder %s45_s14, %s4737_s15  ;;  %p4743_p3 = scmp.lt.s32.totalorder %s4737_s15, %s4737_s15 }
  0x28   :  { %p4744_p4 = por %p4743_p3, %p4742_p2 }
  0x2a   :  { %p4745_p5 = pnand %p4744_p4, %p4738_p1 }
  0x2c   :  { %4748 = shalt.err (!%p4745_p5)
}
  0x2d   :  { %s4803_s4 = smov 6144   ;;  %s4804_s16 = smov 384  }
  0x2e   :  { %50 = dma.hbm_to_vmem [thread:$0]  %s7964_s3, 24576, %s45_s14, [#allocation6], %s4803_s4, %s4803_s4, %s4804_s16  }
  0x2f   :  { %s4805_s19 = smov [#allocation10]  }
  0x30   :  { %s67_s20 = sshll.u32 %s4805_s19, 4  ;;  %s68_s20 = int_to_ptr.vmem [resolvable:$true] %s67_s20 }
  0x31   :  { %s4757_s0 = scalar_lea.vmem %s68_s20, 768  ;;  %p4762_p7 = scmp.lt.s32.totalorder %s68_s20, %s68_s20 }
  0x32   :  { %p4758_p6 = scmp.ne.s32.totalorder %s68_s20, %s4757_s0  ;;  %p4763_p8 = scmp.lt.s32.totalorder %s4757_s0, %s4757_s0 }
  0x34   :  { %p4764_p9 = por %p4763_p8, %p4762_p7 }
  0x36   :  { %p4765_p10 = pnand %p4764_p9, %p4758_p6 }
  0x38   :  { %4768 = shalt.err (!%p4765_p10)
}
  0x39   :  { %70 = dma.hbm_to_vmem [thread:$0]  %s7966_s5, 768, %s68_s20, [#allocation9]  }
  0x3a   :  { %4789 = dma.done.wait [#allocation3], 128  }
  0x3b   :  { %4790 = vsyncadd [#allocation3], 4294967168 }
  0x3c   :  { %4791 = dma.done.wait [#allocation6], 24832  }
  0x3d   :  { %4792 = vsyncadd [#allocation6], 4294942464 }
  0x3e   :  { %4793 = dma.done.wait [#allocation9], 1536  }
  0x3f   :  { %4794 = vsyncadd [#allocation9], 4294965760  ;;  %v1897_v0 = vlaneseq  ;;  %v4806_v1 = vmov 0.0   ;;  %vm4807_vm0 = vmmov 0   ;;  %v4667_v4 = vld [vmem:[#allocation5 + $0x8] sm:$0xff]   ;;  %v4668_v6 = vld [vmem:[#allocation5] sm:$0xff]  }
  0x40   :  { %4646 = vmatprep.subr.bf16.mxu0 %v4806_v1  ;;  %4650 = vmatprep.mubr.msk.bf16.mxu0 %vm4807_vm0, %v4806_v1  ;;  %v87_v8 = vld [vmem:[#allocation2] sm:$0xff]  ;;  %vm112_vm1 = vcmask 261120   ;;  %v4871_v10 = vld [vmem:[#allocation8] sm:$0xff]  ;;  %v304_v16 = vld [vmem:[#allocation7 + $0x498] sm:$0xff] }
  0x41   :  { %v4860_v2 = vshrl.u32 %v1897_v0, 7  ;;  %4647 = vmatpush3.bf16.msra.mxu0 %v4667_v4  ;;  %v302_v9 = vld [vmem:[#allocation7 + $0x488] sm:$0xff]  ;;  %v88_v12 = vpack.c.bf16 %v87_v8, %v87_v8  ;;  %v301_v17 = vld [vmem:[#allocation7 + $0x480] sm:$0xff]  ;;  %v4880_v18 = vld [vmem:[#allocation7 + $0x490] sm:$0xff]  ;;  %v1024_v19 = vunpack.c.2.s8 %v304_v16  ;;  %v1072_v20 = vunpack.c.3.s8 %v304_v16 }
  0x42   :  { %4648 = vmatprep.subr.bf16.mxu0 %v4806_v1  ;;  %v1022_v13 = vunpack.c.2.s8 %v302_v9  ;;  %v1070_v14 = vunpack.c.3.s8 %v302_v9  ;;  %v1021_v22 = vunpack.c.2.s8 %v301_v17  ;;  %v1069_v25 = vunpack.c.3.s8 %v301_v17  ;;  %v254_v59 = vld [vmem:[#allocation7 + $0x308] sm:$0xff]  ;;  %v256_v8 = vld [vmem:[#allocation7 + $0x318] sm:$0xff] }
  0x43   :  { %v4863_v3 = vsub.s32 1, %v4860_v2  ;;  %v4866_v5 = vsub.s32 3, %v4860_v2  ;;  %v4869_v7 = vsub.s32 0, %v4860_v2  ;;  %v4874_v11 = vsub.s32 2, %v4860_v2 }
  0x44   :  { %v1790_v23 = vcvt.s32.f32 %v1022_v13  ;;  %v1838_v24 = vcvt.s32.f32 %v1070_v14  ;;  %v1792_v27 = vcvt.s32.f32 %v1024_v19  ;;  %v1840_v28 = vcvt.s32.f32 %v1072_v20 }
  0x45   :  { %8139 = vst [vmem:[#allocation16_spill] sm:$0xff] %v4863_v3  ;;  %8140 = vst [vmem:[#allocation17_spill] sm:$0xff] %v4866_v5  ;;  %v4878_v15 = vrot.slane %v4871_v10, %v4863_v3  ;;  %v4884_v21 = vrot.slane %v4871_v10, %v4866_v5  ;;  %v4888_v26 = vrot.slane %v4871_v10, %v4869_v7  ;;  %4649 = vmatpush3.bf16.msra.mxu0 %v4668_v6 }
  0x46   :  { %8141 = vst [vmem:[#allocation18_spill] sm:$0xff] %v4869_v7  ;;  %8142 = vst [vmem:[#allocation19_spill] sm:$0xff] %v4874_v11  ;;  %v1789_v29 = vcvt.s32.f32 %v1021_v22  ;;  %v1023_v30 = vunpack.c.2.s8 %v4880_v18  ;;  %v1837_v33 = vcvt.s32.f32 %v1069_v25  ;;  %v1071_v34 = vunpack.c.3.s8 %v4880_v18 }
  0x47   :  { %v2810_v31 = vmul.f32 %v4878_v15, %v1790_v23  ;;  %v2858_v32 = vmul.f32 %v4878_v15, %v1838_v24  ;;  %v2812_v35 = vmul.f32 %v4884_v21, %v1792_v27  ;;  %v2860_v36 = vmul.f32 %v4884_v21, %v1840_v28 }
  0x48   :  { %v2809_v37 = vmul.f32 %v4888_v26, %v1789_v29  ;;  %v1791_v38 = vcvt.s32.f32 %v1023_v30  ;;  %4651 = vmatmul.mubr.msk.bf16.vlgmr.msra.gmra.mxu0 %vm112_vm1, %v88_v12  ;;  %v2857_v40 = vmul.f32 %v4888_v26, %v1837_v33  ;;  %v1839_v41 = vcvt.s32.f32 %v1071_v34 }
  0x49   :  { %v3242_v39 = vpack.c.bf16 %v2858_v32, %v2810_v31  ;;  %v4901_v42 = vrot.slane %v4871_v10, %v4874_v11  ;;  %v3244_v43 = vpack.c.bf16 %v2860_v36, %v2812_v35  ;;  %v926_v44 = vunpack.c.0.s8 %v302_v9 }
  0x4a   :  { %v974_v45 = vunpack.c.1.s8 %v302_v9  ;;  %v928_v46 = vunpack.c.0.s8 %v304_v16  ;;  %v3241_v47 = vpack.c.bf16 %v2857_v40, %v2809_v37  ;;  %v976_v50 = vunpack.c.1.s8 %v304_v16  ;;  %v253_v16 = vld [vmem:[#allocation7 + $0x300] sm:$0xff] }
  0x4b   :  { %3542 = vmatprep.subr.bf16.mxu1 %v3242_v39  ;;  %v2811_v48 = vmul.f32 %v4901_v42, %v1791_v38  ;;  %v2859_v49 = vmul.f32 %v4901_v42, %v1839_v41  ;;  %3583 = vmatprep.subr.bf16.mxu0 %v3244_v43  ;;  %v1694_v51 = vcvt.s32.f32 %v926_v44  ;;  %v925_v54 = vunpack.c.0.s8 %v301_v17 }
  0x4c   :  { %v1742_v52 = vcvt.s32.f32 %v974_v45  ;;  %v1696_v53 = vcvt.s32.f32 %v928_v46  ;;  %3543 = vmatpush1.bf16.msra.mxu1 %v3241_v47  ;;  %v1744_v56 = vcvt.s32.f32 %v976_v50  ;;  %v973_v57 = vunpack.c.1.s8 %v301_v17 }
  0x4d   :  { %v3243_v55 = vpack.c.bf16 %v2859_v49, %v2811_v48  ;;  %v927_v58 = vunpack.c.0.s8 %v4880_v18  ;;  %v2714_v60 = vmul.f32 %v4878_v15, %v1694_v51  ;;  %v1693_v63 = vcvt.s32.f32 %v925_v54 }
  0x4e   :  { %v2762_v61 = vmul.f32 %v4878_v15, %v1742_v52  ;;  %v2716_v62 = vmul.f32 %v4884_v21, %v1696_v53  ;;  %v2764_v0 = vmul.f32 %v4884_v21, %v1744_v56  ;;  %v1741_v1 = vcvt.s32.f32 %v973_v57 }
  0x4f   :  { %3584 = vmatpush1.bf16.msra.mxu0 %v3243_v55  ;;  %v975_v4 = vunpack.c.1.s8 %v4880_v18  ;;  %v1695_v6 = vcvt.s32.f32 %v927_v58  ;;  %v2713_v12 = vmul.f32 %v4888_v26, %v1693_v63  ;;  %v830_v13 = vunpack.c.2.s8 %v254_v59  ;;  %v255_v18 = vld [vmem:[#allocation7 + $0x310] sm:$0xff] }
  0x50   :  { %v3194_v9 = vpack.c.bf16 %v2762_v61, %v2714_v60  ;;  %v878_v14 = vunpack.c.3.s8 %v254_v59  ;;  %v3196_v17 = vpack.c.bf16 %v2764_v0, %v2716_v62  ;;  %v2761_v19 = vmul.f32 %v4888_v26, %v1741_v1 }
  0x51   :  { %v1743_v20 = vcvt.s32.f32 %v975_v4  ;;  %v2715_v22 = vmul.f32 %v4901_v42, %v1695_v6  ;;  %v1598_v23 = vcvt.s32.f32 %v830_v13  ;;  %v832_v25 = vunpack.c.2.s8 %v256_v8  ;;  %v206_v4 = vld [vmem:[#allocation7 + $0x188] sm:$0xff] }
  0x52   :  { %3544 = vmatprep.subr.bf16.mxu1 %v3194_v9  ;;  %v1646_v24 = vcvt.s32.f32 %v878_v14  ;;  %v880_v27 = vunpack.c.3.s8 %v256_v8  ;;  %3585 = vmatprep.subr.bf16.mxu0 %v3196_v17  ;;  %v3193_v28 = vpack.c.bf16 %v2761_v19, %v2713_v12  ;;  %v829_v30 = vunpack.c.2.s8 %v253_v16  ;;  %v208_v19 = vld [vmem:[#allocation7 + $0x198] sm:$0xff] }
  0x53   :  { %v2763_v29 = vmul.f32 %v4901_v42, %v1743_v20  ;;  %v877_v31 = vunpack.c.3.s8 %v253_v16  ;;  %v2618_v32 = vmul.f32 %v4878_v15, %v1598_v23  ;;  %v1600_v34 = vcvt.s32.f32 %v832_v25 }
  0x54   :  { %v2666_v33 = vmul.f32 %v4878_v15, %v1646_v24  ;;  %v1648_v35 = vcvt.s32.f32 %v880_v27  ;;  %3545 = vmatpush1.bf16.msra.mxu1 %v3193_v28  ;;  %v1597_v37 = vcvt.s32.f32 %v829_v30  ;;  %v831_v39 = vunpack.c.2.s8 %v255_v18  ;;  %v205_v24 = vld [vmem:[#allocation7 + $0x180] sm:$0xff] }
  0x55   :  { %v3195_v36 = vpack.c.bf16 %v2763_v29, %v2715_v22  ;;  %v1645_v38 = vcvt.s32.f32 %v877_v31  ;;  %v2620_v41 = vmul.f32 %v4884_v21, %v1600_v34  ;;  %v879_v44 = vunpack.c.3.s8 %v255_v18 }
  0x56   :  { %v3146_v40 = vpack.c.bf16 %v2666_v33, %v2618_v32  ;;  %v2668_v43 = vmul.f32 %v4884_v21, %v1648_v35  ;;  %v2617_v45 = vmul.f32 %v4888_v26, %v1597_v37  ;;  %v1599_v47 = vcvt.s32.f32 %v831_v39  ;;  %v207_v33 = vld [vmem:[#allocation7 + $0x190] sm:$0xff] }
  0x57   :  { %3586 = vmatpush1.bf16.msra.mxu0 %v3195_v36  ;;  %v2665_v46 = vmul.f32 %v4888_v26, %v1645_v38  ;;  %v734_v48 = vunpack.c.0.s8 %v254_v59  ;;  %v1647_v50 = vcvt.s32.f32 %v879_v44  ;;  %v782_v51 = vunpack.c.1.s8 %v254_v59 }
  0x58   :  { %3546 = vmatprep.subr.bf16.mxu1 %v3146_v40  ;;  %v3148_v49 = vpack.c.bf16 %v2668_v43, %v2620_v41  ;;  %v736_v52 = vunpack.c.0.s8 %v256_v8  ;;  %v2619_v54 = vmul.f32 %v4901_v42, %v1599_v47  ;;  %v784_v56 = vunpack.c.1.s8 %v256_v8 }
  0x59   :  { %v3145_v53 = vpack.c.bf16 %v2665_v46, %v2617_v45  ;;  %v1502_v55 = vcvt.s32.f32 %v734_v48  ;;  %v2667_v57 = vmul.f32 %v4901_v42, %v1647_v50  ;;  %v1550_v58 = vcvt.s32.f32 %v782_v51 }
  0x5a   :  { %3587 = vmatprep.subr.bf16.mxu0 %v3148_v49  ;;  %v1504_v60 = vcvt.s32.f32 %v736_v52  ;;  %v733_v61 = vunpack.c.0.s8 %v253_v16  ;;  %v1552_v63 = vcvt.s32.f32 %v784_v56  ;;  %v781_v0 = vunpack.c.1.s8 %v253_v16 }
  0x5b   :  { %3547 = vmatpush1.bf16.msra.mxu1 %v3145_v53  ;;  %v2522_v62 = vmul.f32 %v4878_v15, %v1502_v55  ;;  %v735_v1 = vunpack.c.0.s8 %v255_v18  ;;  %v3147_v59 = vpack.c.bf16 %v2667_v57, %v2619_v54  ;;  %v2570_v6 = vmul.f32 %v4878_v15, %v1550_v58 }
  0x5c   :  { %v2524_v9 = vmul.f32 %v4884_v21, %v1504_v60  ;;  %v1501_v12 = vcvt.s32.f32 %v733_v61  ;;  %v2572_v8 = vmul.f32 %v4884_v21, %v1552_v63  ;;  %v1549_v13 = vcvt.s32.f32 %v781_v0 }
  0x5d   :  { %v783_v14 = vunpack.c.1.s8 %v255_v18  ;;  %v1503_v17 = vcvt.s32.f32 %v735_v1  ;;  %3588 = vmatpush1.bf16.msra.mxu0 %v3147_v59  ;;  %v3098_v20 = vpack.c.bf16 %v2570_v6, %v2522_v62  ;;  %v638_v23 = vunpack.c.2.s8 %v206_v4 }
  0x5e   :  { %v2521_v22 = vmul.f32 %v4888_v26, %v1501_v12  ;;  %v686_v16 = vunpack.c.3.s8 %v206_v4  ;;  %v3100_v25 = vpack.c.bf16 %v2572_v8, %v2524_v9  ;;  %v2569_v27 = vmul.f32 %v4888_v26, %v1549_v13 }
  0x5f   :  { %v1551_v28 = vcvt.s32.f32 %v783_v14  ;;  %v2523_v29 = vmul.f32 %v4901_v42, %v1503_v17  ;;  %3548 = vmatprep.subr.bf16.mxu1 %v3098_v20  ;;  %v1406_v30 = vcvt.s32.f32 %v638_v23  ;;  %v640_v32 = vunpack.c.2.s8 %v208_v19  ;;  %v4940_v14 = vld [vmem:[#allocation7 + $0x8] sm:$0xff] }
  0x60   :  { %v1454_v31 = vcvt.s32.f32 %v686_v16  ;;  %v688_v18 = vunpack.c.3.s8 %v208_v19  ;;  %3589 = vmatprep.subr.bf16.mxu0 %v3100_v25  ;;  %v3097_v34 = vpack.c.bf16 %v2569_v27, %v2521_v22  ;;  %v637_v36 = vunpack.c.2.s8 %v205_v24  ;;  %v160_v27 = vld [vmem:[#allocation7 + $0x18] sm:$0xff] }
  0x61   :  { %v2571_v35 = vmul.f32 %v4901_v42, %v1551_v28  ;;  %v685_v37 = vunpack.c.3.s8 %v205_v24  ;;  %v2426_v38 = vmul.f32 %v4878_v15, %v1406_v30  ;;  %v1408_v40 = vcvt.s32.f32 %v640_v32 }
  0x62   :  { %v2474_v39 = vmul.f32 %v4878_v15, %v1454_v31  ;;  %v1456_v41 = vcvt.s32.f32 %v688_v18  ;;  %3549 = vmatpush1.bf16.msra.mxu1 %v3097_v34  ;;  %v1405_v44 = vcvt.s32.f32 %v637_v36  ;;  %v639_v46 = vunpack.c.2.s8 %v207_v33  ;;  %v157_v31 = vld [vmem:[#allocation7] sm:$0xff] }
  0x63   :  { %v3099_v43 = vpack.c.bf16 %v2571_v35, %v2523_v29  ;;  %v1453_v45 = vcvt.s32.f32 %v685_v37  ;;  %v2428_v48 = vmul.f32 %v4884_v21, %v1408_v40  ;;  %v687_v50 = vunpack.c.3.s8 %v207_v33 }
  0x64   :  { %v3050_v47 = vpack.c.bf16 %v2474_v39, %v2426_v38  ;;  %v2476_v49 = vmul.f32 %v4884_v21, %v1456_v41  ;;  %v2425_v51 = vmul.f32 %v4888_v26, %v1405_v44  ;;  %v1407_v53 = vcvt.s32.f32 %v639_v46  ;;  %v159_v39 = vld [vmem:[#allocation7 + $0x10] sm:$0xff] }
  0x65   :  { %3590 = vmatpush1.bf16.msra.mxu0 %v3099_v43  ;;  %v2473_v52 = vmul.f32 %v4888_v26, %v1453_v45  ;;  %v542_v54 = vunpack.c.0.s8 %v206_v4  ;;  %v1455_v56 = vcvt.s32.f32 %v687_v50  ;;  %v590_v57 = vunpack.c.1.s8 %v206_v4 }
  0x66   :  { %3550 = vmatprep.subr.bf16.mxu1 %v3050_v47  ;;  %v3052_v55 = vpack.c.bf16 %v2476_v49, %v2428_v48  ;;  %v544_v58 = vunpack.c.0.s8 %v208_v19  ;;  %v2427_v61 = vmul.f32 %v4901_v42, %v1407_v53  ;;  %v592_v63 = vunpack.c.1.s8 %v208_v19 }
  0x67   :  { %v3049_v60 = vpack.c.bf16 %v2473_v52, %v2425_v51  ;;  %v1310_v62 = vcvt.s32.f32 %v542_v54  ;;  %v2475_v0 = vmul.f32 %v4901_v42, %v1455_v56  ;;  %v1358_v1 = vcvt.s32.f32 %v590_v57 }
  0x68   :  { %3591 = vmatprep.subr.bf16.mxu0 %v3052_v55  ;;  %v1312_v59 = vcvt.s32.f32 %v544_v58  ;;  %v541_v6 = vunpack.c.0.s8 %v205_v24  ;;  %v1360_v12 = vcvt.s32.f32 %v592_v63  ;;  %v589_v8 = vunpack.c.1.s8 %v205_v24 }
  0x69   :  { %3551 = vmatpush1.bf16.msra.mxu1 %v3049_v60  ;;  %v2330_v9 = vmul.f32 %v4878_v15, %v1310_v62  ;;  %v543_v13 = vunpack.c.0.s8 %v207_v33  ;;  %v3051_v4 = vpack.c.bf16 %v2475_v0, %v2427_v61  ;;  %v2378_v17 = vmul.f32 %v4878_v15, %v1358_v1 }
  0x6a   :  { %v2332_v20 = vmul.f32 %v4884_v21, %v1312_v59  ;;  %v1309_v19 = vcvt.s32.f32 %v541_v6  ;;  %v2380_v22 = vmul.f32 %v4884_v21, %v1360_v12  ;;  %v1357_v23 = vcvt.s32.f32 %v589_v8 }
  0x6b   :  { %v591_v16 = vunpack.c.1.s8 %v207_v33  ;;  %v1311_v25 = vcvt.s32.f32 %v543_v13  ;;  %3592 = vmatpush1.bf16.msra.mxu0 %v3051_v4  ;;  %v3002_v28 = vpack.c.bf16 %v2378_v17, %v2330_v9  ;;  %v446_v24 = vunpack.c.2.s8 %v4940_v14 }
  0x6c   :  { %v2329_v29 = vmul.f32 %v4888_v26, %v1309_v19  ;;  %v494_v30 = vunpack.c.3.s8 %v4940_v14  ;;  %v3004_v32 = vpack.c.bf16 %v2380_v22, %v2332_v20  ;;  %v2377_v18 = vmul.f32 %v4888_v26, %v1357_v23 }
  0x6d   :  { %v1359_v34 = vcvt.s32.f32 %v591_v16  ;;  %v2331_v35 = vmul.f32 %v4901_v42, %v1311_v25  ;;  %3552 = vmatprep.subr.bf16.mxu1 %v3002_v28  ;;  %v1214_v36 = vcvt.s32.f32 %v446_v24  ;;  %v448_v37 = vunpack.c.2.s8 %v160_v27 }
  0x6e   :  { %v1262_v33 = vcvt.s32.f32 %v494_v30  ;;  %v496_v38 = vunpack.c.3.s8 %v160_v27  ;;  %3593 = vmatprep.subr.bf16.mxu0 %v3004_v32  ;;  %v3001_v40 = vpack.c.bf16 %v2377_v18, %v2329_v29  ;;  %v445_v43 = vunpack.c.2.s8 %v157_v31  ;;  %v4961_v30 = vld [vmem:[#allocation7 + $0x4a8] sm:$0xff]  ;;  %v4967_v18 = vld [vmem:[#allocation7 + $0x4b8] sm:$0xff] }
  0x6f   :  { %v2379_v41 = vmul.f32 %v4901_v42, %v1359_v34  ;;  %v493_v44 = vunpack.c.3.s8 %v157_v31  ;;  %v2234_v45 = vmul.f32 %v4878_v15, %v1214_v36  ;;  %v1216_v47 = vcvt.s32.f32 %v448_v37 }
  0x70   :  { %v2282_v46 = vmul.f32 %v4878_v15, %v1262_v33  ;;  %v1264_v48 = vcvt.s32.f32 %v496_v38  ;;  %3553 = vmatpush1.bf16.msra.mxu1 %v3001_v40  ;;  %v1213_v50 = vcvt.s32.f32 %v445_v43  ;;  %v447_v52 = vunpack.c.2.s8 %v159_v39  ;;  %v4975_v40 = vld [vmem:[#allocation7 + $0x4a0] sm:$0xff] }
  0x71   :  { %v3003_v49 = vpack.c.bf16 %v2379_v41, %v2331_v35  ;;  %v1261_v51 = vcvt.s32.f32 %v493_v44  ;;  %v2236_v54 = vmul.f32 %v4884_v21, %v1216_v47  ;;  %v495_v56 = vunpack.c.3.s8 %v159_v39 }
  0x72   :  { %v2954_v53 = vpack.c.bf16 %v2282_v46, %v2234_v45  ;;  %v2284_v55 = vmul.f32 %v4884_v21, %v1264_v48  ;;  %v2233_v57 = vmul.f32 %v4888_v26, %v1213_v50  ;;  %v1215_v60 = vcvt.s32.f32 %v447_v52 }
  0x73   :  { %3594 = vmatpush1.bf16.msra.mxu0 %v3003_v49  ;;  %v2281_v58 = vmul.f32 %v4888_v26, %v1261_v51  ;;  %v1263_v62 = vcvt.s32.f32 %v495_v56  ;;  %v350_v6 = vunpack.c.0.s8 %v4940_v14  ;;  %v398_v9 = vunpack.c.1.s8 %v4940_v14 }
  0x74   :  { %3554 = vmatprep.subr.bf16.mxu1 %v2954_v53  ;;  %v2956_v61 = vpack.c.bf16 %v2284_v55, %v2236_v54  ;;  %v2235_v0 = vmul.f32 %v4901_v42, %v1215_v60  ;;  %v352_v12 = vunpack.c.0.s8 %v160_v27  ;;  %v400_v8 = vunpack.c.1.s8 %v160_v27 }
  0x75   :  { %v2953_v63 = vpack.c.bf16 %v2281_v58, %v2233_v57  ;;  %v2283_v1 = vmul.f32 %v4901_v42, %v1263_v62  ;;  %v349_v13 = vunpack.c.0.s8 %v157_v31  ;;  %v397_v4 = vunpack.c.1.s8 %v157_v31 }
  0x76   :  { %3595 = vmatprep.subr.bf16.mxu0 %v2956_v61  ;;  %v351_v17 = vunpack.c.0.s8 %v159_v39  ;;  %v399_v20 = vunpack.c.1.s8 %v159_v39  ;;  %v1118_v19 = vcvt.s32.f32 %v350_v6  ;;  %v1166_v22 = vcvt.s32.f32 %v398_v9 }
  0x77   :  { %3555 = vmatpush1.bf16.msra.mxu1 %v2953_v63  ;;  %v2955_v59 = vpack.c.bf16 %v2283_v1, %v2235_v0  ;;  %v1120_v23 = vcvt.s32.f32 %v352_v12  ;;  %v1168_v16 = vcvt.s32.f32 %v400_v8  ;;  %v1117_v25 = vcvt.s32.f32 %v349_v13 }
  0x78   :  { %v1165_v28 = vcvt.s32.f32 %v397_v4  ;;  %v1119_v29 = vcvt.s32.f32 %v351_v17  ;;  %v1167_v24 = vcvt.s32.f32 %v399_v20  ;;  %v2138_v32 = vmul.f32 %v4878_v15, %v1118_v19 }
  0x79   :  { %3596 = vmatpush1.bf16.msra.mxu0 %v2955_v59  ;;  %v2186_v14 = vmul.f32 %v4878_v15, %v1166_v22  ;;  %v2140_v27 = vmul.f32 %v4884_v21, %v1120_v23  ;;  %v2188_v31 = vmul.f32 %v4884_v21, %v1168_v16  ;;  %v2137_v34 = vmul.f32 %v4888_v26, %v1117_v25 }
  0x7a   :  { %v2185_v35 = vmul.f32 %v4888_v26, %v1165_v28  ;;  %v2139_v36 = vmul.f32 %v4901_v42, %v1119_v29  ;;  %v2187_v33 = vmul.f32 %v4901_v42, %v1167_v24  ;;  %v1026_v39 = vunpack.c.2.s8 %v4961_v30  ;;  %v4981_v26 = vld [vmem:[#allocation7 + $0x4b0] sm:$0xff] }
  0x7b   :  { %v2906_v37 = vpack.c.bf16 %v2186_v14, %v2138_v32  ;;  %v2908_v38 = vpack.c.bf16 %v2188_v31, %v2140_v27  ;;  %v1074_v15 = vunpack.c.3.s8 %v4961_v30  ;;  %v4978_v43 = vsub.s32 5, %v4860_v2  ;;  %v258_v31 = vld [vmem:[#allocation7 + $0x328] sm:$0xff] }
  0x7c   :  { %v2905_v41 = vpack.c.bf16 %v2185_v35, %v2137_v34  ;;  %v2907_v21 = vpack.c.bf16 %v2187_v33, %v2139_v36  ;;  %v1028_v44 = vunpack.c.2.s8 %v4967_v18  ;;  %v1794_v42 = vcvt.s32.f32 %v1026_v39  ;;  %v260_v33 = vld [vmem:[#allocation7 + $0x338] sm:$0xff] }
  0x7d   :  { %8143 = vst [vmem:[#allocation20_spill] sm:$0xff] %v4978_v43  ;;  %3556 = vmatprep.subr.bf16.mxu1 %v2906_v37  ;;  %3597 = vmatprep.subr.bf16.mxu0 %v2908_v38  ;;  %v1842_v45 = vcvt.s32.f32 %v1074_v15  ;;  %v1076_v46 = vunpack.c.3.s8 %v4967_v18  ;;  %v4985_v47 = vsub.s32 7, %v4860_v2  ;;  %v4989_v48 = vrot.slane %v4871_v10, %v4978_v43 }
  0x7e   :  { %3557 = vmatpush1.bf16.msra.mxu1 %v2905_v41  ;;  %3598 = vmatpush1.bf16.msra.mxu0 %v2907_v21  ;;  %v1796_v49 = vcvt.s32.f32 %v1028_v44  ;;  %v1025_v50 = vunpack.c.2.s8 %v4975_v40  ;;  %v1073_v51 = vunpack.c.3.s8 %v4975_v40  ;;  %v4998_v54 = vsub.s32 4, %v4860_v2 }
  0x7f   :  { %8144 = vst [vmem:[#allocation21_spill] sm:$0xff] %v4985_v47  ;;  %v1844_v52 = vcvt.s32.f32 %v1076_v46  ;;  %v4995_v53 = vrot.slane %v4871_v10, %v4985_v47  ;;  %v1027_v55 = vunpack.c.2.s8 %v4981_v26  ;;  %v2814_v56 = vmul.f32 %v4989_v48, %v1794_v42  ;;  %v257_v42 = vld [vmem:[#allocation7 + $0x320] sm:$0xff] }
  0x80   :  { %8145 = vst [vmem:[#allocation22_spill] sm:$0xff] %v4998_v54  ;;  %v2862_v57 = vmul.f32 %v4989_v48, %v1842_v45  ;;  %v1793_v58 = vcvt.s32.f32 %v1025_v50  ;;  %v7968_v60 = vmov 0   ;;  %v1841_v63 = vcvt.s32.f32 %v1073_v51 }
  0x81   :  { %3574 = vmatprep.mubr.bf16.mxu1 %v7968_v60  ;;  %3615 = vmatprep.mubr.bf16.mxu0 %v7968_v60  ;;  %v2816_v61 = vmul.f32 %v4995_v53, %v1796_v49  ;;  %v2864_v62 = vmul.f32 %v4995_v53, %v1844_v52  ;;  %v5009_v0 = vrot.slane %v4871_v10, %v4998_v54  ;;  %v1075_v59 = vunpack.c.3.s8 %v4981_v26 }
  0x82   :  { %v3246_v1 = vpack.c.bf16 %v2862_v57, %v2814_v56  ;;  %v1795_v6 = vcvt.s32.f32 %v1027_v55  ;;  %v5013_v9 = vsub.s32 6, %v4860_v2  ;;  %v930_v4 = vunpack.c.0.s8 %v4961_v30  ;;  %v259_v56 = vld [vmem:[#allocation7 + $0x330] sm:$0xff] }
  0x83   :  { %v3248_v12 = vpack.c.bf16 %v2864_v62, %v2816_v61  ;;  %v5016_v8 = vmul.f32 %v5009_v0, %v1793_v58  ;;  %v5019_v13 = vmul.f32 %v5009_v0, %v1841_v63  ;;  %v1843_v17 = vcvt.s32.f32 %v1075_v59 }
  0x84   :  { %8146 = vst [vmem:[#allocation23_spill] sm:$0xff] %v5013_v9  ;;  %3624 = vmatprep.subr.bf16.mxu1 %v3246_v1  ;;  %v5024_v20 = vrot.slane %v4871_v10, %v5013_v9  ;;  %v978_v19 = vunpack.c.1.s8 %v4961_v30  ;;  %v932_v2 = vunpack.c.0.s8 %v4967_v18  ;;  %v1698_v23 = vcvt.s32.f32 %v930_v4 }
  0x85   :  { %3665 = vmatprep.subr.bf16.mxu0 %v3248_v12  ;;  %v980_v16 = vunpack.c.1.s8 %v4967_v18  ;;  %v929_v25 = vunpack.c.0.s8 %v4975_v40  ;;  %v977_v14 = vunpack.c.1.s8 %v4975_v40  ;;  %v931_v36 = vunpack.c.0.s8 %v4981_v26 }
  0x86   :  { %v5033_v28 = vmul.f32 %v5024_v20, %v1795_v6  ;;  %v5036_v29 = vmul.f32 %v5024_v20, %v1843_v17  ;;  %v1746_v10 = vcvt.s32.f32 %v978_v19  ;;  %v1700_v24 = vcvt.s32.f32 %v932_v2 }
  0x87   :  { %v5039_v30 = vmul.f32 %v4989_v48, %v1698_v23  ;;  %v1748_v32 = vcvt.s32.f32 %v980_v16  ;;  %v1697_v27 = vcvt.s32.f32 %v929_v25  ;;  %v1745_v38 = vcvt.s32.f32 %v977_v14 }
  0x88   :  { %v5045_v34 = vmul.f32 %v4989_v48, %v1746_v10  ;;  %v5048_v35 = vmul.f32 %v4995_v53, %v1700_v24  ;;  %v979_v15 = vunpack.c.1.s8 %v4981_v26  ;;  %v1699_v41 = vcvt.s32.f32 %v931_v36 }
  0x89   :  { %v5052_v37 = vmul.f32 %v4995_v53, %v1748_v32  ;;  %v5055_v39 = vmul.f32 %v5009_v0, %v1697_v27  ;;  %v834_v21 = vunpack.c.2.s8 %v258_v31  ;;  %v882_v44 = vunpack.c.3.s8 %v258_v31 }
  0x8a   :  { %v5063_v46 = vmul.f32 %v5009_v0, %v1745_v38  ;;  %v1747_v49 = vcvt.s32.f32 %v979_v15  ;;  %v836_v50 = vunpack.c.2.s8 %v260_v33  ;;  %v5066_v51 = vmul.f32 %v5024_v20, %v1699_v41 }
  0x8b   :  { %v1602_v52 = vcvt.s32.f32 %v834_v21  ;;  %v1650_v26 = vcvt.s32.f32 %v882_v44  ;;  %v884_v55 = vunpack.c.3.s8 %v260_v33  ;;  %v833_v62 = vunpack.c.2.s8 %v257_v42 }
  0x8c   :  { %v5071_v58 = vmul.f32 %v5024_v20, %v1747_v49  ;;  %v1604_v61 = vcvt.s32.f32 %v836_v50  ;;  %v881_v6 = vunpack.c.3.s8 %v257_v42  ;;  %v835_v19 = vunpack.c.2.s8 %v259_v56 }
  0x8d   :  { %v5074_v63 = vmul.f32 %v4989_v48, %v1602_v52  ;;  %v5077_v1 = vmul.f32 %v4989_v48, %v1650_v26  ;;  %v1652_v59 = vcvt.s32.f32 %v884_v55  ;;  %v1601_v17 = vcvt.s32.f32 %v833_v62 }
  0x8e   :  { %v5082_v4 = vmul.f32 %v4995_v53, %v1604_v61  ;;  %v1649_v16 = vcvt.s32.f32 %v881_v6  ;;  %v883_v25 = vunpack.c.3.s8 %v259_v56  ;;  %v1603_v24 = vcvt.s32.f32 %v835_v19  ;;  %v210_v6 = vld [vmem:[#allocation7 + $0x1a8] sm:$0xff] }
  0x8f   :  { %v5087_v23 = vmul.f32 %v4995_v53, %v1652_v59  ;;  %v5090_v10 = vmul.f32 %v5009_v0, %v1601_v17  ;;  %v738_v32 = vunpack.c.0.s8 %v258_v31  ;;  %v786_v14 = vunpack.c.1.s8 %v258_v31 }
  0x90   :  { %v5095_v36 = vmul.f32 %v5009_v0, %v1649_v16  ;;  %v1651_v38 = vcvt.s32.f32 %v883_v25  ;;  %v740_v15 = vunpack.c.0.s8 %v260_v33  ;;  %v5098_v41 = vmul.f32 %v5024_v20, %v1603_v24  ;;  %v212_v25 = vld [vmem:[#allocation7 + $0x1b8] sm:$0xff] }
  0x91   :  { %v1506_v21 = vcvt.s32.f32 %v738_v32  ;;  %v1554_v44 = vcvt.s32.f32 %v786_v14  ;;  %v788_v49 = vunpack.c.1.s8 %v260_v33  ;;  %v737_v26 = vunpack.c.0.s8 %v257_v42 }
  0x92   :  { %v5103_v52 = vmul.f32 %v5024_v20, %v1651_v38  ;;  %v1508_v31 = vcvt.s32.f32 %v740_v15  ;;  %v785_v59 = vunpack.c.1.s8 %v257_v42  ;;  %v739_v16 = vunpack.c.0.s8 %v259_v56 }
  0x93   :  { %v5106_v55 = vmul.f32 %v4989_v48, %v1506_v21  ;;  %v5109_v61 = vmul.f32 %v4989_v48, %v1554_v44  ;;  %v1556_v62 = vcvt.s32.f32 %v788_v49  ;;  %v1505_v19 = vcvt.s32.f32 %v737_v26  ;;  %v209_v49 = vld [vmem:[#allocation7 + $0x1a0] sm:$0xff] }
  0x94   :  { %v5114_v17 = vmul.f32 %v4995_v53, %v1508_v31  ;;  %v1553_v14 = vcvt.s32.f32 %v785_v59  ;;  %v787_v38 = vunpack.c.1.s8 %v259_v56  ;;  %v1507_v15 = vcvt.s32.f32 %v739_v16 }
  0x95   :  { %v5119_v32 = vmul.f32 %v4995_v53, %v1556_v62  ;;  %v5122_v42 = vmul.f32 %v5009_v0, %v1505_v19  ;;  %v642_v21 = vunpack.c.2.s8 %v210_v6  ;;  %v690_v44 = vunpack.c.3.s8 %v210_v6  ;;  %v211_v19 = vld [vmem:[#allocation7 + $0x1b0] sm:$0xff] }
  0x96   :  { %v5127_v26 = vmul.f32 %v5009_v0, %v1553_v14  ;;  %v1555_v33 = vcvt.s32.f32 %v787_v38  ;;  %v644_v24 = vunpack.c.2.s8 %v212_v25  ;;  %v5130_v62 = vmul.f32 %v5024_v20, %v1507_v15 }
  0x97   :  { %v1410_v59 = vcvt.s32.f32 %v642_v21  ;;  %v1458_v56 = vcvt.s32.f32 %v690_v44  ;;  %v692_v50 = vunpack.c.3.s8 %v212_v25  ;;  %v641_v31 = vunpack.c.2.s8 %v209_v49 }
  0x98   :  { %v5135_v27 = vmul.f32 %v5024_v20, %v1555_v33  ;;  %v1412_v2 = vcvt.s32.f32 %v644_v24  ;;  %v689_v12 = vunpack.c.3.s8 %v209_v49  ;;  %v643_v57 = vunpack.c.2.s8 %v211_v19 }
  0x99   :  { %v5138_v14 = vmul.f32 %v4989_v48, %v1410_v59  ;;  %v5141_v38 = vmul.f32 %v4989_v48, %v1458_v56  ;;  %v1460_v15 = vcvt.s32.f32 %v692_v50  ;;  %v1409_v16 = vcvt.s32.f32 %v641_v31 }
  0x9a   :  { %v5146_v44 = vmul.f32 %v4995_v53, %v1412_v2  ;;  %v1457_v59 = vcvt.s32.f32 %v689_v12  ;;  %v691_v60 = vunpack.c.3.s8 %v211_v19  ;;  %v1411_v50 = vcvt.s32.f32 %v643_v57 }
  0x9b   :  { %8147 = vst [vmem:[#allocation24_spill] sm:$0xff] %v5138_v14  ;;  %8148 = vst [vmem:[#allocation25_spill] sm:$0xff] %v5141_v38  ;;  %v5151_v24 = vmul.f32 %v4995_v53, %v1460_v15  ;;  %v5154_v56 = vmul.f32 %v5009_v0, %v1409_v16  ;;  %v546_v45 = vunpack.c.0.s8 %v210_v6  ;;  %v594_v40 = vunpack.c.1.s8 %v210_v6  ;;  %v164_v16 = vld [vmem:[#allocation7 + $0x38] sm:$0xff] }
  0x9c   :  { %8149 = vst [vmem:[#allocation26_spill] sm:$0xff] %v5146_v44  ;;  %v5159_v31 = vmul.f32 %v5009_v0, %v1457_v59  ;;  %v1459_v21 = vcvt.s32.f32 %v691_v60  ;;  %v548_v18 = vunpack.c.0.s8 %v212_v25  ;;  %v5162_v33 = vmul.f32 %v5024_v20, %v1411_v50  ;;  %v162_v44 = vld [vmem:[#allocation7 + $0x28] sm:$0xff] }
  0x9d   :  { %8150 = vst [vmem:[#allocation27_spill] sm:$0xff] %v5151_v24  ;;  %8151 = vst [vmem:[#allocation28_spill] sm:$0xff] %v5154_v56  ;;  %v1314_v15 = vcvt.s32.f32 %v546_v45  ;;  %v1362_v12 = vcvt.s32.f32 %v594_v40  ;;  %v596_v22 = vunpack.c.1.s8 %v212_v25  ;;  %v545_v14 = vunpack.c.0.s8 %v209_v49 }
  0x9e   :  { %8152 = vst [vmem:[#allocation29_spill] sm:$0xff] %v5159_v31  ;;  %8153 = vst [vmem:[#allocation30_spill] sm:$0xff] %v5162_v33  ;;  %v5167_v57 = vmul.f32 %v5024_v20, %v1459_v21  ;;  %v1316_v6 = vcvt.s32.f32 %v548_v18  ;;  %v593_v50 = vunpack.c.1.s8 %v209_v49  ;;  %v547_v21 = vunpack.c.0.s8 %v211_v19  ;;  %v161_v33 = vld [vmem:[#allocation7 + $0x20] sm:$0xff] }
  0x9f   :  { %v5170_v2 = vmul.f32 %v4989_v48, %v1314_v15  ;;  %v5173_v60 = vmul.f32 %v4989_v48, %v1362_v12  ;;  %v1364_v59 = vcvt.s32.f32 %v596_v22  ;;  %v1313_v25 = vcvt.s32.f32 %v545_v14 }
  0xa0   :  { %8154 = vst [vmem:[#allocation31_spill] sm:$0xff] %v5167_v57  ;;  %v5178_v45 = vmul.f32 %v4995_v53, %v1316_v6  ;;  %v1361_v12 = vcvt.s32.f32 %v593_v50  ;;  %v595_v56 = vunpack.c.1.s8 %v211_v19  ;;  %v1315_v49 = vcvt.s32.f32 %v547_v21 }
  0xa1   :  { %8155 = vst [vmem:[#allocation32_spill] sm:$0xff] %v5170_v2  ;;  %8156 = vst [vmem:[#allocation33_spill] sm:$0xff] %v5173_v60  ;;  %v5183_v15 = vmul.f32 %v4995_v53, %v1364_v59  ;;  %v5186_v22 = vmul.f32 %v5009_v0, %v1313_v25  ;;  %v450_v31 = vunpack.c.2.s8 %v162_v44  ;;  %v498_v40 = vunpack.c.3.s8 %v162_v44  ;;  %v163_v25 = vld [vmem:[#allocation7 + $0x30] sm:$0xff] }
  0xa2   :  { %8157 = vst [vmem:[#allocation34_spill] sm:$0xff] %v5178_v45  ;;  %v5191_v6 = vmul.f32 %v5009_v0, %v1361_v12  ;;  %v1363_v57 = vcvt.s32.f32 %v595_v56  ;;  %v452_v18 = vunpack.c.2.s8 %v164_v16  ;;  %v5194_v59 = vmul.f32 %v5024_v20, %v1315_v49 }
  0xa3   :  { %8158 = vst [vmem:[#allocation35_spill] sm:$0xff] %v5183_v15  ;;  %8159 = vst [vmem:[#allocation36_spill] sm:$0xff] %v5186_v22  ;;  %v1218_v50 = vcvt.s32.f32 %v450_v31  ;;  %v1266_v19 = vcvt.s32.f32 %v498_v40  ;;  %v500_v2 = vunpack.c.3.s8 %v164_v16  ;;  %v449_v14 = vunpack.c.2.s8 %v161_v33 }
  0xa4   :  { %8160 = vst [vmem:[#allocation37_spill] sm:$0xff] %v5191_v6  ;;  %8161 = vst [vmem:[#allocation38_spill] sm:$0xff] %v5194_v59  ;;  %v5199_v60 = vmul.f32 %v5024_v20, %v1363_v57  ;;  %v1220_v24 = vcvt.s32.f32 %v452_v18  ;;  %v497_v45 = vunpack.c.3.s8 %v161_v33  ;;  %v451_v22 = vunpack.c.2.s8 %v163_v25 }
  0xa5   :  { %v5202_v12 = vmul.f32 %v4989_v48, %v1218_v50  ;;  %v5205_v56 = vmul.f32 %v4989_v48, %v1266_v19  ;;  %v1268_v49 = vcvt.s32.f32 %v500_v2  ;;  %v1217_v21 = vcvt.s32.f32 %v449_v14 }
  0xa6   :  { %v5210_v40 = vmul.f32 %v4995_v53, %v1220_v24  ;;  %v1265_v50 = vcvt.s32.f32 %v497_v45  ;;  %v499_v6 = vunpack.c.3.s8 %v163_v25  ;;  %v1219_v2 = vcvt.s32.f32 %v451_v22 }
  0xa7   :  { %8162 = vst [vmem:[#allocation39_spill] sm:$0xff] %v5202_v12  ;;  %8163 = vst [vmem:[#allocation40_spill] sm:$0xff] %v5205_v56  ;;  %v5215_v18 = vmul.f32 %v4995_v53, %v1268_v49  ;;  %v5218_v19 = vmul.f32 %v5009_v0, %v1217_v21  ;;  %v354_v15 = vunpack.c.0.s8 %v162_v44  ;;  %v402_v38 = vunpack.c.1.s8 %v162_v44  ;;  %v5244_v21 = vld [vmem:[#allocation8 + $0x8] sm:$0xff] }
  0xa8   :  { %8164 = vst [vmem:[#allocation41_spill] sm:$0xff] %v5210_v40  ;;  %v5223_v14 = vmul.f32 %v5009_v0, %v1265_v50  ;;  %v1267_v31 = vcvt.s32.f32 %v499_v6  ;;  %v356_v59 = vunpack.c.0.s8 %v164_v16  ;;  %v5226_v57 = vmul.f32 %v5024_v20, %v1219_v2  ;;  %v310_v40 = vld [vmem:[#allocation7 + $0x4c8] sm:$0xff] }
  0xa9   :  { %8165 = vst [vmem:[#allocation42_spill] sm:$0xff] %v5218_v19  ;;  %v1122_v49 = vcvt.s32.f32 %v354_v15  ;;  %v1170_v45 = vcvt.s32.f32 %v402_v38  ;;  %v404_v12 = vunpack.c.1.s8 %v164_v16  ;;  %v353_v56 = vunpack.c.0.s8 %v161_v33 }
  0xaa   :  { %8166 = vst [vmem:[#allocation43_spill] sm:$0xff] %v5226_v57  ;;  %v5231_v22 = vmul.f32 %v5024_v20, %v1267_v31  ;;  %v1124_v44 = vcvt.s32.f32 %v356_v59  ;;  %v401_v2 = vunpack.c.1.s8 %v161_v33  ;;  %v355_v31 = vunpack.c.0.s8 %v163_v25  ;;  %v312_v33 = vld [vmem:[#allocation7 + $0x4d8] sm:$0xff] }
  0xab   :  { %v5234_v24 = vmul.f32 %v4989_v48, %v1122_v49  ;;  %v5237_v6 = vmul.f32 %v4989_v48, %v1170_v45  ;;  %v1172_v50 = vcvt.s32.f32 %v404_v12  ;;  %v1121_v15 = vcvt.s32.f32 %v353_v56 }
  0xac   :  { %8167 = vst [vmem:[#allocation44_spill] sm:$0xff] %v5231_v22  ;;  %v5242_v16 = vmul.f32 %v4995_v53, %v1124_v44  ;;  %v1169_v48 = vcvt.s32.f32 %v401_v2  ;;  %v403_v12 = vunpack.c.1.s8 %v163_v25  ;;  %v1123_v38 = vcvt.s32.f32 %v355_v31 }
  0xad   :  { %8168 = vst [vmem:[#allocation45_spill] sm:$0xff] %v5234_v24  ;;  %8169 = vst [vmem:[#allocation46_spill] sm:$0xff] %v5237_v6  ;;  %v5249_v49 = vmul.f32 %v4995_v53, %v1172_v50  ;;  %v5252_v45 = vmul.f32 %v5009_v0, %v1121_v15  ;;  %v1030_v57 = vunpack.c.2.s8 %v310_v40  ;;  %v1078_v44 = vunpack.c.3.s8 %v310_v40  ;;  %v309_v50 = vld [vmem:[#allocation7 + $0x4c0] sm:$0xff] }
  0xae   :  { %8170 = vst [vmem:[#allocation47_spill] sm:$0xff] %v5242_v16  ;;  %v5257_v22 = vmul.f32 %v5009_v0, %v1169_v48  ;;  %v1171_v19 = vcvt.s32.f32 %v403_v12  ;;  %v5261_v53 = vrot.slane %v5244_v21, %v4863_v3  ;;  %v5264_v25 = vmul.f32 %v5024_v20, %v1123_v38  ;;  %v311_v12 = vld [vmem:[#allocation7 + $0x4d0] sm:$0xff] }
  0xaf   :  { %8171 = vst [vmem:[#allocation48_spill] sm:$0xff] %v5249_v49  ;;  %8172 = vst [vmem:[#allocation49_spill] sm:$0xff] %v5252_v45  ;;  %v1798_v2 = vcvt.s32.f32 %v1030_v57  ;;  %v1846_v15 = vcvt.s32.f32 %v1078_v44  ;;  %v1032_v31 = vunpack.c.2.s8 %v312_v33  ;;  %v1080_v0 = vunpack.c.3.s8 %v312_v33 }
  0xb0   :  { %8173 = vst [vmem:[#allocation50_spill] sm:$0xff] %v5257_v22  ;;  %8174 = vst [vmem:[#allocation51_spill] sm:$0xff] %v5264_v25  ;;  %v5269_v56 = vmul.f32 %v5024_v20, %v1171_v19  ;;  %v5273_v48 = vrot.slane %v5244_v21, %v4866_v5  ;;  %v1029_v44 = vunpack.c.2.s8 %v309_v50  ;;  %v1077_v20 = vunpack.c.3.s8 %v309_v50 }
  0xb1   :  { %v5276_v3 = vmul.f32 %v5261_v53, %v1798_v2  ;;  %v5279_v38 = vmul.f32 %v5261_v53, %v1846_v15  ;;  %v1800_v57 = vcvt.s32.f32 %v1032_v31  ;;  %v1848_v45 = vcvt.s32.f32 %v1080_v0 }
  0xb2   :  { %8175 = vst [vmem:[#allocation52_spill] sm:$0xff] %v5269_v56  ;;  %v5285_v19 = vrot.slane %v5244_v21, %v4869_v7  ;;  %v1797_v22 = vcvt.s32.f32 %v1029_v44  ;;  %v1031_v15 = vunpack.c.2.s8 %v311_v12  ;;  %v1845_v16 = vcvt.s32.f32 %v1077_v20 }
  0xb3   :  { %8176 = vst [vmem:[#allocation53_spill] sm:$0xff] %v5276_v3  ;;  %8177 = vst [vmem:[#allocation54_spill] sm:$0xff] %v5279_v38  ;;  %v5290_v2 = vmul.f32 %v5273_v48, %v1800_v57  ;;  %v5293_v31 = vmul.f32 %v5273_v48, %v1848_v45  ;;  %v1079_v49 = vunpack.c.3.s8 %v311_v12  ;;  %v5297_v0 = vrot.slane %v5244_v21, %v4874_v11 }
  0xb4   :  { %v5300_v59 = vmul.f32 %v5285_v19, %v1797_v22  ;;  %v1799_v7 = vcvt.s32.f32 %v1031_v15  ;;  %v934_v25 = vunpack.c.0.s8 %v310_v40  ;;  %v982_v5 = vunpack.c.1.s8 %v310_v40  ;;  %v264_v22 = vld [vmem:[#allocation7 + $0x358] sm:$0xff] }
  0xb5   :  { %8178 = vst [vmem:[#allocation55_spill] sm:$0xff] %v5290_v2  ;;  %8179 = vst [vmem:[#allocation56_spill] sm:$0xff] %v5293_v31  ;;  %v5305_v44 = vmul.f32 %v5285_v19, %v1845_v16  ;;  %v1847_v45 = vcvt.s32.f32 %v1079_v49  ;;  %v936_v3 = vunpack.c.0.s8 %v312_v33  ;;  %v984_v56 = vunpack.c.1.s8 %v312_v33  ;;  %v262_v2 = vld [vmem:[#allocation7 + $0x348] sm:$0xff] }
  0xb6   :  { %8180 = vst [vmem:[#allocation57_spill] sm:$0xff] %v5300_v59  ;;  %v5308_v20 = vmul.f32 %v5297_v0, %v1799_v7  ;;  %v1702_v38 = vcvt.s32.f32 %v934_v25  ;;  %v1750_v11 = vcvt.s32.f32 %v982_v5  ;;  %v933_v24 = vunpack.c.0.s8 %v309_v50 }
  0xb7   :  { %8181 = vst [vmem:[#allocation58_spill] sm:$0xff] %v5305_v44  ;;  %v5313_v15 = vmul.f32 %v5297_v0, %v1847_v45  ;;  %v1704_v40 = vcvt.s32.f32 %v936_v3  ;;  %v1752_v49 = vcvt.s32.f32 %v984_v56  ;;  %v981_v7 = vunpack.c.1.s8 %v309_v50 }
  0xb8   :  { %8182 = vst [vmem:[#allocation59_spill] sm:$0xff] %v5308_v20  ;;  %v5316_v57 = vmul.f32 %v5261_v53, %v1702_v38  ;;  %v5319_v16 = vmul.f32 %v5261_v53, %v1750_v11  ;;  %v1701_v25 = vcvt.s32.f32 %v933_v24  ;;  %v935_v45 = vunpack.c.0.s8 %v311_v12  ;;  %v261_v20 = vld [vmem:[#allocation7 + $0x340] sm:$0xff] }
  0xb9   :  { %8183 = vst [vmem:[#allocation60_spill] sm:$0xff] %v5313_v15  ;;  %v5324_v33 = vmul.f32 %v5273_v48, %v1704_v40  ;;  %v5329_v38 = vmul.f32 %v5273_v48, %v1752_v49  ;;  %v1749_v11 = vcvt.s32.f32 %v981_v7  ;;  %v983_v59 = vunpack.c.1.s8 %v311_v12 }
  0xba   :  { %8184 = vst [vmem:[#allocation61_spill] sm:$0xff] %v5316_v57  ;;  %8185 = vst [vmem:[#allocation62_spill] sm:$0xff] %v5319_v16  ;;  %v5332_v56 = vmul.f32 %v5285_v19, %v1701_v25  ;;  %v1703_v50 = vcvt.s32.f32 %v935_v45  ;;  %v838_v44 = vunpack.c.2.s8 %v262_v2  ;;  %v886_v5 = vunpack.c.3.s8 %v262_v2  ;;  %v263_v25 = vld [vmem:[#allocation7 + $0x350] sm:$0xff] }
  0xbb   :  { %8186 = vst [vmem:[#allocation63_spill] sm:$0xff] %v5324_v33  ;;  %8187 = vst [vmem:[#allocation64_spill] sm:$0xff] %v5329_v38  ;;  %v5337_v40 = vmul.f32 %v5285_v19, %v1749_v11  ;;  %v1751_v15 = vcvt.s32.f32 %v983_v59  ;;  %v840_v3 = vunpack.c.2.s8 %v264_v22  ;;  %v888_v57 = vunpack.c.3.s8 %v264_v22 }
  0xbc   :  { %8188 = vst [vmem:[#allocation65_spill] sm:$0xff] %v5332_v56  ;;  %v5340_v49 = vmul.f32 %v5297_v0, %v1703_v50  ;;  %v1606_v7 = vcvt.s32.f32 %v838_v44  ;;  %v1654_v12 = vcvt.s32.f32 %v886_v5  ;;  %v837_v24 = vunpack.c.2.s8 %v261_v20 }
  0xbd   :  { %8189 = vst [vmem:[#allocation66_spill] sm:$0xff] %v5337_v40  ;;  %v5345_v16 = vmul.f32 %v5297_v0, %v1751_v15  ;;  %v1608_v31 = vcvt.s32.f32 %v840_v3  ;;  %v1656_v50 = vcvt.s32.f32 %v888_v57  ;;  %v885_v33 = vunpack.c.3.s8 %v261_v20 }
  0xbe   :  { %8190 = vst [vmem:[#allocation67_spill] sm:$0xff] %v5340_v49  ;;  %v5348_v11 = vmul.f32 %v5261_v53, %v1606_v7  ;;  %v5351_v59 = vmul.f32 %v5261_v53, %v1654_v12  ;;  %v1605_v45 = vcvt.s32.f32 %v837_v24  ;;  %v839_v56 = vunpack.c.2.s8 %v263_v25 }
  0xbf   :  { %8191 = vst [vmem:[#allocation68_spill] sm:$0xff] %v5345_v16  ;;  %v5356_v5 = vmul.f32 %v5273_v48, %v1608_v31  ;;  %v5361_v3 = vmul.f32 %v5273_v48, %v1656_v50  ;;  %v1653_v7 = vcvt.s32.f32 %v885_v33  ;;  %v887_v40 = vunpack.c.3.s8 %v263_v25 }
  0xc0   :  { %8192 = vst [vmem:[#allocation69_spill] sm:$0xff] %v5348_v11  ;;  %8193 = vst [vmem:[#allocation70_spill] sm:$0xff] %v5351_v59  ;;  %v5364_v12 = vmul.f32 %v5285_v19, %v1605_v45  ;;  %v1607_v57 = vcvt.s32.f32 %v839_v56  ;;  %v742_v38 = vunpack.c.0.s8 %v262_v2  ;;  %v790_v6 = vunpack.c.1.s8 %v262_v2  ;;  %v216_v45 = vld [vmem:[#allocation7 + $0x1d8] sm:$0xff] }
  0xc1   :  { %8194 = vst [vmem:[#allocation71_spill] sm:$0xff] %v5356_v5  ;;  %8195 = vst [vmem:[#allocation72_spill] sm:$0xff] %v5361_v3  ;;  %v5369_v24 = vmul.f32 %v5285_v19, %v1653_v7  ;;  %v1655_v44 = vcvt.s32.f32 %v887_v40  ;;  %v744_v49 = vunpack.c.0.s8 %v264_v22  ;;  %v792_v11 = vunpack.c.1.s8 %v264_v22  ;;  %v214_v5 = vld [vmem:[#allocation7 + $0x1c8] sm:$0xff] }
  0xc2   :  { %8196 = vst [vmem:[#allocation73_spill] sm:$0xff] %v5364_v12  ;;  %v5372_v15 = vmul.f32 %v5297_v0, %v1607_v57  ;;  %v1510_v50 = vcvt.s32.f32 %v742_v38  ;;  %v1558_v33 = vcvt.s32.f32 %v790_v6  ;;  %v741_v59 = vunpack.c.0.s8 %v261_v20 }
  0xc3   :  { %8197 = vst [vmem:[#allocation74_spill] sm:$0xff] %v5369_v24  ;;  %v5377_v56 = vmul.f32 %v5297_v0, %v1655_v44  ;;  %v1512_v2 = vcvt.s32.f32 %v744_v49  ;;  %v1560_v7 = vcvt.s32.f32 %v792_v11  ;;  %v789_v57 = vunpack.c.1.s8 %v261_v20 }
  0xc4   :  { %8198 = vst [vmem:[#allocation75_spill] sm:$0xff] %v5372_v15  ;;  %v5380_v31 = vmul.f32 %v5261_v53, %v1510_v50  ;;  %v5383_v40 = vmul.f32 %v5261_v53, %v1558_v33  ;;  %v1509_v38 = vcvt.s32.f32 %v741_v59  ;;  %v743_v44 = vunpack.c.0.s8 %v263_v25  ;;  %v213_v15 = vld [vmem:[#allocation7 + $0x1c0] sm:$0xff] }
  0xc5   :  { %8199 = vst [vmem:[#allocation76_spill] sm:$0xff] %v5377_v56  ;;  %v5388_v22 = vmul.f32 %v5273_v48, %v1512_v2  ;;  %v5393_v50 = vmul.f32 %v5273_v48, %v1560_v7  ;;  %v1557_v33 = vcvt.s32.f32 %v789_v57  ;;  %v791_v12 = vunpack.c.1.s8 %v263_v25 }
  0xc6   :  { %8200 = vst [vmem:[#allocation77_spill] sm:$0xff] %v5380_v31  ;;  %8201 = vst [vmem:[#allocation78_spill] sm:$0xff] %v5383_v40  ;;  %v5396_v20 = vmul.f32 %v5285_v19, %v1509_v38  ;;  %v1511_v11 = vcvt.s32.f32 %v743_v44  ;;  %v646_v24 = vunpack.c.2.s8 %v214_v5  ;;  %v694_v6 = vunpack.c.3.s8 %v214_v5  ;;  %v215_v38 = vld [vmem:[#allocation7 + $0x1d0] sm:$0xff] }
  0xc7   :  { %8202 = vst [vmem:[#allocation79_spill] sm:$0xff] %v5388_v22  ;;  %8203 = vst [vmem:[#allocation80_spill] sm:$0xff] %v5393_v50  ;;  %v5401_v2 = vmul.f32 %v5285_v19, %v1557_v33  ;;  %v1559_v56 = vcvt.s32.f32 %v791_v12  ;;  %v648_v49 = vunpack.c.2.s8 %v216_v45  ;;  %v696_v31 = vunpack.c.3.s8 %v216_v45 }
  0xc8   :  { %8204 = vst [vmem:[#allocation81_spill] sm:$0xff] %v5396_v20  ;;  %v5404_v7 = vmul.f32 %v5297_v0, %v1511_v11  ;;  %v1414_v57 = vcvt.s32.f32 %v646_v24  ;;  %v1462_v25 = vcvt.s32.f32 %v694_v6  ;;  %v645_v59 = vunpack.c.2.s8 %v213_v15 }
  0xc9   :  { %8205 = vst [vmem:[#allocation82_spill] sm:$0xff] %v5401_v2  ;;  %v5409_v40 = vmul.f32 %v5297_v0, %v1559_v56  ;;  %v1416_v3 = vcvt.s32.f32 %v648_v49  ;;  %v1464_v11 = vcvt.s32.f32 %v696_v31  ;;  %v693_v22 = vunpack.c.3.s8 %v213_v15 }
  0xca   :  { %8206 = vst [vmem:[#allocation83_spill] sm:$0xff] %v5404_v7  ;;  %v5412_v33 = vmul.f32 %v5261_v53, %v1414_v57  ;;  %v5415_v12 = vmul.f32 %v5261_v53, %v1462_v25  ;;  %v1413_v44 = vcvt.s32.f32 %v645_v59  ;;  %v647_v20 = vunpack.c.2.s8 %v215_v38 }
  0xcb   :  { %8207 = vst [vmem:[#allocation84_spill] sm:$0xff] %v5409_v40  ;;  %v5420_v6 = vmul.f32 %v5273_v48, %v1416_v3  ;;  %v5425_v49 = vmul.f32 %v5273_v48, %v1464_v11  ;;  %v1461_v57 = vcvt.s32.f32 %v693_v22  ;;  %v695_v2 = vunpack.c.3.s8 %v215_v38 }
  0xcc   :  { %8208 = vst [vmem:[#allocation85_spill] sm:$0xff] %v5412_v33  ;;  %8209 = vst [vmem:[#allocation86_spill] sm:$0xff] %v5415_v12  ;;  %v5428_v25 = vmul.f32 %v5285_v19, %v1413_v44  ;;  %v1415_v31 = vcvt.s32.f32 %v647_v20  ;;  %v550_v50 = vunpack.c.0.s8 %v214_v5  ;;  %v598_v16 = vunpack.c.1.s8 %v214_v5  ;;  %v168_v44 = vld [vmem:[#allocation7 + $0x58] sm:$0xff] }
  0xcd   :  { %8210 = vst [vmem:[#allocation87_spill] sm:$0xff] %v5420_v6  ;;  %8211 = vst [vmem:[#allocation88_spill] sm:$0xff] %v5425_v49  ;;  %v5433_v59 = vmul.f32 %v5285_v19, %v1461_v57  ;;  %v1463_v24 = vcvt.s32.f32 %v695_v2  ;;  %v552_v7 = vunpack.c.0.s8 %v216_v45  ;;  %v600_v33 = vunpack.c.1.s8 %v216_v45  ;;  %v166_v6 = vld [vmem:[#allocation7 + $0x48] sm:$0xff] }
  0xce   :  { %8212 = vst [vmem:[#allocation89_spill] sm:$0xff] %v5428_v25  ;;  %v5436_v56 = vmul.f32 %v5297_v0, %v1415_v31  ;;  %v1318_v11 = vcvt.s32.f32 %v550_v50  ;;  %v1366_v22 = vcvt.s32.f32 %v598_v16  ;;  %v549_v12 = vunpack.c.0.s8 %v213_v15 }
  0xcf   :  { %8213 = vst [vmem:[#allocation90_spill] sm:$0xff] %v5433_v59  ;;  %v5441_v20 = vmul.f32 %v5297_v0, %v1463_v24  ;;  %v1320_v5 = vcvt.s32.f32 %v552_v7  ;;  %v1368_v57 = vcvt.s32.f32 %v600_v33  ;;  %v597_v31 = vunpack.c.1.s8 %v213_v15 }
  0xd0   :  { %8214 = vst [vmem:[#allocation91_spill] sm:$0xff] %v5436_v56  ;;  %v5444_v3 = vmul.f32 %v5261_v53, %v1318_v11  ;;  %v5447_v2 = vmul.f32 %v5261_v53, %v1366_v22  ;;  %v1317_v50 = vcvt.s32.f32 %v549_v12  ;;  %v551_v24 = vunpack.c.0.s8 %v215_v38  ;;  %v165_v56 = vld [vmem:[#allocation7 + $0x40] sm:$0xff] }
  0xd1   :  { %8215 = vst [vmem:[#allocation92_spill] sm:$0xff] %v5441_v20  ;;  %v5452_v45 = vmul.f32 %v5273_v48, %v1320_v5  ;;  %v5457_v11 = vmul.f32 %v5273_v48, %v1368_v57  ;;  %v1365_v22 = vcvt.s32.f32 %v597_v31  ;;  %v599_v25 = vunpack.c.1.s8 %v215_v38 }
  0xd2   :  { %8216 = vst [vmem:[#allocation93_spill] sm:$0xff] %v5444_v3  ;;  %8217 = vst [vmem:[#allocation94_spill] sm:$0xff] %v5447_v2  ;;  %v5460_v15 = vmul.f32 %v5285_v19, %v1317_v50  ;;  %v1319_v33 = vcvt.s32.f32 %v551_v24  ;;  %v454_v59 = vunpack.c.2.s8 %v166_v6  ;;  %v502_v16 = vunpack.c.3.s8 %v166_v6  ;;  %v167_v50 = vld [vmem:[#allocation7 + $0x50] sm:$0xff] }
  0xd3   :  { %8218 = vst [vmem:[#allocation95_spill] sm:$0xff] %v5452_v45  ;;  %8219 = vst [vmem:[#allocation96_spill] sm:$0xff] %v5457_v11  ;;  %v5465_v5 = vmul.f32 %v5285_v19, %v1365_v22  ;;  %v1367_v20 = vcvt.s32.f32 %v599_v25  ;;  %v456_v7 = vunpack.c.2.s8 %v168_v44  ;;  %v504_v3 = vunpack.c.3.s8 %v168_v44 }
  0xd4   :  { %8220 = vst [vmem:[#allocation97_spill] sm:$0xff] %v5460_v15  ;;  %v5468_v57 = vmul.f32 %v5297_v0, %v1319_v33  ;;  %v1222_v31 = vcvt.s32.f32 %v454_v59  ;;  %v1270_v38 = vcvt.s32.f32 %v502_v16  ;;  %v453_v12 = vunpack.c.2.s8 %v165_v56 }
  0xd5   :  { %8221 = vst [vmem:[#allocation98_spill] sm:$0xff] %v5465_v5  ;;  %v5473_v2 = vmul.f32 %v5297_v0, %v1367_v20  ;;  %v1224_v49 = vcvt.s32.f32 %v456_v7  ;;  %v1272_v33 = vcvt.s32.f32 %v504_v3  ;;  %v501_v45 = vunpack.c.3.s8 %v165_v56 }
  0xd6   :  { %8222 = vst [vmem:[#allocation99_spill] sm:$0xff] %v5468_v57  ;;  %v5476_v22 = vmul.f32 %v5261_v53, %v1222_v31  ;;  %v5479_v25 = vmul.f32 %v5261_v53, %v1270_v38  ;;  %v1221_v24 = vcvt.s32.f32 %v453_v12  ;;  %v455_v15 = vunpack.c.2.s8 %v167_v50 }
  0xd7   :  { %v5484_v16 = vmul.f32 %v5273_v48, %v1224_v49  ;;  %v5489_v7 = vmul.f32 %v5273_v48, %v1272_v33  ;;  %v1269_v31 = vcvt.s32.f32 %v501_v45  ;;  %v503_v5 = vunpack.c.3.s8 %v167_v50 }
  0xd8   :  { %8223 = vst [vmem:[#allocation100_spill] sm:$0xff] %v5476_v22  ;;  %8224 = vst [vmem:[#allocation101_spill] sm:$0xff] %v5479_v25  ;;  %v5492_v38 = vmul.f32 %v5285_v19, %v1221_v24  ;;  %v1223_v3 = vcvt.s32.f32 %v455_v15  ;;  %v358_v11 = vunpack.c.0.s8 %v166_v6  ;;  %v406_v40 = vunpack.c.1.s8 %v166_v6 }
  0xd9   :  { %8225 = vst [vmem:[#allocation102_spill] sm:$0xff] %v5484_v16  ;;  %v5497_v12 = vmul.f32 %v5285_v19, %v1269_v31  ;;  %v1271_v59 = vcvt.s32.f32 %v503_v5  ;;  %v360_v57 = vunpack.c.0.s8 %v168_v44  ;;  %v408_v22 = vunpack.c.1.s8 %v168_v44  ;;  %v314_v16 = vld [vmem:[#allocation7 + $0x4e8] sm:$0xff] }
  0xda   :  { %8226 = vst [vmem:[#allocation103_spill] sm:$0xff] %v5492_v38  ;;  %v5500_v20 = vmul.f32 %v5297_v0, %v1223_v3  ;;  %v1126_v33 = vcvt.s32.f32 %v358_v11  ;;  %v1174_v45 = vcvt.s32.f32 %v406_v40  ;;  %v357_v25 = vunpack.c.0.s8 %v165_v56 }
  0xdb   :  { %v5505_v15 = vmul.f32 %v5297_v0, %v1271_v59  ;;  %v1128_v6 = vcvt.s32.f32 %v360_v57  ;;  %v1176_v31 = vcvt.s32.f32 %v408_v22  ;;  %v405_v3 = vunpack.c.1.s8 %v165_v56 }
  0xdc   :  { %8227 = vst [vmem:[#allocation104_spill] sm:$0xff] %v5500_v20  ;;  %v5508_v49 = vmul.f32 %v5261_v53, %v1126_v33  ;;  %v5511_v5 = vmul.f32 %v5261_v53, %v1174_v45  ;;  %v1125_v11 = vcvt.s32.f32 %v357_v25  ;;  %v359_v59 = vunpack.c.0.s8 %v167_v50  ;;  %v316_v45 = vld [vmem:[#allocation7 + $0x4f8] sm:$0xff] }
  0xdd   :  { %v5516_v44 = vmul.f32 %v5273_v48, %v1128_v6  ;;  %v5521_v33 = vmul.f32 %v5273_v48, %v1176_v31  ;;  %v1173_v24 = vcvt.s32.f32 %v405_v3  ;;  %v407_v53 = vunpack.c.1.s8 %v167_v50  ;;  %v313_v31 = vld [vmem:[#allocation7 + $0x4e0] sm:$0xff] }
  0xde   :  { %v5524_v56 = vmul.f32 %v5285_v19, %v1125_v11  ;;  %v1127_v22 = vcvt.s32.f32 %v359_v59  ;;  %v1034_v38 = vunpack.c.2.s8 %v314_v16  ;;  %v1082_v40 = vunpack.c.3.s8 %v314_v16 }
  0xdf   :  { %8228 = vst [vmem:[#allocation105_spill] sm:$0xff] %v5516_v44  ;;  %8229 = vst [vmem:[#allocation106_spill] sm:$0xff] %v5521_v33  ;;  %v5529_v25 = vmul.f32 %v5285_v19, %v1173_v24  ;;  %v1175_v20 = vcvt.s32.f32 %v407_v53  ;;  %v5533_v48 = vrot.slane %v5244_v21, %v4978_v43  ;;  %v1036_v59 = vunpack.c.2.s8 %v316_v45  ;;  %v315_v53 = vld [vmem:[#allocation7 + $0x4f0] sm:$0xff] }
  0xe0   :  { %8230 = vst [vmem:[#allocation107_spill] sm:$0xff] %v5524_v56  ;;  %v5536_v50 = vmul.f32 %v5297_v0, %v1127_v22  ;;  %v1802_v3 = vcvt.s32.f32 %v1034_v38  ;;  %v1850_v11 = vcvt.s32.f32 %v1082_v40  ;;  %v1084_v19 = vunpack.c.3.s8 %v316_v45 }
  0xe1   :  { %8231 = vst [vmem:[#allocation108_spill] sm:$0xff] %v5529_v25  ;;  %v5541_v6 = vmul.f32 %v5297_v0, %v1175_v20  ;;  %v5545_v24 = vrot.slane %v5244_v21, %v4985_v47  ;;  %v1804_v38 = vcvt.s32.f32 %v1036_v59  ;;  %v1033_v40 = vunpack.c.2.s8 %v313_v31 }
  0xe2   :  { %8232 = vst [vmem:[#allocation109_spill] sm:$0xff] %v5536_v50  ;;  %v5548_v43 = vmul.f32 %v5533_v48, %v1802_v3  ;;  %v5551_v22 = vmul.f32 %v5533_v48, %v1850_v11  ;;  %v1852_v56 = vcvt.s32.f32 %v1084_v19  ;;  %v1081_v0 = vunpack.c.3.s8 %v313_v31 }
  0xe3   :  { %8233 = vst [vmem:[#allocation110_spill] sm:$0xff] %v5541_v6  ;;  %v5557_v20 = vrot.slane %v5244_v21, %v4998_v54  ;;  %v5562_v3 = vmul.f32 %v5545_v24, %v1804_v38  ;;  %v1801_v25 = vcvt.s32.f32 %v1033_v40  ;;  %v1035_v11 = vunpack.c.2.s8 %v315_v53 }
  0xe4   :  { %8234 = vst [vmem:[#allocation111_spill] sm:$0xff] %v5548_v43  ;;  %8235 = vst [vmem:[#allocation112_spill] sm:$0xff] %v5551_v22  ;;  %v5565_v59 = vmul.f32 %v5545_v24, %v1852_v56  ;;  %v1849_v44 = vcvt.s32.f32 %v1081_v0  ;;  %v1083_v33 = vunpack.c.3.s8 %v315_v53  ;;  %v5569_v19 = vrot.slane %v5244_v21, %v5013_v9 }
  0xe5   :  { %8236 = vst [vmem:[#allocation113_spill] sm:$0xff] %v5562_v3  ;;  %v5572_v57 = vmul.f32 %v5557_v20, %v1801_v25  ;;  %v1803_v54 = vcvt.s32.f32 %v1035_v11  ;;  %v938_v50 = vunpack.c.0.s8 %v314_v16  ;;  %v986_v47 = vunpack.c.1.s8 %v314_v16 }
  0xe6   :  { %8237 = vst [vmem:[#allocation114_spill] sm:$0xff] %v5565_v59  ;;  %v5577_v40 = vmul.f32 %v5557_v20, %v1849_v44  ;;  %v1851_v56 = vcvt.s32.f32 %v1083_v33  ;;  %v940_v43 = vunpack.c.0.s8 %v316_v45  ;;  %v988_v9 = vunpack.c.1.s8 %v316_v45  ;;  %v4639_v44 = vld [vmem:[%s7963_s2] ss:$0 sm:$0xff]  ;;  %s4809_s2 = smov [#allocation11]  }
  0xe7   :  { %8238 = vst [vmem:[#allocation115_spill] sm:$0xff] %v5572_v57  ;;  %v5580_v0 = vmul.f32 %v5569_v19, %v1803_v54  ;;  %v1706_v22 = vcvt.s32.f32 %v938_v50  ;;  %v1754_v21 = vcvt.s32.f32 %v986_v47  ;;  %v937_v6 = vunpack.c.0.s8 %v313_v31  ;;  %v5596_v50 = vld [vmem:[#allocation7 + $0x368] sm:$0xff]  ;;  %s4628_s23 = sshll.u32 %s4809_s2, 4  ;;  %s4629_s23 = int_to_ptr.vmem [resolvable:$true] %s4628_s23 }
  0xe8   :  { %8239 = vst [vmem:[#allocation116_spill] sm:$0xff] %v5577_v40  ;;  %v5585_v11 = vmul.f32 %v5569_v19, %v1851_v56  ;;  %v1708_v16 = vcvt.s32.f32 %v940_v43  ;;  %v1756_v47 = vcvt.s32.f32 %v988_v9  ;;  %v985_v45 = vunpack.c.1.s8 %v313_v31  ;;  %v5608_v31 = vld [vmem:[#allocation7 + $0x378] sm:$0xff]  ;;  %s4769_s24 = scalar_lea.vmem %s4629_s23, 6144  ;;  %p4774_p12 = scmp.lt.s32.totalorder %s4629_s23, %s4629_s23 }
  0xe9   :  { %8240 = vst [vmem:[#allocation117_spill] sm:$0xff] %v5580_v0  ;;  %v5591_v33 = vmul.f32 %v5533_v48, %v1706_v22  ;;  %v5594_v54 = vmul.f32 %v5533_v48, %v1754_v21  ;;  %v1705_v25 = vcvt.s32.f32 %v937_v6  ;;  %v939_v38 = vunpack.c.0.s8 %v315_v53  ;;  %p4770_p11 = scmp.ne.s32.totalorder %s4629_s23, %s4769_s24  ;;  %p4775_p13 = scmp.lt.s32.totalorder %s4769_s24, %s4769_s24 }
  0xea   :  { %v5601_v43 = vmul.f32 %v5545_v24, %v1708_v16  ;;  %v5606_v40 = vmul.f32 %v5545_v24, %v1756_v47  ;;  %v1753_v21 = vcvt.s32.f32 %v985_v45  ;;  %v987_v9 = vunpack.c.1.s8 %v315_v53  ;;  %v5620_v53 = vld [vmem:[#allocation7 + $0x360] sm:$0xff] }
  0xeb   :  { %8241 = vst [vmem:[#allocation118_spill] sm:$0xff] %v5591_v33  ;;  %v5611_v59 = vmul.f32 %v5557_v20, %v1705_v25  ;;  %v1707_v56 = vcvt.s32.f32 %v939_v38  ;;  %v842_v16 = vunpack.c.2.s8 %v5596_v50  ;;  %v890_v45 = vunpack.c.3.s8 %v5596_v50  ;;  %p4776_p0 = por %p4775_p13, %p4774_p12 }
  0xec   :  { %8242 = vst [vmem:[#allocation119_spill] sm:$0xff] %v5601_v43  ;;  %8243 = vst [vmem:[#allocation120_spill] sm:$0xff] %v5606_v40  ;;  %v5617_v22 = vmul.f32 %v5557_v20, %v1753_v21  ;;  %v1755_v47 = vcvt.s32.f32 %v987_v9  ;;  %v844_v38 = vunpack.c.2.s8 %v5608_v31  ;;  %v892_v9 = vunpack.c.3.s8 %v5608_v31  ;;  %v5632_v43 = vld [vmem:[#allocation7 + $0x370] sm:$0xff] }
  0xed   :  { %8244 = vst [vmem:[#allocation121_spill] sm:$0xff] %v5611_v59  ;;  %v1610_v25 = vcvt.s32.f32 %v842_v16  ;;  %v1658_v21 = vcvt.s32.f32 %v890_v45  ;;  %v841_v16 = vunpack.c.2.s8 %v5620_v53  ;;  %v889_v59 = vunpack.c.3.s8 %v5620_v53  ;;  %p4777_p1 = pnand %p4776_p0, %p4770_p11 }
  0xee   :  { %v5629_v0 = vmul.f32 %v5569_v19, %v1755_v47  ;;  %v1660_v45 = vcvt.s32.f32 %v892_v9 }
  0xef   :  { %v5643_v47 = vmul.f32 %v5533_v48, %v1658_v21  ;;  %v8249_v21 = vpack.c.bf16 %v5036_v29, %v5033_v28 }
  0xf0   :  { %8246 = vst [vmem:[#allocation123_spill] sm:$0xff] %v5629_v0  ;;  %v8250_v0 = vpack.c.bf16 %v5045_v34, %v5039_v30 }
 0x108   :  { %v150_v57 = vpop.f32.mrf.mxu0 }
 0x109   :  { %v151_v3 = vadd.f32 %v4639_v44, %v150_v57  ;;  %v5623_v57 = vmul.f32 %v5569_v19, %v1707_v56  ;;  %v1612_v56 = vcvt.s32.f32 %v844_v38  ;;  %v843_v38 = vunpack.c.2.s8 %v5632_v43 }
 0x10a   :  { %v4652_v6 = vpop.f32.mrf.mxu0 }
 0x10b   :  { %v156_v33 = vmax.f32 %v151_v3, 0.0  ;;  %8245 = vst [vmem:[#allocation122_spill] sm:$0xff] %v5623_v57  ;;  %v5637_v3 = vmul.f32 %v5533_v48, %v1610_v25  ;;  %v1609_v25 = vcvt.s32.f32 %v841_v16  ;;  %v8248_v6 = vpack.c.bf16 %v5019_v13, %v5016_v8 }
 0x10c   :  { %v153_v44 = vpop.f32.mrf.mxu0  ;;  %v5662_v57 = vmul.f32 %v5545_v24, %v1660_v45  ;;  %v746_v16 = vunpack.c.0.s8 %v5596_v50  ;;  %v8251_v8 = vpack.c.bf16 %v5052_v37, %v5048_v35  ;;  %v1611_v28 = vcvt.s32.f32 %v843_v38 }
 0x10d   :  { %v5634_v40 = vpack.c.bf16 %v156_v33, %v156_v33  ;;  %v5649_v33 = vmul.f32 %v5545_v24, %v1612_v56  ;;  %v1657_v56 = vcvt.s32.f32 %v889_v59  ;;  %v5672_v13 = vmul.f32 %v5557_v20, %v1609_v25  ;;  %v5845_v59 = vld [vmem:[#allocation7 + $0x78] sm:$0xff] }
 0x10e   :  { %v4653_v44 = vpop.f32.mrf.mxu0  ;;  %v8252_v45 = vmov 0   ;;  %v1514_v34 = vcvt.s32.f32 %v746_v16  ;;  %v748_v35 = vunpack.c.0.s8 %v5608_v31  ;;  %v5684_v37 = vmul.f32 %v5569_v19, %v1611_v28  ;;  %v5702_v28 = vld [vmem:[#allocation7 + $0x1e8] sm:$0xff] }
 0x10f   :  { %8247 = vst [vmem:[#allocation124_spill] sm:$0xff] %v5634_v40  ;;  %3575 = vmatmul.mubr.bf16.vlgmr.msra.gmra.mxu1 %v5634_v40  ;;  %3616 = vmatmul.mubr.bf16.vlgmr.msra.gmra.mxu0 %v5634_v40  ;;  %v891_v44 = vunpack.c.3.s8 %v5632_v43  ;;  %v5680_v30 = vmul.f32 %v5557_v20, %v1657_v56  ;;  %v796_v25 = vunpack.c.1.s8 %v5608_v31  ;;  %v8253_v38 = vpack.c.bf16 %v5063_v46, %v5055_v39  ;;  %v8278_v46 = vld [vmem:[#allocation35_spill] sm:$0xff] }
 0x110   :  { %3625 = vmatpush1.bf16.msra.mxu1 %v8248_v6  ;;  %3666 = vmatpush1.bf16.msra.mxu0 %v8249_v21  ;;  %v794_v6 = vunpack.c.1.s8 %v5596_v50  ;;  %v5699_v56 = vmul.f32 %v5533_v48, %v1514_v34  ;;  %v1516_v16 = vcvt.s32.f32 %v748_v35  ;;  %v8255_v31 = vpack.c.bf16 %v5077_v1, %v5074_v63  ;;  %v5721_v35 = vld [vmem:[#allocation7 + $0x1f8] sm:$0xff] }
 0x111   :  { %3626 = vmatprep.subr.bf16.mxu1 %v8250_v0  ;;  %3667 = vmatprep.subr.bf16.mxu0 %v8251_v8  ;;  %v1659_v29 = vcvt.s32.f32 %v891_v44  ;;  %v8254_v44 = vpack.c.bf16 %v5071_v58, %v5066_v51  ;;  %v745_v8 = vunpack.c.0.s8 %v5620_v53  ;;  %v8256_v39 = vpack.c.bf16 %v5087_v23, %v5082_v4  ;;  %v8276_v4 = vld [vmem:[#allocation32_spill] sm:$0xff] }
 0x112   :  { %3656 = vmatprep.mubr.bf16.mxu1 %v8252_v45  ;;  %3697 = vmatprep.mubr.bf16.mxu0 %v8252_v45  ;;  %v1562_v50 = vcvt.s32.f32 %v794_v6  ;;  %v1564_v58 = vcvt.s32.f32 %v796_v25  ;;  %v5717_v6 = vmul.f32 %v5545_v24, %v1516_v16  ;;  %v747_v63 = vunpack.c.0.s8 %v5632_v43 }
 0x113   :  { %v5687_v0 = vmul.f32 %v5569_v19, %v1659_v29  ;;  %v793_v29 = vunpack.c.1.s8 %v5620_v53  ;;  %v1513_v34 = vcvt.s32.f32 %v745_v8  ;;  %v795_v1 = vunpack.c.1.s8 %v5632_v43 }
 0x114   :  { %3627 = vmatpush1.bf16.msra.mxu1 %v8253_v38  ;;  %3668 = vmatpush1.bf16.msra.mxu0 %v8254_v44  ;;  %v5713_v51 = vmul.f32 %v5533_v48, %v1562_v50  ;;  %v5726_v23 = vmul.f32 %v5545_v24, %v1564_v58  ;;  %v650_v25 = vunpack.c.2.s8 %v5702_v28  ;;  %v8257_v53 = vpack.c.bf16 %v5095_v36, %v5090_v10  ;;  %v8273_v36 = vld [vmem:[#allocation30_spill] sm:$0xff] }
 0x115   :  { %3628 = vmatprep.subr.bf16.mxu1 %v8255_v31  ;;  %3669 = vmatprep.subr.bf16.mxu0 %v8256_v39  ;;  %v1561_v50 = vcvt.s32.f32 %v793_v29  ;;  %v8258_v38 = vpack.c.bf16 %v5103_v52, %v5098_v41  ;;  %v5736_v43 = vmul.f32 %v5557_v20, %v1513_v34  ;;  %v1515_v44 = vcvt.s32.f32 %v747_v63  ;;  %v5739_v31 = vld [vmem:[#allocation7 + $0x1e0] sm:$0xff] }
 0x116   :  { %v1563_v16 = vcvt.s32.f32 %v795_v1  ;;  %v698_v8 = vunpack.c.3.s8 %v5702_v28  ;;  %v8259_v39 = vpack.c.bf16 %v5109_v61, %v5106_v55  ;;  %v8260_v10 = vpack.c.bf16 %v5119_v32, %v5114_v17  ;;  %v219_v17 = vld [vmem:[#allocation7 + $0x1f0] sm:$0xff]  ;;  %v8272_v32 = vld [vmem:[#allocation31_spill] sm:$0xff] }
 0x117   :  { %v5750_v41 = vmul.f32 %v5557_v20, %v1561_v50  ;;  %v1418_v52 = vcvt.s32.f32 %v650_v25  ;;  %v652_v58 = vunpack.c.2.s8 %v5721_v35  ;;  %v5754_v29 = vmul.f32 %v5569_v19, %v1515_v44 }
 0x118   :  { %3629 = vmatpush1.bf16.msra.mxu1 %v8257_v53  ;;  %3670 = vmatpush1.bf16.msra.mxu0 %v8258_v38  ;;  %v5757_v34 = vmul.f32 %v5569_v19, %v1563_v16  ;;  %v1466_v55 = vcvt.s32.f32 %v698_v8  ;;  %v700_v61 = vunpack.c.3.s8 %v5721_v35  ;;  %v649_v50 = vunpack.c.2.s8 %v5739_v31 }
 0x119   :  { %3630 = vmatprep.subr.bf16.mxu1 %v8259_v39  ;;  %3671 = vmatprep.subr.bf16.mxu0 %v8260_v10  ;;  %v5763_v63 = vmul.f32 %v5533_v48, %v1418_v52  ;;  %v1420_v1 = vcvt.s32.f32 %v652_v58  ;;  %v8261_v25 = vpack.c.bf16 %v5127_v26, %v5122_v42  ;;  %v8262_v53 = vpack.c.bf16 %v5135_v27, %v5130_v62  ;;  %v8263_v39 = vld [vmem:[#allocation25_spill] sm:$0xff]  ;;  %v8264_v10 = vld [vmem:[#allocation24_spill] sm:$0xff]  ;;  %v8266_v58 = vld [vmem:[#allocation27_spill] sm:$0xff] }
 0x11a   :  { %v5775_v44 = vmul.f32 %v5533_v48, %v1466_v55  ;;  %v1468_v16 = vcvt.s32.f32 %v700_v61  ;;  %v697_v8 = vunpack.c.3.s8 %v5739_v31  ;;  %v8265_v52 = vpack.c.bf16 %v8263_v39, %v8264_v10  ;;  %v8267_v42 = vld [vmem:[#allocation26_spill] sm:$0xff] }
 0x11b   :  { %v8268_v26 = vpack.c.bf16 %v8266_v58, %v8267_v42  ;;  %v5785_v27 = vmul.f32 %v5545_v24, %v1420_v1  ;;  %v1417_v62 = vcvt.s32.f32 %v649_v50  ;;  %v554_v39 = vunpack.c.0.s8 %v5702_v28  ;;  %v8269_v42 = vld [vmem:[#allocation29_spill] sm:$0xff]  ;;  %v8270_v50 = vld [vmem:[#allocation28_spill] sm:$0xff] }
 0x11c   :  { %3631 = vmatpush1.bf16.msra.mxu1 %v8261_v25  ;;  %3672 = vmatpush1.bf16.msra.mxu0 %v8262_v53  ;;  %v651_v25 = vunpack.c.2.s8 %v219_v17  ;;  %v699_v53 = vunpack.c.3.s8 %v219_v17  ;;  %v5790_v61 = vmul.f32 %v5545_v24, %v1468_v16  ;;  %v1465_v38 = vcvt.s32.f32 %v697_v8 }
 0x11d   :  { %3632 = vmatprep.subr.bf16.mxu1 %v8265_v52  ;;  %3673 = vmatprep.subr.bf16.mxu0 %v8268_v26  ;;  %v5794_v10 = vmul.f32 %v5557_v20, %v1417_v62  ;;  %v602_v1 = vunpack.c.1.s8 %v5702_v28  ;;  %v8271_v26 = vpack.c.bf16 %v8269_v42, %v8270_v50  ;;  %v8274_v55 = vpack.c.bf16 %v8272_v32, %v8273_v36  ;;  %v8279_v42 = vld [vmem:[#allocation34_spill] sm:$0xff] }
 0x11e   :  { %v1419_v52 = vcvt.s32.f32 %v651_v25  ;;  %v1467_v58 = vcvt.s32.f32 %v699_v53  ;;  %v5806_v8 = vmul.f32 %v5557_v20, %v1465_v38  ;;  %v1322_v62 = vcvt.s32.f32 %v554_v39  ;;  %v8275_v53 = vld [vmem:[#allocation33_spill] sm:$0xff] }
 0x11f   :  { %v556_v25 = vunpack.c.0.s8 %v5721_v35  ;;  %v8277_v28 = vpack.c.bf16 %v8275_v53, %v8276_v4  ;;  %v8280_v50 = vpack.c.bf16 %v8278_v46, %v8279_v42  ;;  %v604_v38 = vunpack.c.1.s8 %v5721_v35  ;;  %v5828_v46 = vld [vmem:[#allocation7 + $0x68] sm:$0xff]  ;;  %v8285_v42 = vld [vmem:[#allocation36_spill] sm:$0xff] }
 0x120   :  { %3633 = vmatpush1.bf16.msra.mxu1 %v8271_v26  ;;  %3674 = vmatpush1.bf16.msra.mxu0 %v8274_v55  ;;  %v5816_v36 = vmul.f32 %v5569_v19, %v1419_v52  ;;  %v5819_v32 = vmul.f32 %v5569_v19, %v1467_v58  ;;  %v1370_v55 = vcvt.s32.f32 %v602_v1  ;;  %v5825_v26 = vmul.f32 %v5533_v48, %v1322_v62  ;;  %v8287_v62 = vld [vmem:[#allocation38_spill] sm:$0xff] }
 0x121   :  { %3634 = vmatprep.subr.bf16.mxu1 %v8277_v28  ;;  %3675 = vmatprep.subr.bf16.mxu0 %v8280_v50  ;;  %v1324_v4 = vcvt.s32.f32 %v556_v25  ;;  %v553_v53 = vunpack.c.0.s8 %v5739_v31  ;;  %v1372_v1 = vcvt.s32.f32 %v604_v38  ;;  %v601_v35 = vunpack.c.1.s8 %v5739_v31  ;;  %v8284_v28 = vld [vmem:[#allocation37_spill] sm:$0xff]  ;;  %v8291_v38 = vld [vmem:[#allocation39_spill] sm:$0xff] }
 0x122   :  { %8281 = vst [vmem:[#allocation25_spill] sm:$0xff] %v5816_v36  ;;  %8282 = vst [vmem:[#allocation24_spill] sm:$0xff] %v5825_v26  ;;  %v5833_v58 = vmul.f32 %v5533_v48, %v1370_v55  ;;  %v8286_v50 = vpack.c.bf16 %v8284_v28, %v8285_v42  ;;  %v8288_v25 = vpack.c.bf16 %v5199_v60, %v8287_v62  ;;  %v555_v21 = vunpack.c.0.s8 %v219_v17  ;;  %v8290_v55 = vld [vmem:[#allocation40_spill] sm:$0xff]  ;;  %v8293_v31 = vld [vmem:[#allocation41_spill] sm:$0xff] }
 0x123   :  { %v5843_v39 = vmul.f32 %v5545_v24, %v1324_v4  ;;  %v1321_v16 = vcvt.s32.f32 %v553_v53  ;;  %v603_v52 = vunpack.c.1.s8 %v219_v17  ;;  %v8292_v9 = vpack.c.bf16 %v8290_v55, %v8291_v38  ;;  %v8298_v38 = vld [vmem:[#allocation42_spill] sm:$0xff]  ;;  %v8323_v36 = vld [vmem:[#allocation56_spill] sm:$0xff] }
 0x124   :  { %8283 = vst [vmem:[#allocation27_spill] sm:$0xff] %v5833_v58  ;;  %3635 = vmatpush1.bf16.msra.mxu1 %v8286_v50  ;;  %3676 = vmatpush1.bf16.msra.mxu0 %v8288_v25  ;;  %v8294_v28 = vpack.c.bf16 %v5215_v18, %v8293_v31  ;;  %v5856_v42 = vmul.f32 %v5545_v24, %v1372_v1  ;;  %v1369_v4 = vcvt.s32.f32 %v601_v35  ;;  %v458_v53 = vunpack.c.2.s8 %v5828_v46  ;;  %v5863_v25 = vld [vmem:[#allocation7 + $0x60] sm:$0xff] }
 0x125   :  { %8289 = vst [vmem:[#allocation26_spill] sm:$0xff] %v5843_v39  ;;  %3636 = vmatprep.subr.bf16.mxu1 %v8292_v9  ;;  %v5860_v17 = vmul.f32 %v5557_v20, %v1321_v16  ;;  %v1323_v50 = vcvt.s32.f32 %v555_v21  ;;  %v1371_v62 = vcvt.s32.f32 %v603_v52  ;;  %v506_v9 = vunpack.c.3.s8 %v5828_v46  ;;  %v8300_v16 = vld [vmem:[#allocation44_spill] sm:$0xff]  ;;  %v8301_v21 = vld [vmem:[#allocation43_spill] sm:$0xff]  ;;  %v8305_v39 = vld [vmem:[#allocation46_spill] sm:$0xff] }
 0x126   :  { %3677 = vmatprep.subr.bf16.mxu0 %v8294_v28  ;;  %8295 = vst [vmem:[#allocation29_spill] sm:$0xff] %v5856_v42  ;;  %v5868_v55 = vmul.f32 %v5557_v20, %v1369_v4  ;;  %v1226_v1 = vcvt.s32.f32 %v458_v53  ;;  %v460_v35 = vunpack.c.2.s8 %v5845_v59  ;;  %v8299_v31 = vpack.c.bf16 %v5223_v14, %v8298_v38  ;;  %v5884_v53 = vld [vmem:[#allocation7 + $0x70] sm:$0xff]  ;;  %v8306_v42 = vld [vmem:[#allocation45_spill] sm:$0xff]  ;;  %v8308_v14 = vld [vmem:[#allocation48_spill] sm:$0xff] }
 0x127   :  { %8296 = vst [vmem:[#allocation28_spill] sm:$0xff] %v5860_v17  ;;  %v8302_v52 = vpack.c.bf16 %v8300_v16, %v8301_v21  ;;  %v5878_v28 = vmul.f32 %v5569_v19, %v1323_v50  ;;  %v5881_v60 = vmul.f32 %v5569_v19, %v1371_v62  ;;  %v1274_v18 = vcvt.s32.f32 %v506_v9  ;;  %v8309_v38 = vld [vmem:[#allocation47_spill] sm:$0xff]  ;;  %v8316_v17 = vld [vmem:[#allocation52_spill] sm:$0xff] }
 0x128   :  { %8297 = vst [vmem:[#allocation31_spill] sm:$0xff] %v5868_v55  ;;  %3637 = vmatpush1.bf16.msra.mxu1 %v8299_v31  ;;  %v508_v4 = vunpack.c.3.s8 %v5845_v59  ;;  %v8307_v26 = vpack.c.bf16 %v8305_v39, %v8306_v42  ;;  %v8310_v31 = vpack.c.bf16 %v8308_v14, %v8309_v38  ;;  %v5895_v16 = vmul.f32 %v5533_v48, %v1226_v1  ;;  %v8317_v21 = vld [vmem:[#allocation51_spill] sm:$0xff]  ;;  %v8321_v55 = vld [vmem:[#allocation53_spill] sm:$0xff] }
 0x129   :  { %3678 = vmatpush1.bf16.msra.mxu0 %v8302_v52  ;;  %8303 = vst [vmem:[#allocation30_spill] sm:$0xff] %v5878_v28  ;;  %8304 = vst [vmem:[#allocation33_spill] sm:$0xff] %v5881_v60  ;;  %v1228_v62 = vcvt.s32.f32 %v460_v35  ;;  %v457_v9 = vunpack.c.2.s8 %v5863_v25  ;;  %v5901_v52 = vmul.f32 %v5533_v48, %v1274_v18  ;;  %v459_v38 = vunpack.c.2.s8 %v5884_v53  ;;  %v8313_v35 = vld [vmem:[#allocation50_spill] sm:$0xff] }
 0x12a   :  { %3638 = vmatprep.subr.bf16.mxu1 %v8307_v26  ;;  %3679 = vmatprep.subr.bf16.mxu0 %v8310_v31  ;;  %8311 = vst [vmem:[#allocation32_spill] sm:$0xff] %v5895_v16  ;;  %v1276_v39 = vcvt.s32.f32 %v508_v4  ;;  %v505_v26 = vunpack.c.3.s8 %v5863_v25  ;;  %v507_v1 = vunpack.c.3.s8 %v5884_v53  ;;  %v8314_v31 = vld [vmem:[#allocation49_spill] sm:$0xff]  ;;  %v8318_v28 = vpack.c.bf16 %v8316_v17, %v8317_v21  ;;  %v8320_v60 = vld [vmem:[#allocation54_spill] sm:$0xff]  ;;  %v8393_v16 = vld [vmem:[#allocation87_spill] sm:$0xff] }
 0x12b   :  { %v5905_v42 = vmul.f32 %v5545_v24, %v1228_v62  ;;  %v1225_v14 = vcvt.s32.f32 %v457_v9  ;;  %v8315_v50 = vpack.c.bf16 %v8313_v35, %v8314_v31  ;;  %v362_v9 = vunpack.c.0.s8 %v5828_v46  ;;  %v8324_v35 = vld [vmem:[#allocation55_spill] sm:$0xff] }
 0x12c   :  { %v5918_v4 = vmul.f32 %v5545_v24, %v1276_v39  ;;  %v1273_v62 = vcvt.s32.f32 %v505_v26  ;;  %v8322_v58 = vpack.c.bf16 %v8320_v60, %v8321_v55  ;;  %v1275_v21 = vcvt.s32.f32 %v507_v1 }
 0x12d   :  { %8312 = vst [vmem:[#allocation35_spill] sm:$0xff] %v5905_v42  ;;  %3639 = vmatpush1.bf16.msra.mxu1 %v8315_v50  ;;  %3680 = vmatpush1.bf16.msra.mxu0 %v8318_v28  ;;  %v8325_v50 = vpack.c.bf16 %v8323_v36, %v8324_v35  ;;  %v5928_v17 = vmul.f32 %v5557_v20, %v1225_v14  ;;  %v1227_v28 = vcvt.s32.f32 %v459_v38  ;;  %v410_v31 = vunpack.c.1.s8 %v5828_v46  ;;  %v8330_v14 = vld [vmem:[#allocation58_spill] sm:$0xff]  ;;  %v8331_v38 = vld [vmem:[#allocation57_spill] sm:$0xff] }
 0x12e   :  { %8319 = vst [vmem:[#allocation34_spill] sm:$0xff] %v5918_v4  ;;  %3706 = vmatprep.subr.bf16.mxu1 %v8322_v58  ;;  %v5934_v26 = vmul.f32 %v5557_v20, %v1273_v62  ;;  %v1130_v18 = vcvt.s32.f32 %v362_v9  ;;  %v364_v58 = vunpack.c.0.s8 %v5845_v59  ;;  %v5943_v60 = vmul.f32 %v5569_v19, %v1275_v21  ;;  %v8333_v62 = vld [vmem:[#allocation60_spill] sm:$0xff]  ;;  %v8334_v9 = vld [vmem:[#allocation59_spill] sm:$0xff]  ;;  %v8338_v42 = vld [vmem:[#allocation61_spill] sm:$0xff] }
 0x12f   :  { %3747 = vmatprep.subr.bf16.mxu0 %v8325_v50  ;;  %8326 = vst [vmem:[#allocation37_spill] sm:$0xff] %v5928_v17  ;;  %v5940_v36 = vmul.f32 %v5569_v19, %v1227_v28  ;;  %v1178_v46 = vcvt.s32.f32 %v410_v31  ;;  %v412_v55 = vunpack.c.1.s8 %v5845_v59  ;;  %v8332_v1 = vpack.c.bf16 %v8330_v14, %v8331_v38  ;;  %v5958_v31 = vld [vmem:[#allocation7 + $0x508] sm:$0xff]  ;;  %v8337_v59 = vld [vmem:[#allocation62_spill] sm:$0xff]  ;;  %v8340_v14 = vld [vmem:[#allocation64_spill] sm:$0xff] }
 0x130   :  { %8327 = vst [vmem:[#allocation36_spill] sm:$0xff] %v5934_v26  ;;  %3657 = vmatmul.mubr.bf16.vlgmr.msra.gmra.mxu1 %v5634_v40  ;;  %3698 = vmatmul.mubr.bf16.vlgmr.msra.gmra.mxu0 %v5634_v40  ;;  %8329 = vst [vmem:[#allocation40_spill] sm:$0xff] %v5943_v60  ;;  %v8335_v35 = vpack.c.bf16 %v8333_v62, %v8334_v9  ;;  %v5955_v28 = vmul.f32 %v5533_v48, %v1130_v18  ;;  %v1132_v39 = vcvt.s32.f32 %v364_v58  ;;  %v8341_v38 = vld [vmem:[#allocation63_spill] sm:$0xff]  ;;  %v8350_v62 = vld [vmem:[#allocation68_spill] sm:$0xff] }
 0x131   :  { %8328 = vst [vmem:[#allocation38_spill] sm:$0xff] %v5940_v36  ;;  %3707 = vmatpush1.bf16.msra.mxu1 %v8332_v1  ;;  %v361_v21 = vunpack.c.0.s8 %v5863_v25  ;;  %v8339_v4 = vpack.c.bf16 %v8337_v59, %v8338_v42  ;;  %v8342_v1 = vpack.c.bf16 %v8340_v14, %v8341_v38  ;;  %v5969_v9 = vmul.f32 %v5533_v48, %v1178_v46  ;;  %v5979_v14 = vld [vmem:[#allocation8 + $0x10] sm:$0xff]  ;;  %v5987_v38 = vld [vmem:[#allocation7 + $0x518] sm:$0xff]  ;;  %v8357_v60 = vld [vmem:[#allocation72_spill] sm:$0xff] }
 0x132   :  { %3748 = vmatpush1.bf16.msra.mxu0 %v8335_v35  ;;  %8336 = vst [vmem:[#allocation39_spill] sm:$0xff] %v5955_v28  ;;  %v1180_v18 = vcvt.s32.f32 %v412_v55  ;;  %v409_v58 = vunpack.c.1.s8 %v5863_v25  ;;  %3738 = vmatprep.mubr.bf16.mxu1 %v8252_v45  ;;  %v5975_v42 = vmul.f32 %v5545_v24, %v1132_v39  ;;  %v363_v35 = vunpack.c.0.s8 %v5884_v53  ;;  %8345 = vst [vmem:[#allocation44_spill] sm:$0xff] %v5979_v14  ;;  %v8347_v39 = vld [vmem:[#allocation66_spill] sm:$0xff]  ;;  %v8351_v50 = vld [vmem:[#allocation67_spill] sm:$0xff] }
 0x133   :  { %3708 = vmatprep.subr.bf16.mxu1 %v8339_v4  ;;  %3749 = vmatprep.subr.bf16.mxu0 %v8342_v1  ;;  %8343 = vst [vmem:[#allocation41_spill] sm:$0xff] %v5969_v9  ;;  %v1129_v4 = vcvt.s32.f32 %v361_v21  ;;  %v411_v59 = vunpack.c.1.s8 %v5884_v53  ;;  %v1038_v55 = vunpack.c.2.s8 %v5958_v31  ;;  %v8348_v1 = vld [vmem:[#allocation65_spill] sm:$0xff]  ;;  %v8352_v53 = vpack.c.bf16 %v8350_v62, %v8351_v50  ;;  %v8358_v17 = vld [vmem:[#allocation71_spill] sm:$0xff] }
 0x134   :  { %3779 = vmatprep.mubr.bf16.mxu0 %v8252_v45  ;;  %8344 = vst [vmem:[#allocation42_spill] sm:$0xff] %v5975_v42  ;;  %v5984_v46 = vmul.f32 %v5545_v24, %v1180_v18  ;;  %v1177_v25 = vcvt.s32.f32 %v409_v58  ;;  %v8349_v21 = vpack.c.bf16 %v8347_v39, %v8348_v1  ;;  %v1131_v48 = vcvt.s32.f32 %v363_v35  ;;  %v8354_v18 = vld [vmem:[#allocation70_spill] sm:$0xff]  ;;  %v8355_v58 = vld [vmem:[#allocation69_spill] sm:$0xff]  ;;  %v8376_v42 = vld [vmem:[#allocation80_spill] sm:$0xff] }
 0x135   :  { %v5996_v36 = vmul.f32 %v5557_v20, %v1129_v4  ;;  %v1179_v28 = vcvt.s32.f32 %v411_v59  ;;  %v1086_v24 = vunpack.c.3.s8 %v5958_v31  ;;  %v8356_v9 = vpack.c.bf16 %v8354_v18, %v8355_v58  ;;  %v8361_v4 = vld [vmem:[#allocation16_spill] sm:$0xff]  ;;  %v8370_v18 = vld [vmem:[#allocation75_spill] sm:$0xff] }
 0x136   :  { %8346 = vst [vmem:[#allocation43_spill] sm:$0xff] %v5984_v46  ;;  %3709 = vmatpush1.bf16.msra.mxu1 %v8349_v21  ;;  %3750 = vmatpush1.bf16.msra.mxu0 %v8352_v53  ;;  %v8359_v26 = vpack.c.bf16 %v8357_v60, %v8358_v17  ;;  %v6008_v50 = vmul.f32 %v5557_v20, %v1177_v25  ;;  %v1806_v62 = vcvt.s32.f32 %v1038_v55  ;;  %v317_v59 = vld [vmem:[#allocation7 + $0x500] sm:$0xff]  ;;  %v6021_v60 = vld [vmem:[#allocation7 + $0x510] sm:$0xff]  ;;  %v1088_v55 = vunpack.c.3.s8 %v5987_v38  ;;  %v8365_v21 = vld [vmem:[#allocation17_spill] sm:$0xff] }
 0x137   :  { %8353 = vst [vmem:[#allocation46_spill] sm:$0xff] %v5996_v36  ;;  %3710 = vmatprep.subr.bf16.mxu1 %v8356_v9  ;;  %v6012_v35 = vrot.slane %v5979_v14, %v8361_v4  ;;  %v6015_v1 = vmul.f32 %v5569_v19, %v1131_v48  ;;  %v6018_v9 = vmul.f32 %v5569_v19, %v1179_v28  ;;  %v1854_v17 = vcvt.s32.f32 %v1086_v24  ;;  %v8366_v53 = vld [vmem:[#allocation74_spill] sm:$0xff]  ;;  %v8367_v19 = vld [vmem:[#allocation73_spill] sm:$0xff]  ;;  %v8369_v24 = vld [vmem:[#allocation76_spill] sm:$0xff] }
 0x138   :  { %3751 = vmatprep.subr.bf16.mxu0 %v8359_v26  ;;  %8360 = vst [vmem:[#allocation45_spill] sm:$0xff] %v6008_v50  ;;  %v1040_v26 = vunpack.c.2.s8 %v5987_v38  ;;  %v6031_v48 = vrot.slane %v5979_v14, %v8365_v21  ;;  %v8368_v28 = vpack.c.bf16 %v8366_v53, %v8367_v19  ;;  %v8371_v58 = vpack.c.bf16 %v8369_v24, %v8370_v18  ;;  %v8373_v36 = vld [vmem:[#allocation78_spill] sm:$0xff]  ;;  %v8374_v50 = vld [vmem:[#allocation77_spill] sm:$0xff]  ;;  %v8377_v46 = vld [vmem:[#allocation79_spill] sm:$0xff] }
 0x139   :  { %8362 = vst [vmem:[#allocation48_spill] sm:$0xff] %v6015_v1  ;;  %8363 = vst [vmem:[#allocation47_spill] sm:$0xff] %v6018_v9  ;;  %v6026_v25 = vmul.f32 %v6012_v35, %v1806_v62  ;;  %v6042_v62 = vmul.f32 %v6012_v35, %v1854_v17  ;;  %v1037_v4 = vunpack.c.2.s8 %v317_v59  ;;  %v8375_v21 = vpack.c.bf16 %v8373_v36, %v8374_v50  ;;  %v8379_v24 = vld [vmem:[#allocation18_spill] sm:$0xff]  ;;  %v8385_v17 = vld [vmem:[#allocation84_spill] sm:$0xff] }
 0x13a   :  { %3711 = vmatpush1.bf16.msra.mxu1 %v8368_v28  ;;  %3752 = vmatpush1.bf16.msra.mxu0 %v8371_v58  ;;  %v1808_v39 = vcvt.s32.f32 %v1040_v26  ;;  %v8378_v53 = vpack.c.bf16 %v8376_v42, %v8377_v46  ;;  %v1856_v19 = vcvt.s32.f32 %v1088_v55  ;;  %v1085_v28 = vunpack.c.3.s8 %v317_v59  ;;  %v8382_v20 = vld [vmem:[#allocation82_spill] sm:$0xff]  ;;  %v8390_v9 = vld [vmem:[#allocation85_spill] sm:$0xff] }
 0x13b   :  { %8364 = vst [vmem:[#allocation50_spill] sm:$0xff] %v6026_v25  ;;  %8372 = vst [vmem:[#allocation49_spill] sm:$0xff] %v6042_v62  ;;  %3712 = vmatprep.subr.bf16.mxu1 %v8375_v21  ;;  %v6052_v18 = vrot.slane %v5979_v14, %v8379_v24  ;;  %v1039_v58 = vunpack.c.2.s8 %v6021_v60  ;;  %v1805_v36 = vcvt.s32.f32 %v1037_v4  ;;  %v1087_v50 = vunpack.c.3.s8 %v6021_v60  ;;  %v8381_v21 = vld [vmem:[#allocation19_spill] sm:$0xff]  ;;  %v8383_v24 = vld [vmem:[#allocation81_spill] sm:$0xff] }
 0x13c   :  { %3753 = vmatprep.subr.bf16.mxu0 %v8378_v53  ;;  %v6058_v26 = vmul.f32 %v6031_v48, %v1808_v39  ;;  %v6062_v42 = vmul.f32 %v6031_v48, %v1856_v19  ;;  %v1853_v46 = vcvt.s32.f32 %v1085_v28  ;;  %v6066_v53 = vrot.slane %v5979_v14, %v8381_v21  ;;  %v8386_v25 = vld [vmem:[#allocation83_spill] sm:$0xff]  ;;  %v8392_v14 = vld [vmem:[#allocation88_spill] sm:$0xff] }
 0x13d   :  { %v1807_v55 = vcvt.s32.f32 %v1039_v58  ;;  %v8384_v1 = vpack.c.bf16 %v8382_v20, %v8383_v24  ;;  %v8387_v39 = vpack.c.bf16 %v8385_v17, %v8386_v25  ;;  %v6075_v4 = vmul.f32 %v6052_v18, %v1805_v36  ;;  %v8389_v58 = vld [vmem:[#allocation86_spill] sm:$0xff] }
 0x13e   :  { %8380 = vst [vmem:[#allocation52_spill] sm:$0xff] %v6058_v26  ;;  %v1855_v62 = vcvt.s32.f32 %v1087_v50  ;;  %v942_v19 = vunpack.c.0.s8 %v5958_v31  ;;  %v990_v28 = vunpack.c.1.s8 %v5958_v31  ;;  %v8391_v21 = vpack.c.bf16 %v8389_v58, %v8390_v9  ;;  %v8398_v58 = vld [vmem:[#allocation90_spill] sm:$0xff]  ;;  %v8402_v26 = vld [vmem:[#allocation91_spill] sm:$0xff] }
 0x13f   :  { %3713 = vmatpush1.bf16.msra.mxu1 %v8384_v1  ;;  %3754 = vmatpush1.bf16.msra.mxu0 %v8387_v39  ;;  %8388 = vst [vmem:[#allocation51_spill] sm:$0xff] %v6075_v4  ;;  %v8394_v20 = vpack.c.bf16 %v8392_v14, %v8393_v16  ;;  %v6088_v25 = vmul.f32 %v6052_v18, %v1853_v46  ;;  %v944_v17 = vunpack.c.0.s8 %v5987_v38  ;;  %v992_v50 = vunpack.c.1.s8 %v5987_v38  ;;  %v6100_v46 = vld [vmem:[#allocation7 + $0x388] sm:$0xff]  ;;  %v8401_v1 = vld [vmem:[#allocation92_spill] sm:$0xff] }
 0x140   :  { %3714 = vmatprep.subr.bf16.mxu1 %v8391_v21  ;;  %v6091_v24 = vmul.f32 %v6066_v53, %v1807_v55  ;;  %v6095_v31 = vmul.f32 %v6066_v53, %v1855_v62  ;;  %v1710_v9 = vcvt.s32.f32 %v942_v19  ;;  %v1758_v36 = vcvt.s32.f32 %v990_v28  ;;  %v8399_v55 = vld [vmem:[#allocation89_spill] sm:$0xff]  ;;  %v6126_v19 = vld [vmem:[#allocation7 + $0x398] sm:$0xff] }
 0x141   :  { %3755 = vmatprep.subr.bf16.mxu0 %v8394_v20  ;;  %8395 = vst [vmem:[#allocation54_spill] sm:$0xff] %v6088_v25  ;;  %v1712_v14 = vcvt.s32.f32 %v944_v17  ;;  %v941_v21 = vunpack.c.0.s8 %v317_v59  ;;  %v989_v39 = vunpack.c.1.s8 %v317_v59  ;;  %v8400_v20 = vpack.c.bf16 %v8398_v58, %v8399_v55  ;;  %v8406_v17 = vld [vmem:[#allocation94_spill] sm:$0xff]  ;;  %v8407_v16 = vld [vmem:[#allocation93_spill] sm:$0xff]  ;;  %v8409_v58 = vld [vmem:[#allocation96_spill] sm:$0xff] }
 0x142   :  { %8396 = vst [vmem:[#allocation53_spill] sm:$0xff] %v6091_v24  ;;  %8397 = vst [vmem:[#allocation56_spill] sm:$0xff] %v6095_v31  ;;  %v8403_v62 = vpack.c.bf16 %v8401_v1, %v8402_v26  ;;  %v6111_v38 = vmul.f32 %v6012_v35, %v1710_v9  ;;  %v6114_v28 = vmul.f32 %v6012_v35, %v1758_v36  ;;  %v1760_v59 = vcvt.s32.f32 %v992_v50  ;;  %v8410_v55 = vld [vmem:[#allocation95_spill] sm:$0xff]  ;;  %v8418_v24 = vld [vmem:[#allocation101_spill] sm:$0xff] }
 0x143   :  { %3715 = vmatpush1.bf16.msra.mxu1 %v8400_v20  ;;  %v8408_v4 = vpack.c.bf16 %v8406_v17, %v8407_v16  ;;  %v8411_v20 = vpack.c.bf16 %v8409_v58, %v8410_v55  ;;  %v6123_v26 = vmul.f32 %v6031_v48, %v1712_v14  ;;  %v1709_v1 = vcvt.s32.f32 %v941_v21  ;;  %v6142_v58 = vld [vmem:[#allocation7 + $0x380] sm:$0xff]  ;;  %v8413_v55 = vld [vmem:[#allocation98_spill] sm:$0xff] }
 0x144   :  { %3756 = vmatpush1.bf16.msra.mxu0 %v8403_v62  ;;  %8404 = vst [vmem:[#allocation55_spill] sm:$0xff] %v6111_v38  ;;  %8405 = vst [vmem:[#allocation58_spill] sm:$0xff] %v6114_v28  ;;  %v1757_v62 = vcvt.s32.f32 %v989_v39  ;;  %v943_v9 = vunpack.c.0.s8 %v6021_v60  ;;  %v6131_v50 = vmul.f32 %v6031_v48, %v1760_v59  ;;  %v846_v16 = vunpack.c.2.s8 %v6100_v46  ;;  %v8416_v59 = vld [vmem:[#allocation99_spill] sm:$0xff]  ;;  %v8419_v31 = vld [vmem:[#allocation100_spill] sm:$0xff] }
 0x145   :  { %3716 = vmatprep.subr.bf16.mxu1 %v8408_v4  ;;  %3757 = vmatprep.subr.bf16.mxu0 %v8411_v20  ;;  %v991_v4 = vunpack.c.1.s8 %v6021_v60  ;;  %v6136_v17 = vmul.f32 %v6052_v18, %v1709_v1  ;;  %v894_v39 = vunpack.c.3.s8 %v6100_v46  ;;  %v8414_v20 = vld [vmem:[#allocation97_spill] sm:$0xff]  ;;  %v8417_v60 = vpack.c.bf16 %v5473_v2, %v8416_v59 }
 0x146   :  { %v6139_v14 = vmul.f32 %v6052_v18, %v1757_v62  ;;  %v1711_v21 = vcvt.s32.f32 %v943_v9  ;;  %v8415_v36 = vpack.c.bf16 %v8413_v55, %v8414_v20  ;;  %v1614_v28 = vcvt.s32.f32 %v846_v16  ;;  %v6153_v9 = vld [vmem:[#allocation7 + $0x390] sm:$0xff] }
 0x147   :  { %8412 = vst [vmem:[#allocation57_spill] sm:$0xff] %v6136_v17  ;;  %v1759_v38 = vcvt.s32.f32 %v991_v4  ;;  %v848_v62 = vunpack.c.2.s8 %v6126_v19  ;;  %v8420_v25 = vpack.c.bf16 %v8418_v24, %v8419_v31  ;;  %v8421_v55 = vld [vmem:[#allocation102_spill] sm:$0xff]  ;;  %v1662_v4 = vcvt.s32.f32 %v894_v39  ;;  %v8426_v39 = vld [vmem:[#allocation103_spill] sm:$0xff] }
 0x148   :  { %3717 = vmatpush1.bf16.msra.mxu1 %v8415_v36  ;;  %3758 = vmatpush1.bf16.msra.mxu0 %v8417_v60  ;;  %v8422_v36 = vpack.c.bf16 %v5489_v7, %v8421_v55  ;;  %v6164_v20 = vmul.f32 %v6066_v53, %v1711_v21  ;;  %v896_v16 = vunpack.c.3.s8 %v6126_v19  ;;  %v6171_v60 = vmul.f32 %v6012_v35, %v1614_v28  ;;  %v8432_v17 = vld [vmem:[#allocation106_spill] sm:$0xff] }
 0x149   :  { %3718 = vmatprep.subr.bf16.mxu1 %v8420_v25  ;;  %v6168_v59 = vmul.f32 %v6066_v53, %v1759_v38  ;;  %v1616_v25 = vcvt.s32.f32 %v848_v62  ;;  %v845_v24 = vunpack.c.2.s8 %v6142_v58  ;;  %v6175_v7 = vmul.f32 %v6012_v35, %v1662_v4  ;;  %v8428_v38 = vld [vmem:[#allocation104_spill] sm:$0xff] }
 0x14a   :  { %3759 = vmatprep.subr.bf16.mxu0 %v8422_v36  ;;  %8423 = vst [vmem:[#allocation60_spill] sm:$0xff] %v6164_v20  ;;  %8424 = vst [vmem:[#allocation59_spill] sm:$0xff] %v6171_v60  ;;  %v1664_v31 = vcvt.s32.f32 %v896_v16  ;;  %v893_v55 = vunpack.c.3.s8 %v6142_v58  ;;  %v847_v21 = vunpack.c.2.s8 %v6153_v9  ;;  %v8427_v36 = vpack.c.bf16 %v5497_v12, %v8426_v39  ;;  %v8433_v12 = vld [vmem:[#allocation105_spill] sm:$0xff]  ;;  %v8445_v60 = vld [vmem:[#allocation114_spill] sm:$0xff] }
 0x14b   :  { %8425 = vst [vmem:[#allocation62_spill] sm:$0xff] %v6175_v7  ;;  %v8429_v2 = vpack.c.bf16 %v5505_v15, %v8428_v38  ;;  %v6188_v62 = vmul.f32 %v6031_v48, %v1616_v25  ;;  %v1613_v4 = vcvt.s32.f32 %v845_v24  ;;  %v895_v16 = vunpack.c.3.s8 %v6153_v9  ;;  %v8446_v7 = vld [vmem:[#allocation113_spill] sm:$0xff] }
 0x14c   :  { %3719 = vmatpush1.bf16.msra.mxu1 %v8427_v36  ;;  %v8431_v1 = vpack.c.bf16 %v5511_v5, %v5508_v49  ;;  %v8434_v39 = vpack.c.bf16 %v8432_v17, %v8433_v12  ;;  %v1661_v36 = vcvt.s32.f32 %v893_v55  ;;  %v1615_v25 = vcvt.s32.f32 %v847_v21  ;;  %v8436_v55 = vld [vmem:[#allocation108_spill] sm:$0xff]  ;;  %v8437_v21 = vld [vmem:[#allocation107_spill] sm:$0xff]  ;;  %v8440_v12 = vld [vmem:[#allocation109_spill] sm:$0xff] }
 0x14d   :  { %3760 = vmatpush1.bf16.msra.mxu0 %v8429_v2  ;;  %8430 = vst [vmem:[#allocation61_spill] sm:$0xff] %v6188_v62  ;;  %v6200_v2 = vmul.f32 %v6031_v48, %v1664_v31  ;;  %v6203_v24 = vmul.f32 %v6052_v18, %v1613_v4  ;;  %v1663_v38 = vcvt.s32.f32 %v895_v16  ;;  %v750_v28 = vunpack.c.0.s8 %v6100_v46  ;;  %v8439_v16 = vld [vmem:[#allocation110_spill] sm:$0xff]  ;;  %v8442_v62 = vld [vmem:[#allocation112_spill] sm:$0xff] }
 0x14e   :  { %3720 = vmatprep.subr.bf16.mxu1 %v8431_v1  ;;  %3761 = vmatprep.subr.bf16.mxu0 %v8434_v39  ;;  %v798_v49 = vunpack.c.1.s8 %v6100_v46  ;;  %v6210_v17 = vmul.f32 %v6052_v18, %v1661_v36  ;;  %v6213_v1 = vmul.f32 %v6066_v53, %v1615_v25  ;;  %v752_v31 = vunpack.c.0.s8 %v6126_v19  ;;  %v8443_v25 = vld [vmem:[#allocation111_spill] sm:$0xff] }
 0x14f   :  { %8435 = vst [vmem:[#allocation64_spill] sm:$0xff] %v6200_v2  ;;  %v8438_v4 = vpack.c.bf16 %v8436_v55, %v8437_v21  ;;  %v8441_v39 = vpack.c.bf16 %v8439_v16, %v8440_v12  ;;  %v6223_v46 = vmul.f32 %v6066_v53, %v1663_v38  ;;  %v1518_v5 = vcvt.s32.f32 %v750_v28  ;;  %v6236_v28 = vld [vmem:[#allocation7 + $0x208] sm:$0xff]  ;;  %v8449_v16 = vld [vmem:[#allocation116_spill] sm:$0xff] }
 0x150   :  { %v1566_v15 = vcvt.s32.f32 %v798_v49  ;;  %v800_v36 = vunpack.c.1.s8 %v6126_v19  ;;  %v8444_v2 = vpack.c.bf16 %v8442_v62, %v8443_v25  ;;  %v8447_v20 = vpack.c.bf16 %v8445_v60, %v8446_v7 }
 0x151   :  { %3721 = vmatpush1.bf16.msra.mxu1 %v8438_v4  ;;  %3762 = vmatpush1.bf16.msra.mxu0 %v8441_v39  ;;  %v1520_v21 = vcvt.s32.f32 %v752_v31  ;;  %v749_v4 = vunpack.c.0.s8 %v6142_v58  ;;  %v797_v38 = vunpack.c.1.s8 %v6142_v58  ;;  %v6241_v62 = vmul.f32 %v6012_v35, %v1518_v5  ;;  %v6252_v31 = vld [vmem:[#allocation7 + $0x218] sm:$0xff] }
 0x152   :  { %3788 = vmatprep.subr.bf16.mxu1 %v8444_v2  ;;  %3829 = vmatprep.subr.bf16.mxu0 %v8447_v20  ;;  %v6244_v2 = vmul.f32 %v6012_v35, %v1566_v15  ;;  %v1568_v20 = vcvt.s32.f32 %v800_v36  ;;  %v751_v49 = vunpack.c.0.s8 %v6153_v9  ;;  %v8450_v5 = vld [vmem:[#allocation115_spill] sm:$0xff]  ;;  %v8452_v15 = vld [vmem:[#allocation117_spill] sm:$0xff] }
 0x153   :  { %v6249_v60 = vmul.f32 %v6031_v48, %v1520_v21  ;;  %v1517_v58 = vcvt.s32.f32 %v749_v4  ;;  %v1565_v7 = vcvt.s32.f32 %v797_v38  ;;  %v8451_v12 = vpack.c.bf16 %v8449_v16, %v8450_v5  ;;  %v8455_v38 = vld [vmem:[#allocation118_spill] sm:$0xff]  ;;  %v8457_v16 = vld [vmem:[#allocation120_spill] sm:$0xff]  ;;  %v8458_v5 = vld [vmem:[#allocation119_spill] sm:$0xff] }
 0x154   :  { %3739 = vmatmul.mubr.bf16.vlgmr.msra.gmra.mxu1 %v5634_v40  ;;  %3780 = vmatmul.mubr.bf16.vlgmr.msra.gmra.mxu0 %v5634_v40  ;;  %v8453_v39 = vpack.c.bf16 %v5585_v11, %v8452_v15  ;;  %v6263_v25 = vmul.f32 %v6031_v48, %v1568_v20  ;;  %v799_v21 = vunpack.c.1.s8 %v6153_v9  ;;  %v654_v4 = vunpack.c.2.s8 %v6236_v28  ;;  %v6280_v9 = vld [vmem:[#allocation7 + $0x200] sm:$0xff]  ;;  %v8460_v36 = vld [vmem:[#allocation121_spill] sm:$0xff] }
 0x155   :  { %8448 = vst [vmem:[#allocation63_spill] sm:$0xff] %v6249_v60  ;;  %3789 = vmatpush1.bf16.msra.mxu1 %v8451_v12  ;;  %v8456_v19 = vpack.c.bf16 %v5594_v54, %v8455_v38  ;;  %v8459_v12 = vpack.c.bf16 %v8457_v16, %v8458_v5  ;;  %v6274_v11 = vmul.f32 %v6052_v18, %v1517_v58  ;;  %v1519_v20 = vcvt.s32.f32 %v751_v49  ;;  %v6287_v16 = vld [vmem:[#allocation7 + $0x210] sm:$0xff]  ;;  %v8462_v54 = vld [vmem:[#allocation123_spill] sm:$0xff] }
 0x156   :  { %3830 = vmatpush1.bf16.msra.mxu0 %v8453_v39  ;;  %8454 = vst [vmem:[#allocation66_spill] sm:$0xff] %v6263_v25  ;;  %v6277_v15 = vmul.f32 %v6052_v18, %v1565_v7  ;;  %v702_v39 = vunpack.c.3.s8 %v6236_v28  ;;  %3820 = vmatprep.mubr.bf16.mxu1 %v8252_v45  ;;  %v1422_v38 = vcvt.s32.f32 %v654_v4  ;;  %v656_v58 = vunpack.c.2.s8 %v6252_v31 }
 0x157   :  { %3790 = vmatprep.subr.bf16.mxu1 %v8456_v19  ;;  %3831 = vmatprep.subr.bf16.mxu0 %v8459_v12  ;;  %v1567_v19 = vcvt.s32.f32 %v799_v21  ;;  %v6292_v49 = vmul.f32 %v6066_v53, %v1519_v20  ;;  %v704_v12 = vunpack.c.3.s8 %v6252_v31  ;;  %v8461_v55 = vpack.c.bf16 %v5617_v22, %v8460_v36  ;;  %v8463_v21 = vld [vmem:[#allocation122_spill] sm:$0xff] }
 0x158   :  { %3861 = vmatprep.mubr.bf16.mxu0 %v8252_v45  ;;  %v1470_v5 = vcvt.s32.f32 %v702_v39  ;;  %v8464_v4 = vpack.c.bf16 %v8462_v54, %v8463_v21  ;;  %v6305_v25 = vmul.f32 %v6012_v35, %v1422_v38  ;;  %v1424_v7 = vcvt.s32.f32 %v656_v58 }
 0x159   :  { %3791 = vmatpush1.bf16.msra.mxu1 %v8461_v55  ;;  %v6302_v60 = vmul.f32 %v6066_v53, %v1567_v19  ;;  %v653_v20 = vunpack.c.2.s8 %v6280_v9  ;;  %v8465_v39 = vpack.c.bf16 %v5643_v47, %v5637_v3  ;;  %v8466_v22 = vpack.c.bf16 %v5662_v57, %v5649_v33  ;;  %v8504_v57 = vld [vmem:[#allocation41_spill] sm:$0xff] }
 0x15a   :  { %3832 = vmatpush1.bf16.msra.mxu0 %v8464_v4  ;;  %v6315_v55 = vmul.f32 %v6012_v35, %v1470_v5  ;;  %v1472_v36 = vcvt.s32.f32 %v704_v12  ;;  %v701_v54 = vunpack.c.3.s8 %v6280_v9  ;;  %v655_v19 = vunpack.c.2.s8 %v6287_v16 }
 0x15b   :  { %3792 = vmatprep.subr.bf16.mxu1 %v8465_v39  ;;  %3833 = vmatprep.subr.bf16.mxu0 %v8466_v22  ;;  %v6322_v58 = vmul.f32 %v6031_v48, %v1424_v7  ;;  %v1421_v3 = vcvt.s32.f32 %v653_v20  ;;  %v703_v47 = vunpack.c.3.s8 %v6287_v16  ;;  %v8467_v21 = vpack.c.bf16 %v5680_v30, %v5672_v13  ;;  %v8494_v30 = vld [vmem:[#allocation34_spill] sm:$0xff] }
 0x15c   :  { %v6328_v33 = vmul.f32 %v6031_v48, %v1472_v36  ;;  %v1469_v5 = vcvt.s32.f32 %v701_v54  ;;  %v1423_v12 = vcvt.s32.f32 %v655_v19  ;;  %v8468_v4 = vpack.c.bf16 %v5687_v0, %v5684_v37 }
 0x15d   :  { %3793 = vmatpush1.bf16.msra.mxu1 %v8467_v21  ;;  %v6337_v7 = vmul.f32 %v6052_v18, %v1421_v3  ;;  %v1471_v20 = vcvt.s32.f32 %v703_v47  ;;  %v558_v39 = vunpack.c.0.s8 %v6236_v28  ;;  %v606_v22 = vunpack.c.1.s8 %v6236_v28 }
 0x15e   :  { %3834 = vmatpush1.bf16.msra.mxu0 %v8468_v4  ;;  %v8469_v36 = vpack.c.bf16 %v5713_v51, %v5699_v56  ;;  %v8470_v13 = vpack.c.bf16 %v5726_v23, %v5717_v6  ;;  %v6350_v37 = vmul.f32 %v6052_v18, %v1469_v5  ;;  %v6353_v0 = vmul.f32 %v6066_v53, %v1423_v12  ;;  %v6364_v5 = vld [vmem:[#allocation7 + $0x88] sm:$0xff] }
 0x15f   :  { %v560_v54 = vunpack.c.0.s8 %v6252_v31  ;;  %v6357_v28 = vmul.f32 %v6066_v53, %v1471_v20  ;;  %v1326_v56 = vcvt.s32.f32 %v558_v39  ;;  %v1374_v51 = vcvt.s32.f32 %v606_v22 }
 0x160   :  { %3794 = vmatprep.subr.bf16.mxu1 %v8469_v36  ;;  %3835 = vmatprep.subr.bf16.mxu0 %v8470_v13  ;;  %v608_v19 = vunpack.c.1.s8 %v6252_v31  ;;  %v557_v3 = vunpack.c.0.s8 %v6280_v9  ;;  %v605_v47 = vunpack.c.1.s8 %v6280_v9  ;;  %v8471_v12 = vpack.c.bf16 %v5750_v41, %v5736_v43  ;;  %v6390_v36 = vld [vmem:[#allocation7 + $0x98] sm:$0xff]  ;;  %v8489_v13 = vld [vmem:[#allocation30_spill] sm:$0xff]  ;;  %v8492_v31 = vld [vmem:[#allocation32_spill] sm:$0xff] }
 0x161   :  { %v1328_v23 = vcvt.s32.f32 %v560_v54  ;;  %v8472_v21 = vpack.c.bf16 %v5757_v34, %v5754_v29  ;;  %v6375_v4 = vmul.f32 %v6012_v35, %v1326_v56  ;;  %v6378_v20 = vmul.f32 %v6012_v35, %v1374_v51 }
 0x162   :  { %3795 = vmatpush1.bf16.msra.mxu1 %v8471_v12  ;;  %v1376_v9 = vcvt.s32.f32 %v608_v19  ;;  %v8473_v39 = vpack.c.bf16 %v5775_v44, %v5763_v63  ;;  %v8474_v43 = vpack.c.bf16 %v5790_v61, %v5785_v27  ;;  %v1325_v29 = vcvt.s32.f32 %v557_v3  ;;  %v173_v19 = vld [vmem:[#allocation7 + $0x80] sm:$0xff]  ;;  %v8476_v3 = vld [vmem:[#allocation25_spill] sm:$0xff] }
 0x163   :  { %3836 = vmatpush1.bf16.msra.mxu0 %v8472_v21  ;;  %v6387_v41 = vmul.f32 %v6031_v48, %v1328_v23  ;;  %v1373_v34 = vcvt.s32.f32 %v605_v47  ;;  %v559_v22 = vunpack.c.0.s8 %v6287_v16  ;;  %v607_v63 = vunpack.c.1.s8 %v6287_v16  ;;  %v8488_v16 = vld [vmem:[#allocation33_spill] sm:$0xff] }
 0x164   :  { %3796 = vmatprep.subr.bf16.mxu1 %v8473_v39  ;;  %3837 = vmatprep.subr.bf16.mxu0 %v8474_v43  ;;  %v6395_v54 = vmul.f32 %v6031_v48, %v1376_v9  ;;  %v462_v44 = vunpack.c.2.s8 %v6364_v5  ;;  %v6400_v27 = vmul.f32 %v6052_v18, %v1325_v29  ;;  %v510_v51 = vunpack.c.3.s8 %v6364_v5  ;;  %v6415_v39 = vld [vmem:[#allocation7 + $0x90] sm:$0xff]  ;;  %v8478_v43 = vld [vmem:[#allocation27_spill] sm:$0xff]  ;;  %v8479_v29 = vld [vmem:[#allocation24_spill] sm:$0xff] }
 0x165   :  { %v6403_v61 = vmul.f32 %v6052_v18, %v1373_v34  ;;  %v1327_v56 = vcvt.s32.f32 %v559_v22  ;;  %v8475_v23 = vpack.c.bf16 %v5806_v8, %v5794_v10  ;;  %v8477_v47 = vpack.c.bf16 %v5819_v32, %v8476_v3  ;;  %v8481_v22 = vld [vmem:[#allocation29_spill] sm:$0xff]  ;;  %v8482_v10 = vld [vmem:[#allocation26_spill] sm:$0xff]  ;;  %v8486_v32 = vld [vmem:[#allocation28_spill] sm:$0xff] }
 0x166   :  { %v1375_v12 = vcvt.s32.f32 %v607_v63  ;;  %v1230_v21 = vcvt.s32.f32 %v462_v44  ;;  %v464_v9 = vunpack.c.2.s8 %v6390_v36  ;;  %v8480_v34 = vpack.c.bf16 %v8478_v43, %v8479_v29 }
 0x167   :  { %3797 = vmatpush1.bf16.msra.mxu1 %v8475_v23  ;;  %3838 = vmatpush1.bf16.msra.mxu0 %v8477_v47  ;;  %v8483_v8 = vpack.c.bf16 %v8481_v22, %v8482_v10  ;;  %v6426_v23 = vmul.f32 %v6066_v53, %v1327_v56  ;;  %v1278_v63 = vcvt.s32.f32 %v510_v51  ;;  %v512_v44 = vunpack.c.3.s8 %v6390_v36  ;;  %v8485_v56 = vld [vmem:[#allocation31_spill] sm:$0xff] }
 0x168   :  { %3798 = vmatprep.subr.bf16.mxu1 %v8480_v34  ;;  %v6430_v3 = vmul.f32 %v6066_v53, %v1375_v12  ;;  %v6433_v47 = vmul.f32 %v6012_v35, %v1230_v21  ;;  %v1232_v43 = vcvt.s32.f32 %v464_v9  ;;  %v461_v29 = vunpack.c.2.s8 %v173_v19 }
 0x169   :  { %3839 = vmatprep.subr.bf16.mxu0 %v8483_v8  ;;  %v6436_v34 = vmul.f32 %v6012_v35, %v1278_v63  ;;  %v1280_v22 = vcvt.s32.f32 %v512_v44  ;;  %v509_v10 = vunpack.c.3.s8 %v173_v19  ;;  %v463_v8 = vunpack.c.2.s8 %v6415_v39 }
 0x16a   :  { %8484 = vst [vmem:[#allocation65_spill] sm:$0xff] %v6433_v47  ;;  %v8487_v51 = vpack.c.bf16 %v8485_v56, %v8486_v32  ;;  %v8490_v12 = vpack.c.bf16 %v8488_v16, %v8489_v13  ;;  %v6448_v9 = vmul.f32 %v6031_v48, %v1232_v43  ;;  %v1229_v63 = vcvt.s32.f32 %v461_v29  ;;  %v8495_v32 = vld [vmem:[#allocation35_spill] sm:$0xff] }
 0x16b   :  { %v511_v44 = vunpack.c.3.s8 %v6415_v39  ;;  %v8493_v6 = vpack.c.bf16 %v5901_v52, %v8492_v31  ;;  %v8496_v56 = vpack.c.bf16 %v8494_v30, %v8495_v32  ;;  %v6460_v16 = vmul.f32 %v6031_v48, %v1280_v22  ;;  %v8502_v32 = vld [vmem:[#allocation38_spill] sm:$0xff] }
 0x16c   :  { %3799 = vmatpush1.bf16.msra.mxu1 %v8487_v51  ;;  %3840 = vmatpush1.bf16.msra.mxu0 %v8490_v12  ;;  %8491 = vst [vmem:[#allocation68_spill] sm:$0xff] %v6448_v9  ;;  %v1277_v51 = vcvt.s32.f32 %v509_v10  ;;  %v1231_v43 = vcvt.s32.f32 %v463_v8  ;;  %v6463_v29 = vmul.f32 %v6052_v18, %v1229_v63  ;;  %v366_v21 = vunpack.c.0.s8 %v6364_v5  ;;  %v8498_v10 = vld [vmem:[#allocation36_spill] sm:$0xff]  ;;  %v8499_v8 = vld [vmem:[#allocation37_spill] sm:$0xff]  ;;  %v8507_v9 = vld [vmem:[#allocation43_spill] sm:$0xff] }
 0x16d   :  { %3800 = vmatprep.subr.bf16.mxu1 %v8493_v6  ;;  %3841 = vmatprep.subr.bf16.mxu0 %v8496_v56  ;;  %8497 = vst [vmem:[#allocation67_spill] sm:$0xff] %v6460_v16  ;;  %v1279_v12 = vcvt.s32.f32 %v511_v44  ;;  %v414_v52 = vunpack.c.1.s8 %v6364_v5  ;;  %v368_v22 = vunpack.c.0.s8 %v6390_v36  ;;  %v8500_v63 = vpack.c.bf16 %v8498_v10, %v8499_v8  ;;  %v8501_v44 = vld [vmem:[#allocation40_spill] sm:$0xff]  ;;  %v8508_v16 = vld [vmem:[#allocation42_spill] sm:$0xff]  ;;  %v8530_v10 = vld [vmem:[#allocation53_spill] sm:$0xff] }
 0x16e   :  { %v6470_v6 = vmul.f32 %v6052_v18, %v1277_v51  ;;  %v6473_v31 = vmul.f32 %v6066_v53, %v1231_v43  ;;  %v8503_v56 = vpack.c.bf16 %v8501_v44, %v8502_v32  ;;  %v1134_v30 = vcvt.s32.f32 %v366_v21  ;;  %v8505_v43 = vld [vmem:[#allocation39_spill] sm:$0xff] }
 0x16f   :  { %v6483_v5 = vmul.f32 %v6066_v53, %v1279_v12  ;;  %v1182_v13 = vcvt.s32.f32 %v414_v52  ;;  %v416_v51 = vunpack.c.1.s8 %v6390_v36  ;;  %v8506_v38 = vpack.c.bf16 %v8504_v57, %v8505_v43  ;;  %v6494_v12 = vld [vmem:[#allocation7 + $0x528] sm:$0xff]  ;;  %v8515_v43 = vld [vmem:[#allocation48_spill] sm:$0xff] }
 0x170   :  { %3801 = vmatpush1.bf16.msra.mxu1 %v8500_v63  ;;  %3842 = vmatpush1.bf16.msra.mxu0 %v8503_v56  ;;  %v8509_v47 = vpack.c.bf16 %v8507_v9, %v8508_v16  ;;  %v1136_v8 = vcvt.s32.f32 %v368_v22  ;;  %v365_v63 = vunpack.c.0.s8 %v173_v19  ;;  %v413_v44 = vunpack.c.1.s8 %v173_v19  ;;  %v8511_v19 = vld [vmem:[#allocation45_spill] sm:$0xff]  ;;  %v8512_v22 = vld [vmem:[#allocation46_spill] sm:$0xff]  ;;  %v8514_v56 = vld [vmem:[#allocation47_spill] sm:$0xff] }
 0x171   :  { %3802 = vmatprep.subr.bf16.mxu1 %v8506_v38  ;;  %v6499_v36 = vmul.f32 %v6012_v35, %v1134_v30  ;;  %v6502_v38 = vmul.f32 %v6012_v35, %v1182_v13  ;;  %v1184_v57 = vcvt.s32.f32 %v416_v51  ;;  %v367_v52 = vunpack.c.0.s8 %v6415_v39 }
 0x172   :  { %3843 = vmatprep.subr.bf16.mxu0 %v8509_v47  ;;  %v6505_v47 = vmul.f32 %v6031_v48, %v1136_v8  ;;  %v1133_v9 = vcvt.s32.f32 %v365_v63  ;;  %v1181_v16 = vcvt.s32.f32 %v413_v44  ;;  %v8513_v32 = vpack.c.bf16 %v8511_v19, %v8512_v22  ;;  %v6521_v8 = vld [vmem:[#allocation7 + $0x538] sm:$0xff]  ;;  %v8517_v63 = vld [vmem:[#allocation49_spill] sm:$0xff]  ;;  %v8518_v44 = vld [vmem:[#allocation50_spill] sm:$0xff] }
 0x173   :  { %v8516_v21 = vpack.c.bf16 %v8514_v56, %v8515_v43  ;;  %v6517_v13 = vmul.f32 %v6031_v48, %v1184_v57  ;;  %v415_v30 = vunpack.c.1.s8 %v6415_v39  ;;  %v1042_v51 = vunpack.c.2.s8 %v6494_v12  ;;  %v8520_v22 = vld [vmem:[#allocation52_spill] sm:$0xff] }
 0x174   :  { %8510 = vst [vmem:[#allocation70_spill] sm:$0xff] %v6505_v47  ;;  %3803 = vmatpush1.bf16.msra.mxu1 %v8513_v32  ;;  %v8519_v19 = vpack.c.bf16 %v8517_v63, %v8518_v44  ;;  %v8521_v32 = vpack.c.bf16 %v6062_v42, %v8520_v22  ;;  %v6533_v48 = vmul.f32 %v6052_v18, %v1181_v16  ;;  %v1135_v57 = vcvt.s32.f32 %v367_v52  ;;  %v8524_v63 = vld [vmem:[#allocation20_spill] sm:$0xff]  ;;  %v8527_v22 = vld [vmem:[#allocation51_spill] sm:$0xff] }
 0x175   :  { %3844 = vmatpush1.bf16.msra.mxu0 %v8516_v21  ;;  %v6530_v21 = vmul.f32 %v6052_v18, %v1133_v9  ;;  %v1090_v39 = vunpack.c.3.s8 %v6494_v12  ;;  %v1183_v43 = vcvt.s32.f32 %v415_v30  ;;  %v1810_v35 = vcvt.s32.f32 %v1042_v51  ;;  %v8525_v44 = vld [vmem:[#allocation44_spill] sm:$0xff]  ;;  %v6552_v30 = vld [vmem:[#allocation7 + $0x530] sm:$0xff]  ;;  %v8535_v47 = vld [vmem:[#allocation55_spill] sm:$0xff] }
 0x176   :  { %3870 = vmatprep.subr.bf16.mxu1 %v8519_v19  ;;  %3911 = vmatprep.subr.bf16.mxu0 %v8521_v32  ;;  %8523 = vst [vmem:[#allocation72_spill] sm:$0xff] %v6533_v48  ;;  %v6540_v19 = vrot.slane %v8525_v44, %v8524_v63  ;;  %v6542_v42 = vld [vmem:[#allocation7 + $0x520] sm:$0xff]  ;;  %v6549_v9 = vmul.f32 %v6066_v53, %v1135_v57  ;;  %v1044_v52 = vunpack.c.2.s8 %v6521_v8  ;;  %v8526_v51 = vld [vmem:[#allocation54_spill] sm:$0xff]  ;;  %v1092_v57 = vunpack.c.3.s8 %v6521_v8 }
 0x177   :  { %8522 = vst [vmem:[#allocation69_spill] sm:$0xff] %v6530_v21  ;;  %3821 = vmatmul.mubr.bf16.vlgmr.msra.gmra.mxu1 %v5634_v40  ;;  %v1858_v16 = vcvt.s32.f32 %v1090_v39  ;;  %v8528_v32 = vpack.c.bf16 %v8526_v51, %v8527_v22  ;;  %v8529_v56 = vld [vmem:[#allocation56_spill] sm:$0xff]  ;;  %v8533_v39 = vld [vmem:[#allocation21_spill] sm:$0xff]  ;;  %v8534_v48 = vld [vmem:[#allocation58_spill] sm:$0xff] }
 0x178   :  { %3862 = vmatmul.mubr.bf16.vlgmr.msra.gmra.mxu0 %v5634_v40  ;;  %v8531_v63 = vpack.c.bf16 %v8529_v56, %v8530_v10  ;;  %v6561_v40 = vmul.f32 %v6066_v53, %v1183_v43  ;;  %v6564_v18 = vmul.f32 %v6540_v19, %v1810_v35  ;;  %v6569_v21 = vrot.slane %v8525_v44, %v8533_v39 }
 0x179   :  { %3871 = vmatpush1.bf16.msra.mxu1 %v8528_v32  ;;  %v8536_v51 = vpack.c.bf16 %v8534_v48, %v8535_v47  ;;  %v8537_v10 = vpack.c.bf16 %v6131_v50, %v6123_v26  ;;  %v6578_v53 = vmul.f32 %v6540_v19, %v1858_v16  ;;  %v1812_v56 = vcvt.s32.f32 %v1044_v52  ;;  %3902 = vmatprep.mubr.bf16.mxu1 %v8252_v45  ;;  %v8538_v48 = vld [vmem:[#allocation22_spill] sm:$0xff]  ;;  %v8543_v16 = vld [vmem:[#allocation23_spill] sm:$0xff] }
 0x17a   :  { %3912 = vmatpush1.bf16.msra.mxu0 %v8531_v63  ;;  %8532 = vst [vmem:[#allocation71_spill] sm:$0xff] %v6564_v18  ;;  %v1041_v35 = vunpack.c.2.s8 %v6542_v42  ;;  %v1089_v43 = vunpack.c.3.s8 %v6542_v42  ;;  %3943 = vmatprep.mubr.bf16.mxu0 %v8252_v45  ;;  %v1860_v47 = vcvt.s32.f32 %v1092_v57  ;;  %v6588_v26 = vrot.slane %v8525_v44, %v8538_v48  ;;  %v8541_v57 = vld [vmem:[#allocation60_spill] sm:$0xff] }
 0x17b   :  { %3872 = vmatprep.subr.bf16.mxu1 %v8536_v51  ;;  %3913 = vmatprep.subr.bf16.mxu0 %v8537_v10  ;;  %v1043_v50 = vunpack.c.2.s8 %v6552_v30  ;;  %v6594_v52 = vmul.f32 %v6569_v21, %v1812_v56  ;;  %v8539_v51 = vld [vmem:[#allocation57_spill] sm:$0xff]  ;;  %v8542_v63 = vpack.c.bf16 %v6168_v59, %v8541_v57  ;;  %v1091_v39 = vunpack.c.3.s8 %v6552_v30 }
 0x17c   :  { %v1809_v22 = vcvt.s32.f32 %v1041_v35  ;;  %v1857_v32 = vcvt.s32.f32 %v1089_v43  ;;  %v8540_v10 = vpack.c.bf16 %v6139_v14, %v8539_v51  ;;  %v6603_v48 = vmul.f32 %v6569_v21, %v1860_v47  ;;  %v8544_v35 = vld [vmem:[#allocation62_spill] sm:$0xff]  ;;  %v8545_v43 = vld [vmem:[#allocation59_spill] sm:$0xff]  ;;  %v8547_v14 = vld [vmem:[#allocation64_spill] sm:$0xff] }
 0x17d   :  { %v1811_v45 = vcvt.s32.f32 %v1043_v50  ;;  %v6608_v56 = vrot.slane %v8525_v44, %v8543_v16  ;;  %v8546_v18 = vpack.c.bf16 %v8544_v35, %v8545_v43  ;;  %v8548_v51 = vld [vmem:[#allocation61_spill] sm:$0xff]  ;;  %v946_v47 = vunpack.c.0.s8 %v6494_v12 }
 0x17e   :  { %3873 = vmatpush1.bf16.msra.mxu1 %v8540_v10  ;;  %3914 = vmatpush1.bf16.msra.mxu0 %v8542_v63  ;;  %v8549_v10 = vpack.c.bf16 %v8547_v14, %v8548_v51  ;;  %v6617_v59 = vmul.f32 %v6588_v26, %v1809_v22  ;;  %v6620_v63 = vmul.f32 %v6588_v26, %v1857_v32  ;;  %v994_v50 = vunpack.c.1.s8 %v6494_v12 }
 0x17f   :  { %3874 = vmatprep.subr.bf16.mxu1 %v8546_v18  ;;  %v3264_v44 = vpack.c.bf16 %v6603_v48, %v6594_v52  ;;  %v1859_v57 = vcvt.s32.f32 %v1091_v39  ;;  %v6627_v18 = vmul.f32 %v6608_v56, %v1811_v45  ;;  %v948_v35 = vunpack.c.0.s8 %v6521_v8 }
 0x180   :  { %3915 = vmatprep.subr.bf16.mxu0 %v8549_v10  ;;  %v1714_v43 = vcvt.s32.f32 %v946_v47  ;;  %v1762_v14 = vcvt.s32.f32 %v994_v50  ;;  %v996_v32 = vunpack.c.1.s8 %v6521_v8  ;;  %v8550_v51 = vpack.c.bf16 %v6210_v17, %v6203_v24  ;;  %v8553_v8 = vld [vmem:[#allocation66_spill] sm:$0xff]  ;;  %v8554_v50 = vld [vmem:[#allocation63_spill] sm:$0xff] }
 0x181   :  { %v8551_v12 = vpack.c.bf16 %v6223_v46, %v6213_v1  ;;  %v6640_v45 = vmul.f32 %v6608_v56, %v1859_v57  ;;  %v1716_v39 = vcvt.s32.f32 %v948_v35  ;;  %v945_v10 = vunpack.c.0.s8 %v6542_v42  ;;  %v274_v35 = vld [vmem:[#allocation7 + $0x3a8] sm:$0xff] }
 0x182   :  { %3875 = vmatpush1.bf16.msra.mxu1 %v8550_v51  ;;  %v993_v22 = vunpack.c.1.s8 %v6542_v42  ;;  %v8552_v47 = vpack.c.bf16 %v6244_v2, %v6241_v62  ;;  %v8555_v24 = vpack.c.bf16 %v8553_v8, %v8554_v50  ;;  %v6651_v17 = vmul.f32 %v6540_v19, %v1714_v43 }
 0x183   :  { %3916 = vmatpush1.bf16.msra.mxu0 %v8551_v12  ;;  %v6654_v1 = vmul.f32 %v6540_v19, %v1762_v14  ;;  %v1764_v46 = vcvt.s32.f32 %v996_v32  ;;  %v947_v57 = vunpack.c.0.s8 %v6552_v30  ;;  %v3263_v42 = vpack.c.bf16 %v6640_v45, %v6627_v18  ;;  %v6662_v12 = vld [vmem:[#allocation7 + $0x3b8] sm:$0xff] }
 0x184   :  { %3876 = vmatprep.subr.bf16.mxu1 %v8552_v47  ;;  %3917 = vmatprep.subr.bf16.mxu0 %v8555_v24  ;;  %v6660_v62 = vmul.f32 %v6569_v21, %v1716_v39  ;;  %v1713_v2 = vcvt.s32.f32 %v945_v10  ;;  %v1761_v51 = vcvt.s32.f32 %v993_v22  ;;  %v995_v32 = vunpack.c.1.s8 %v6552_v30 }
 0x185   :  { %v3214_v43 = vpack.c.bf16 %v6654_v1, %v6651_v17  ;;  %v6667_v14 = vmul.f32 %v6569_v21, %v1764_v46  ;;  %v1715_v47 = vcvt.s32.f32 %v947_v57  ;;  %v8556_v8 = vpack.c.bf16 %v6277_v15, %v6274_v11  ;;  %v273_v46 = vld [vmem:[#allocation7 + $0x3a0] sm:$0xff] }
 0x186   :  { %v8557_v39 = vpack.c.bf16 %v6302_v60, %v6292_v49  ;;  %v6677_v22 = vmul.f32 %v6588_v26, %v1713_v2  ;;  %v6680_v10 = vmul.f32 %v6588_v26, %v1761_v51  ;;  %v850_v50 = vunpack.c.2.s8 %v274_v35  ;;  %v6694_v2 = vld [vmem:[#allocation7 + $0x3b0] sm:$0xff] }
 0x187   :  { %3877 = vmatpush1.bf16.msra.mxu1 %v8556_v8  ;;  %v898_v24 = vunpack.c.3.s8 %v274_v35  ;;  %v8558_v30 = vpack.c.bf16 %v6315_v55, %v6305_v25  ;;  %v8559_v11 = vpack.c.bf16 %v6328_v33, %v6322_v58  ;;  %v3216_v60 = vpack.c.bf16 %v6667_v14, %v6660_v62 }
 0x188   :  { %3918 = vmatpush1.bf16.msra.mxu0 %v8557_v39  ;;  %v1763_v15 = vcvt.s32.f32 %v995_v32  ;;  %v6691_v49 = vmul.f32 %v6608_v56, %v1715_v47  ;;  %v852_v57 = vunpack.c.2.s8 %v6662_v12  ;;  %v3213_v51 = vpack.c.bf16 %v6680_v10, %v6677_v22 }
 0x189   :  { %3878 = vmatprep.subr.bf16.mxu1 %v8558_v30  ;;  %3919 = vmatprep.subr.bf16.mxu0 %v8559_v11  ;;  %v1618_v25 = vcvt.s32.f32 %v850_v50  ;;  %v1666_v55 = vcvt.s32.f32 %v898_v24  ;;  %v900_v8 = vunpack.c.3.s8 %v6662_v12  ;;  %v849_v39 = vunpack.c.2.s8 %v273_v46 }
 0x18a   :  { %v6700_v58 = vmul.f32 %v6608_v56, %v1763_v15  ;;  %v1620_v33 = vcvt.s32.f32 %v852_v57  ;;  %v897_v32 = vunpack.c.3.s8 %v273_v46  ;;  %v8560_v47 = vpack.c.bf16 %v6350_v37, %v6337_v7 }
 0x18b   :  { %v8561_v30 = vpack.c.bf16 %v6357_v28, %v6353_v0  ;;  %v6709_v11 = vmul.f32 %v6540_v19, %v1618_v25  ;;  %v6712_v50 = vmul.f32 %v6540_v19, %v1666_v55  ;;  %v1668_v24 = vcvt.s32.f32 %v900_v8 }
 0x18c   :  { %3879 = vmatpush1.bf16.msra.mxu1 %v8560_v47  ;;  %v851_v15 = vunpack.c.2.s8 %v6694_v2  ;;  %v8562_v57 = vpack.c.bf16 %v6378_v20, %v6375_v4  ;;  %v8563_v7 = vpack.c.bf16 %v6395_v54, %v6387_v41  ;;  %v3215_v37 = vpack.c.bf16 %v6700_v58, %v6691_v49 }
 0x18d   :  { %3920 = vmatpush1.bf16.msra.mxu0 %v8561_v30  ;;  %v6724_v0 = vmul.f32 %v6569_v21, %v1620_v33  ;;  %v1617_v28 = vcvt.s32.f32 %v849_v39  ;;  %v1665_v25 = vcvt.s32.f32 %v897_v32  ;;  %v3166_v55 = vpack.c.bf16 %v6712_v50, %v6709_v11  ;;  %v6908_v50 = vld [vmem:[#allocation7 + $0xb8] sm:$0xff] }
 0x18e   :  { %3880 = vmatprep.subr.bf16.mxu1 %v8562_v57  ;;  %3921 = vmatprep.subr.bf16.mxu0 %v8563_v7  ;;  %v6729_v8 = vmul.f32 %v6569_v21, %v1668_v24  ;;  %v899_v4 = vunpack.c.3.s8 %v6694_v2  ;;  %v1619_v20 = vcvt.s32.f32 %v851_v15  ;;  %v754_v47 = vunpack.c.0.s8 %v274_v35  ;;  %v8566_v7 = vld [vmem:[#allocation65_spill] sm:$0xff] }
 0x18f   :  { %v6733_v41 = vmul.f32 %v6588_v26, %v1617_v28  ;;  %v6736_v54 = vmul.f32 %v6588_v26, %v1665_v25  ;;  %v802_v33 = vunpack.c.1.s8 %v274_v35  ;;  %v8564_v39 = vpack.c.bf16 %v6403_v61, %v6400_v27  ;;  %v8568_v28 = vld [vmem:[#allocation67_spill] sm:$0xff]  ;;  %v8569_v27 = vld [vmem:[#allocation68_spill] sm:$0xff] }
 0x190   :  { %v8565_v32 = vpack.c.bf16 %v6430_v3, %v6426_v23  ;;  %v1667_v24 = vcvt.s32.f32 %v899_v4  ;;  %v6747_v15 = vmul.f32 %v6608_v56, %v1619_v20  ;;  %v756_v57 = vunpack.c.0.s8 %v6662_v12 }
 0x191   :  { %3881 = vmatpush1.bf16.msra.mxu1 %v8564_v39  ;;  %v8567_v35 = vpack.c.bf16 %v6436_v34, %v8566_v7  ;;  %v8570_v61 = vpack.c.bf16 %v8568_v28, %v8569_v27  ;;  %v3165_v23 = vpack.c.bf16 %v6736_v54, %v6733_v41  ;;  %v1522_v3 = vcvt.s32.f32 %v754_v47  ;;  %v6769_v27 = vld [vmem:[#allocation7 + $0x228] sm:$0xff] }
 0x192   :  { %3922 = vmatpush1.bf16.msra.mxu0 %v8565_v32  ;;  %v1570_v25 = vcvt.s32.f32 %v802_v33  ;;  %v804_v4 = vunpack.c.1.s8 %v6662_v12  ;;  %v6760_v20 = vmul.f32 %v6608_v56, %v1667_v24  ;;  %v1524_v39 = vcvt.s32.f32 %v756_v57 }
 0x193   :  { %3882 = vmatprep.subr.bf16.mxu1 %v8567_v35  ;;  %3923 = vmatprep.subr.bf16.mxu0 %v8570_v61  ;;  %v753_v32 = vunpack.c.0.s8 %v273_v46  ;;  %v801_v30 = vunpack.c.1.s8 %v273_v46  ;;  %v6763_v34 = vmul.f32 %v6540_v19, %v1522_v3  ;;  %v755_v28 = vunpack.c.0.s8 %v6694_v2  ;;  %v6782_v61 = vld [vmem:[#allocation7 + $0x238] sm:$0xff] }
 0x194   :  { %v6766_v7 = vmul.f32 %v6540_v19, %v1570_v25  ;;  %v1572_v35 = vcvt.s32.f32 %v804_v4  ;;  %v8571_v12 = vpack.c.bf16 %v6470_v6, %v6463_v29  ;;  %v8572_v47 = vpack.c.bf16 %v6483_v5, %v6473_v31  ;;  %v8574_v29 = vld [vmem:[#allocation70_spill] sm:$0xff] }
 0x195   :  { %v3167_v46 = vpack.c.bf16 %v6760_v20, %v6747_v15  ;;  %v6780_v33 = vmul.f32 %v6569_v21, %v1524_v39  ;;  %v1521_v24 = vcvt.s32.f32 %v753_v32  ;;  %v1569_v57 = vcvt.s32.f32 %v801_v30  ;;  %v8580_v32 = vld [vmem:[#allocation71_spill] sm:$0xff]  ;;  %v6928_v20 = vld [vmem:[#allocation7 + $0xb0] sm:$0xff] }
 0x196   :  { %3883 = vmatpush1.bf16.msra.mxu1 %v8571_v12  ;;  %3924 = vmatpush1.bf16.msra.mxu0 %v8572_v47  ;;  %v8573_v3 = vpack.c.bf16 %v6502_v38, %v6499_v36  ;;  %v8575_v6 = vpack.c.bf16 %v6517_v13, %v8574_v29  ;;  %v6793_v5 = vmul.f32 %v6569_v21, %v1572_v35  ;;  %v803_v25 = vunpack.c.1.s8 %v6694_v2  ;;  %v6804_v13 = vld [vmem:[#allocation7 + $0x220] sm:$0xff] }
 0x197   :  { %v1523_v4 = vcvt.s32.f32 %v755_v28  ;;  %v6797_v30 = vmul.f32 %v6588_v26, %v1521_v24  ;;  %v6800_v39 = vmul.f32 %v6588_v26, %v1569_v57  ;;  %v658_v36 = vunpack.c.2.s8 %v6769_v27  ;;  %v6812_v28 = vld [vmem:[#allocation7 + $0x230] sm:$0xff]  ;;  %v8576_v47 = vld [vmem:[#allocation72_spill] sm:$0xff]  ;;  %v8577_v24 = vld [vmem:[#allocation69_spill] sm:$0xff] }
 0x198   :  { %3884 = vmatprep.subr.bf16.mxu1 %v8573_v3  ;;  %3925 = vmatprep.subr.bf16.mxu0 %v8575_v6  ;;  %v706_v38 = vunpack.c.3.s8 %v6769_v27  ;;  %v1571_v35 = vcvt.s32.f32 %v803_v25  ;;  %v660_v2 = vunpack.c.2.s8 %v6782_v61  ;;  %v8578_v57 = vpack.c.bf16 %v8576_v47, %v8577_v24 }
 0x199   :  { %v6809_v12 = vmul.f32 %v6608_v56, %v1523_v4  ;;  %v8579_v3 = vpack.c.bf16 %v6561_v40, %v6549_v9  ;;  %v3117_v29 = vpack.c.bf16 %v6800_v39, %v6797_v30  ;;  %v1426_v6 = vcvt.s32.f32 %v658_v36 }
 0x19a   :  { %3885 = vmatpush1.bf16.msra.mxu1 %v8578_v57  ;;  %v1474_v25 = vcvt.s32.f32 %v706_v38  ;;  %v708_v4 = vunpack.c.3.s8 %v6782_v61  ;;  %v8581_v31 = vpack.c.bf16 %v6578_v53, %v8580_v32  ;;  %v6830_v47 = vmul.f32 %v6608_v56, %v1571_v35  ;;  %v8582_v32 = vld [vmem:[#allocation124_spill] sm:$0xff] }
 0x19b   :  { %3926 = vmatpush1.bf16.msra.mxu0 %v8579_v3  ;;  %v1428_v40 = vcvt.s32.f32 %v660_v2  ;;  %v657_v9 = vunpack.c.2.s8 %v6804_v13  ;;  %v705_v24 = vunpack.c.3.s8 %v6804_v13  ;;  %v6835_v36 = vmul.f32 %v6540_v19, %v1426_v6 }
 0x19c   :  { %3952 = vmatprep.subr.bf16.mxu1 %v8581_v31  ;;  %3993 = vmatprep.subr.bf16.mxu0 %v3264_v44  ;;  %v6838_v38 = vmul.f32 %v6540_v19, %v1474_v25  ;;  %v1476_v53 = vcvt.s32.f32 %v708_v4  ;;  %v659_v31 = vunpack.c.2.s8 %v6812_v28  ;;  %v3119_v48 = vpack.c.bf16 %v6830_v47, %v6809_v12 }
 0x19d   :  { %3903 = vmatmul.mubr.bf16.vlgmr.msra.gmra.mxu1 %v8582_v32  ;;  %v6846_v52 = vmul.f32 %v6569_v21, %v1428_v40  ;;  %v1425_v44 = vcvt.s32.f32 %v657_v9  ;;  %v1473_v35 = vcvt.s32.f32 %v705_v24  ;;  %v8583_v2 = vpack.c.bf16 %v6620_v63, %v6617_v59 }
 0x19e   :  { %3944 = vmatmul.mubr.bf16.vlgmr.msra.gmra.mxu0 %v8582_v32  ;;  %v3070_v57 = vpack.c.bf16 %v6838_v38, %v6835_v36  ;;  %v6857_v3 = vmul.f32 %v6569_v21, %v1476_v53  ;;  %v707_v6 = vunpack.c.3.s8 %v6812_v28  ;;  %v1427_v25 = vcvt.s32.f32 %v659_v31 }
 0x19f   :  { %3953 = vmatpush1.bf16.msra.mxu1 %v8583_v2  ;;  %3994 = vmatpush1.bf16.msra.mxu0 %v3263_v42  ;;  %v6867_v59 = vmul.f32 %v6588_v26, %v1425_v44  ;;  %v6870_v63 = vmul.f32 %v6588_v26, %v1473_v35  ;;  %v562_v18 = vunpack.c.0.s8 %v6769_v27  ;;  %v610_v45 = vunpack.c.1.s8 %v6769_v27 }
 0x1a0   :  { %3954 = vmatprep.subr.bf16.mxu1 %v3214_v43  ;;  %3995 = vmatprep.subr.bf16.mxu0 %v3216_v60  ;;  %v3072_v42 = vpack.c.bf16 %v6857_v3, %v6846_v52  ;;  %v1475_v4 = vcvt.s32.f32 %v707_v6  ;;  %v6877_v17 = vmul.f32 %v6608_v56, %v1427_v25  ;;  %v564_v1 = vunpack.c.0.s8 %v6782_v61  ;;  %v177_v6 = vld [vmem:[#allocation7 + $0xa0] sm:$0xff] }
 0x1a1   :  { %v8584_v62 = vmov 0   ;;  %v3069_v43 = vpack.c.bf16 %v6870_v63, %v6867_v59  ;;  %v1330_v14 = vcvt.s32.f32 %v562_v18  ;;  %v1378_v60 = vcvt.s32.f32 %v610_v45 }
 0x1a2   :  { %3984 = vmatprep.mubr.bf16.mxu1 %v8584_v62  ;;  %4025 = vmatprep.mubr.bf16.mxu0 %v8584_v62  ;;  %v612_v27 = vunpack.c.1.s8 %v6782_v61  ;;  %v6892_v40 = vmul.f32 %v6608_v56, %v1475_v4  ;;  %v1332_v9 = vcvt.s32.f32 %v564_v1  ;;  %v561_v24 = vunpack.c.0.s8 %v6804_v13 }
 0x1a3   :  { %3955 = vmatpush1.bf16.msra.mxu1 %v3213_v51  ;;  %3996 = vmatpush1.bf16.msra.mxu0 %v3215_v37  ;;  %v609_v53 = vunpack.c.1.s8 %v6804_v13  ;;  %v8585_v22 = vpack.c.bf16 %v6729_v8, %v6724_v0  ;;  %v2350_v10 = vmul.f32 %v6540_v19, %v1330_v14  ;;  %v2398_v49 = vmul.f32 %v6540_v19, %v1378_v60  ;;  %v178_v37 = vld [vmem:[#allocation7 + $0xa8] sm:$0xff] }
 0x1a4   :  { %3956 = vmatprep.subr.bf16.mxu1 %v3166_v55  ;;  %v1380_v51 = vcvt.s32.f32 %v612_v27  ;;  %v563_v58 = vunpack.c.0.s8 %v6812_v28  ;;  %v3071_v61 = vpack.c.bf16 %v6892_v40, %v6877_v17  ;;  %v2352_v13 = vmul.f32 %v6569_v21, %v1332_v9 }
 0x1a5   :  { %3997 = vmatprep.subr.bf16.mxu0 %v8585_v22  ;;  %v1329_v31 = vcvt.s32.f32 %v561_v24  ;;  %v1377_v11 = vcvt.s32.f32 %v609_v53  ;;  %v3022_v55 = vpack.c.bf16 %v2398_v49, %v2350_v10  ;;  %v611_v8 = vunpack.c.1.s8 %v6812_v28 }
 0x1a6   :  { %v2400_v0 = vmul.f32 %v6569_v21, %v1380_v51  ;;  %v1331_v52 = vcvt.s32.f32 %v563_v58  ;;  %v466_v2 = vunpack.c.2.s8 %v178_v37  ;;  %v514_v3 = vunpack.c.3.s8 %v178_v37 }
 0x1a7   :  { %3957 = vmatpush1.bf16.msra.mxu1 %v3165_v23  ;;  %3998 = vmatpush1.bf16.msra.mxu0 %v3167_v46  ;;  %v2349_v44 = vmul.f32 %v6588_v26, %v1329_v31  ;;  %v2397_v35 = vmul.f32 %v6588_v26, %v1377_v11  ;;  %v8586_v25 = vpack.c.bf16 %v6766_v7, %v6763_v34  ;;  %v1379_v54 = vcvt.s32.f32 %v611_v8 }
 0x1a8   :  { %v8587_v28 = vpack.c.bf16 %v6793_v5, %v6780_v33  ;;  %v3024_v41 = vpack.c.bf16 %v2400_v0, %v2352_v13  ;;  %v2351_v15 = vmul.f32 %v6608_v56, %v1331_v52  ;;  %v468_v23 = vunpack.c.2.s8 %v6908_v50  ;;  %v6959_v0 = vld [vmem:[#allocation7 + $0x548] sm:$0xff] }
 0x1a9   :  { %3958 = vmatprep.subr.bf16.mxu1 %v8586_v25  ;;  %v3021_v46 = vpack.c.bf16 %v2397_v35, %v2349_v44  ;;  %v1234_v18 = vcvt.s32.f32 %v466_v2  ;;  %v1282_v45 = vcvt.s32.f32 %v514_v3  ;;  %v516_v4 = vunpack.c.3.s8 %v6908_v50  ;;  %v6962_v44 = vld [vmem:[#allocation8 + $0x18] sm:$0xff] }
 0x1aa   :  { %3999 = vmatprep.subr.bf16.mxu0 %v8587_v28  ;;  %v2399_v34 = vmul.f32 %v6608_v56, %v1379_v54  ;;  %v1236_v7 = vcvt.s32.f32 %v468_v23  ;;  %v465_v17 = vunpack.c.2.s8 %v177_v6  ;;  %v513_v1 = vunpack.c.3.s8 %v177_v6 }
 0x1ab   :  { %3959 = vmatpush1.bf16.msra.mxu1 %v3117_v29  ;;  %4000 = vmatpush1.bf16.msra.mxu0 %v3119_v48  ;;  %v2254_v33 = vmul.f32 %v6540_v19, %v1234_v18  ;;  %v2302_v5 = vmul.f32 %v6540_v19, %v1282_v45  ;;  %v1284_v14 = vcvt.s32.f32 %v516_v4  ;;  %v467_v60 = vunpack.c.2.s8 %v6928_v20  ;;  %v8588_v45 = vld [vmem:[#allocation16_spill] sm:$0xff] }
 0x1ac   :  { %3960 = vmatprep.subr.bf16.mxu1 %v3070_v57  ;;  %4001 = vmatprep.subr.bf16.mxu0 %v3072_v42  ;;  %v3023_v27 = vpack.c.bf16 %v2399_v34, %v2351_v15  ;;  %v2256_v30 = vmul.f32 %v6569_v21, %v1236_v7  ;;  %v1233_v39 = vcvt.s32.f32 %v465_v17  ;;  %v1281_v29 = vcvt.s32.f32 %v513_v1  ;;  %v6970_v15 = vld [vmem:[#allocation7 + $0x540] sm:$0xff]  ;;  %v8589_v1 = vld [vmem:[#allocation17_spill] sm:$0xff] }
 0x1ad   :  { %v2974_v40 = vpack.c.bf16 %v2302_v5, %v2254_v33  ;;  %v2304_v12 = vmul.f32 %v6569_v21, %v1284_v14  ;;  %v515_v47 = vunpack.c.3.s8 %v6928_v20  ;;  %v1235_v48 = vcvt.s32.f32 %v467_v60  ;;  %v6983_v14 = vld [vmem:[#allocation7 + $0x550] sm:$0xff] }
 0x1ae   :  { %v2253_v9 = vmul.f32 %v6588_v26, %v1233_v39  ;;  %v2301_v24 = vmul.f32 %v6588_v26, %v1281_v29  ;;  %v370_v53 = vunpack.c.0.s8 %v178_v37  ;;  %v418_v22 = vunpack.c.1.s8 %v178_v37 }
 0x1af   :  { %3961 = vmatpush1.bf16.msra.mxu1 %v3069_v43  ;;  %4002 = vmatpush1.bf16.msra.mxu0 %v3071_v61  ;;  %v2976_v36 = vpack.c.bf16 %v2304_v12, %v2256_v30  ;;  %v1283_v38 = vcvt.s32.f32 %v515_v47  ;;  %v2255_v57 = vmul.f32 %v6608_v56, %v1235_v48  ;;  %v372_v42 = vunpack.c.0.s8 %v6908_v50 }
 0x1b0   :  { %3962 = vmatprep.subr.bf16.mxu1 %v3022_v55  ;;  %4003 = vmatprep.subr.bf16.mxu0 %v3024_v41  ;;  %v2973_v10 = vpack.c.bf16 %v2301_v24, %v2253_v9  ;;  %v1138_v49 = vcvt.s32.f32 %v370_v53  ;;  %v1186_v51 = vcvt.s32.f32 %v418_v22  ;;  %v420_v58 = vunpack.c.1.s8 %v6908_v50 }
 0x1b1   :  { %v2303_v37 = vmul.f32 %v6608_v56, %v1283_v38  ;;  %v1140_v13 = vcvt.s32.f32 %v372_v42  ;;  %v369_v31 = vunpack.c.0.s8 %v177_v6  ;;  %v417_v59 = vunpack.c.1.s8 %v177_v6  ;;  %v328_v6 = vld [vmem:[#allocation7 + $0x558] sm:$0xff] }
 0x1b2   :  { %v2158_v63 = vmul.f32 %v6540_v19, %v1138_v49  ;;  %v2206_v43 = vmul.f32 %v6540_v19, %v1186_v51  ;;  %v1188_v61 = vcvt.s32.f32 %v420_v58  ;;  %v371_v11 = vunpack.c.0.s8 %v6928_v20 }
 0x1b3   :  { %3963 = vmatpush1.bf16.msra.mxu1 %v3021_v46  ;;  %4004 = vmatpush1.bf16.msra.mxu0 %v3023_v27  ;;  %v2975_v55 = vpack.c.bf16 %v2303_v37, %v2255_v57  ;;  %v2160_v8 = vmul.f32 %v6569_v21, %v1140_v13  ;;  %v1137_v50 = vcvt.s32.f32 %v369_v31  ;;  %v1185_v52 = vcvt.s32.f32 %v417_v59  ;;  %v8591_v57 = vld [vmem:[#allocation19_spill] sm:$0xff] }
 0x1b4   :  { %3964 = vmatprep.subr.bf16.mxu1 %v2974_v40  ;;  %4005 = vmatprep.subr.bf16.mxu0 %v2976_v36  ;;  %v2926_v35 = vpack.c.bf16 %v2206_v43, %v2158_v63  ;;  %v2208_v2 = vmul.f32 %v6569_v21, %v1188_v61  ;;  %v419_v19 = vunpack.c.1.s8 %v6928_v20  ;;  %v1139_v3 = vcvt.s32.f32 %v371_v11 }
 0x1b5   :  { %v2157_v25 = vmul.f32 %v6588_v26, %v1137_v50  ;;  %v2205_v28 = vmul.f32 %v6588_v26, %v1185_v52  ;;  %v1046_v41 = vunpack.c.2.s8 %v6959_v0  ;;  %v1094_v54 = vunpack.c.3.s8 %v6959_v0 }
 0x1b6   :  { %v2928_v23 = vpack.c.bf16 %v2208_v2, %v2160_v8  ;;  %v1187_v46 = vcvt.s32.f32 %v419_v19  ;;  %v2159_v18 = vmul.f32 %v6608_v56, %v1139_v3  ;;  %v6975_v21 = vrot.slane %v6962_v44, %v8588_v45  ;;  %v278_v3 = vld [vmem:[#allocation7 + $0x3c8] sm:$0xff] }
 0x1b7   :  { %3965 = vmatpush1.bf16.msra.mxu1 %v2973_v10  ;;  %4006 = vmatpush1.bf16.msra.mxu0 %v2975_v55  ;;  %v2925_v20 = vpack.c.bf16 %v2205_v28, %v2157_v25  ;;  %v1814_v4 = vcvt.s32.f32 %v1046_v41  ;;  %v1862_v34 = vcvt.s32.f32 %v1094_v54  ;;  %v1048_v26 = vunpack.c.2.s8 %v328_v6  ;;  %v280_v54 = vld [vmem:[#allocation7 + $0x3d8] sm:$0xff] }
 0x1b8   :  { %3966 = vmatprep.subr.bf16.mxu1 %v2926_v35  ;;  %4007 = vmatprep.subr.bf16.mxu0 %v2928_v23  ;;  %v2207_v7 = vmul.f32 %v6608_v56, %v1187_v46  ;;  %v1096_v17 = vunpack.c.3.s8 %v328_v6  ;;  %v6980_v33 = vrot.slane %v6962_v44, %v8589_v1  ;;  %v1045_v5 = vunpack.c.2.s8 %v6970_v15  ;;  %v8590_v56 = vld [vmem:[#allocation18_spill] sm:$0xff] }
 0x1b9   :  { %v2834_v60 = vmul.f32 %v6975_v21, %v1814_v4  ;;  %v2882_v27 = vmul.f32 %v6975_v21, %v1862_v34  ;;  %v1816_v30 = vcvt.s32.f32 %v1048_v26  ;;  %v1093_v39 = vunpack.c.3.s8 %v6970_v15  ;;  %v7018_v4 = vld [vmem:[#allocation7 + $0x3c0] sm:$0xff] }
 0x1ba   :  { %v2927_v29 = vpack.c.bf16 %v2207_v7, %v2159_v18  ;;  %v1864_v40 = vcvt.s32.f32 %v1096_v17  ;;  %v1813_v12 = vcvt.s32.f32 %v1045_v5  ;;  %v6990_v47 = vrot.slane %v6962_v44, %v8590_v56 }
 0x1bb   :  { %3967 = vmatpush1.bf16.msra.mxu1 %v2925_v20  ;;  %v3266_v48 = vpack.c.bf16 %v2882_v27, %v2834_v60  ;;  %v2836_v9 = vmul.f32 %v6980_v33, %v1816_v30  ;;  %v1861_v24 = vcvt.s32.f32 %v1093_v39  ;;  %v1047_v53 = vunpack.c.2.s8 %v6983_v14 }
 0x1bc   :  { %4008 = vmatpush1.bf16.msra.mxu0 %v2927_v29  ;;  %v2884_v22 = vmul.f32 %v6980_v33, %v1864_v40  ;;  %v2833_v36 = vmul.f32 %v6990_v47, %v1813_v12  ;;  %v1095_v38 = vunpack.c.3.s8 %v6983_v14  ;;  %v6999_v42 = vrot.slane %v6962_v44, %v8591_v57  ;;  %v279_v40 = vld [vmem:[#allocation7 + $0x3d0] sm:$0xff] }
 0x1bd   :  { %4034 = vmatprep.subr.bf16.mxu1 %v3266_v48  ;;  %v2881_v10 = vmul.f32 %v6990_v47, %v1861_v24  ;;  %v1815_v49 = vcvt.s32.f32 %v1047_v53  ;;  %v950_v51 = vunpack.c.0.s8 %v6959_v0  ;;  %v998_v58 = vunpack.c.1.s8 %v6959_v0 }
 0x1be   :  { %3985 = vmatmul.mubr.bf16.vlgmr.msra.gmra.mxu1 %v8582_v32  ;;  %v3268_v37 = vpack.c.bf16 %v2884_v22, %v2836_v9  ;;  %v1863_v13 = vcvt.s32.f32 %v1095_v38  ;;  %v952_v31 = vunpack.c.0.s8 %v328_v6  ;;  %v1000_v59 = vunpack.c.1.s8 %v328_v6 }
 0x1bf   :  { %4026 = vmatmul.mubr.bf16.vlgmr.msra.gmra.mxu0 %v8582_v32  ;;  %v3265_v63 = vpack.c.bf16 %v2881_v10, %v2833_v36  ;;  %v2835_v43 = vmul.f32 %v6999_v42, %v1815_v49  ;;  %v1718_v61 = vcvt.s32.f32 %v950_v51  ;;  %v1766_v11 = vcvt.s32.f32 %v998_v58  ;;  %4066 = vmatprep.mubr.bf16.mxu1 %v8584_v62 }
 0x1c0   :  { %4075 = vmatprep.subr.bf16.mxu0 %v3268_v37  ;;  %v2883_v55 = vmul.f32 %v6999_v42, %v1863_v13  ;;  %v1720_v8 = vcvt.s32.f32 %v952_v31  ;;  %v1768_v0 = vcvt.s32.f32 %v1000_v59  ;;  %v949_v50 = vunpack.c.0.s8 %v6970_v15  ;;  %4107 = vmatprep.mubr.bf16.mxu0 %v8584_v62 }
 0x1c1   :  { %4035 = vmatpush1.bf16.msra.mxu1 %v3265_v63  ;;  %v2738_v52 = vmul.f32 %v6975_v21, %v1718_v61  ;;  %v2786_v35 = vmul.f32 %v6975_v21, %v1766_v11  ;;  %v997_v2 = vunpack.c.1.s8 %v6970_v15  ;;  %v951_v19 = vunpack.c.0.s8 %v6983_v14 }
 0x1c2   :  { %v3267_v6 = vpack.c.bf16 %v2883_v55, %v2835_v43  ;;  %v2740_v25 = vmul.f32 %v6980_v33, %v1720_v8  ;;  %v2788_v28 = vmul.f32 %v6980_v33, %v1768_v0  ;;  %v1717_v41 = vcvt.s32.f32 %v949_v50 }
 0x1c3   :  { %v3218_v23 = vpack.c.bf16 %v2786_v35, %v2738_v52  ;;  %v1765_v46 = vcvt.s32.f32 %v997_v2  ;;  %v999_v18 = vunpack.c.1.s8 %v6983_v14  ;;  %v1719_v20 = vcvt.s32.f32 %v951_v19 }
 0x1c4   :  { %4076 = vmatpush1.bf16.msra.mxu0 %v3267_v6  ;;  %v3220_v34 = vpack.c.bf16 %v2788_v28, %v2740_v25  ;;  %v2737_v15 = vmul.f32 %v6990_v47, %v1717_v41  ;;  %v854_v26 = vunpack.c.2.s8 %v278_v3  ;;  %v902_v7 = vunpack.c.3.s8 %v278_v3 }
 0x1c5   :  { %4036 = vmatprep.subr.bf16.mxu1 %v3218_v23  ;;  %v2785_v17 = vmul.f32 %v6990_v47, %v1765_v46  ;;  %v1767_v5 = vcvt.s32.f32 %v999_v18  ;;  %v2739_v60 = vmul.f32 %v6999_v42, %v1719_v20  ;;  %v856_v27 = vunpack.c.2.s8 %v280_v54  ;;  %v230_v18 = vld [vmem:[#allocation7 + $0x248] sm:$0xff] }
 0x1c6   :  { %4077 = vmatprep.subr.bf16.mxu0 %v3220_v34  ;;  %v1622_v30 = vcvt.s32.f32 %v854_v26  ;;  %v1670_v39 = vcvt.s32.f32 %v902_v7  ;;  %v904_v14 = vunpack.c.3.s8 %v280_v54  ;;  %v853_v29 = vunpack.c.2.s8 %v7018_v4  ;;  %v232_v7 = vld [vmem:[#allocation7 + $0x258] sm:$0xff] }
 0x1c7   :  { %v3217_v12 = vpack.c.bf16 %v2785_v17, %v2737_v15  ;;  %v2787_v48 = vmul.f32 %v6999_v42, %v1767_v5  ;;  %v1624_v9 = vcvt.s32.f32 %v856_v27  ;;  %v901_v24 = vunpack.c.3.s8 %v7018_v4 }
 0x1c8   :  { %v2642_v53 = vmul.f32 %v6975_v21, %v1622_v30  ;;  %v2690_v22 = vmul.f32 %v6975_v21, %v1670_v39  ;;  %v1672_v36 = vcvt.s32.f32 %v904_v14  ;;  %v1621_v38 = vcvt.s32.f32 %v853_v29  ;;  %v7040_v30 = vld [vmem:[#allocation7 + $0x240] sm:$0xff] }
 0x1c9   :  { %4037 = vmatpush1.bf16.msra.mxu1 %v3217_v12  ;;  %v3219_v10 = vpack.c.bf16 %v2787_v48, %v2739_v60  ;;  %v2644_v49 = vmul.f32 %v6980_v33, %v1624_v9  ;;  %v1669_v51 = vcvt.s32.f32 %v901_v24  ;;  %v855_v58 = vunpack.c.2.s8 %v279_v40 }
 0x1ca   :  { %v3170_v37 = vpack.c.bf16 %v2690_v22, %v2642_v53  ;;  %v2692_v13 = vmul.f32 %v6980_v33, %v1672_v36  ;;  %v2641_v31 = vmul.f32 %v6990_v47, %v1621_v38  ;;  %v903_v59 = vunpack.c.3.s8 %v279_v40  ;;  %v7046_v38 = vld [vmem:[#allocation7 + $0x250] sm:$0xff] }
 0x1cb   :  { %4078 = vmatpush1.bf16.msra.mxu0 %v3219_v10  ;;  %v2689_v63 = vmul.f32 %v6990_v47, %v1669_v51  ;;  %v1623_v43 = vcvt.s32.f32 %v855_v58  ;;  %v758_v61 = vunpack.c.0.s8 %v278_v3  ;;  %v806_v11 = vunpack.c.1.s8 %v278_v3 }
 0x1cc   :  { %4038 = vmatprep.subr.bf16.mxu1 %v3170_v37  ;;  %v3172_v55 = vpack.c.bf16 %v2692_v13, %v2644_v49  ;;  %v1671_v8 = vcvt.s32.f32 %v903_v59  ;;  %v760_v0 = vunpack.c.0.s8 %v280_v54  ;;  %v808_v50 = vunpack.c.1.s8 %v280_v54 }
 0x1cd   :  { %v3169_v52 = vpack.c.bf16 %v2689_v63, %v2641_v31  ;;  %v2643_v35 = vmul.f32 %v6999_v42, %v1623_v43  ;;  %v1526_v2 = vcvt.s32.f32 %v758_v61  ;;  %v1574_v19 = vcvt.s32.f32 %v806_v11 }
 0x1ce   :  { %4079 = vmatprep.subr.bf16.mxu0 %v3172_v55  ;;  %v2691_v6 = vmul.f32 %v6999_v42, %v1671_v8  ;;  %v1528_v25 = vcvt.s32.f32 %v760_v0  ;;  %v1576_v28 = vcvt.s32.f32 %v808_v50  ;;  %v757_v41 = vunpack.c.0.s8 %v7018_v4 }
 0x1cf   :  { %4039 = vmatpush1.bf16.msra.mxu1 %v3169_v52  ;;  %v2546_v3 = vmul.f32 %v6975_v21, %v1526_v2  ;;  %v2594_v23 = vmul.f32 %v6975_v21, %v1574_v19  ;;  %v805_v46 = vunpack.c.1.s8 %v7018_v4  ;;  %v759_v54 = vunpack.c.0.s8 %v279_v40 }
 0x1d0   :  { %v3171_v20 = vpack.c.bf16 %v2691_v6, %v2643_v35  ;;  %v2548_v34 = vmul.f32 %v6980_v33, %v1528_v25  ;;  %v2596_v15 = vmul.f32 %v6980_v33, %v1576_v28  ;;  %v1525_v26 = vcvt.s32.f32 %v757_v41 }
 0x1d1   :  { %v3122_v17 = vpack.c.bf16 %v2594_v23, %v2546_v3  ;;  %v1573_v5 = vcvt.s32.f32 %v805_v46  ;;  %v807_v60 = vunpack.c.1.s8 %v279_v40  ;;  %v1527_v27 = vcvt.s32.f32 %v759_v54 }
 0x1d2   :  { %4080 = vmatpush1.bf16.msra.mxu0 %v3171_v20  ;;  %v3124_v39 = vpack.c.bf16 %v2596_v15, %v2548_v34  ;;  %v2545_v14 = vmul.f32 %v6990_v47, %v1525_v26  ;;  %v662_v4 = vunpack.c.2.s8 %v230_v18  ;;  %v710_v29 = vunpack.c.3.s8 %v230_v18 }
 0x1d3   :  { %4040 = vmatprep.subr.bf16.mxu1 %v3122_v17  ;;  %v2593_v12 = vmul.f32 %v6990_v47, %v1573_v5  ;;  %v1575_v48 = vcvt.s32.f32 %v807_v60  ;;  %v2547_v9 = vmul.f32 %v6999_v42, %v1527_v27  ;;  %v664_v24 = vunpack.c.2.s8 %v232_v7  ;;  %v7065_v60 = vld [vmem:[#allocation7 + $0xc8] sm:$0xff] }
 0x1d4   :  { %4081 = vmatprep.subr.bf16.mxu0 %v3124_v39  ;;  %v1430_v53 = vcvt.s32.f32 %v662_v4  ;;  %v1478_v22 = vcvt.s32.f32 %v710_v29  ;;  %v712_v40 = vunpack.c.3.s8 %v232_v7  ;;  %v661_v36 = vunpack.c.2.s8 %v7040_v30  ;;  %v7069_v29 = vld [vmem:[#allocation7 + $0xd8] sm:$0xff] }
 0x1d5   :  { %v3121_v10 = vpack.c.bf16 %v2593_v12, %v2545_v14  ;;  %v2595_v49 = vmul.f32 %v6999_v42, %v1575_v48  ;;  %v1432_v51 = vcvt.s32.f32 %v664_v24  ;;  %v709_v58 = vunpack.c.3.s8 %v7040_v30  ;;  %v7071_v12 = vpop.f32.mrf.mxu1  ;;  %v7073_v48 = vpop.f32.mrf.mxu0 }
 0x1d6   :  { %v2450_v37 = vmul.f32 %v6975_v21, %v1430_v53  ;;  %v2498_v13 = vmul.f32 %v6975_v21, %v1478_v22  ;;  %v1480_v31 = vcvt.s32.f32 %v712_v40  ;;  %v1429_v59 = vcvt.s32.f32 %v661_v36  ;;  %v7076_v22 = vld [vmem:[#allocation7 + $0xc0] sm:$0xff] }
 0x1d7   :  { %4041 = vmatpush1.bf16.msra.mxu1 %v3121_v10  ;;  %v3123_v63 = vpack.c.bf16 %v2595_v49, %v2547_v9  ;;  %v2452_v43 = vmul.f32 %v6980_v33, %v1432_v51  ;;  %v1477_v61 = vcvt.s32.f32 %v709_v58  ;;  %v663_v11 = vunpack.c.2.s8 %v7046_v38  ;;  %v7081_v51 = vpop.f32.mrf.mxu1  ;;  %v7083_v58 = vpop.f32.mrf.mxu0 }
 0x1d8   :  { %v3074_v55 = vpack.c.bf16 %v2498_v13, %v2450_v37  ;;  %v2500_v8 = vmul.f32 %v6980_v33, %v1480_v31  ;;  %v2449_v0 = vmul.f32 %v6990_v47, %v1429_v59  ;;  %v711_v50 = vunpack.c.3.s8 %v7046_v38 }
 0x1d9   :  { %4082 = vmatpush1.bf16.msra.mxu0 %v3123_v63  ;;  %v2497_v52 = vmul.f32 %v6990_v47, %v1477_v61  ;;  %v1431_v35 = vcvt.s32.f32 %v663_v11  ;;  %v566_v2 = vunpack.c.0.s8 %v230_v18  ;;  %v614_v19 = vunpack.c.1.s8 %v230_v18  ;;  %v7090_v11 = vld [vmem:[#allocation7 + $0xd0] sm:$0xff] }
 0x1da   :  { %4042 = vmatprep.subr.bf16.mxu1 %v3074_v55  ;;  %v3076_v6 = vpack.c.bf16 %v2500_v8, %v2452_v43  ;;  %v1479_v25 = vcvt.s32.f32 %v711_v50  ;;  %v568_v28 = vunpack.c.0.s8 %v232_v7  ;;  %v616_v41 = vunpack.c.1.s8 %v232_v7  ;;  %v3580_v55 = vpop.f32.mrf.mxu1  ;;  %v3621_v8 = vpop.f32.mrf.mxu0 }
 0x1db   :  { %v3073_v3 = vpack.c.bf16 %v2497_v52, %v2449_v0  ;;  %v2451_v23 = vmul.f32 %v6999_v42, %v1431_v35  ;;  %v1334_v46 = vcvt.s32.f32 %v566_v2  ;;  %v1382_v54 = vcvt.s32.f32 %v614_v19 }
 0x1dc   :  { %4083 = vmatprep.subr.bf16.mxu0 %v3076_v6  ;;  %v2499_v20 = vmul.f32 %v6999_v42, %v1479_v25  ;;  %v1336_v34 = vcvt.s32.f32 %v568_v28  ;;  %v1384_v15 = vcvt.s32.f32 %v616_v41  ;;  %v565_v26 = vunpack.c.0.s8 %v7040_v30  ;;  %v3581_v28 = vpop.f32.mrf.mxu1  ;;  %v3622_v41 = vpop.f32.mrf.mxu0 }
 0x1dd   :  { %4043 = vmatpush1.bf16.msra.mxu1 %v3073_v3  ;;  %v2354_v18 = vmul.f32 %v6975_v21, %v1334_v46  ;;  %v2402_v17 = vmul.f32 %v6975_v21, %v1382_v54  ;;  %v613_v5 = vunpack.c.1.s8 %v7040_v30  ;;  %v567_v7 = vunpack.c.0.s8 %v7046_v38 }
 0x1de   :  { %v3075_v27 = vpack.c.bf16 %v2499_v20, %v2451_v23  ;;  %v2356_v39 = vmul.f32 %v6980_v33, %v1336_v34  ;;  %v2404_v14 = vmul.f32 %v6980_v33, %v1384_v15  ;;  %v1333_v4 = vcvt.s32.f32 %v565_v26 }
 0x1df   :  { %v3026_v9 = vpack.c.bf16 %v2402_v17, %v2354_v18  ;;  %v1381_v24 = vcvt.s32.f32 %v613_v5  ;;  %v615_v30 = vunpack.c.1.s8 %v7046_v38  ;;  %v1335_v53 = vcvt.s32.f32 %v567_v7 }
 0x1e0   :  { %4084 = vmatpush1.bf16.msra.mxu0 %v3075_v27  ;;  %v3028_v40 = vpack.c.bf16 %v2404_v14, %v2356_v39  ;;  %v2353_v36 = vmul.f32 %v6990_v47, %v1333_v4  ;;  %v470_v10 = vunpack.c.2.s8 %v7065_v60  ;;  %v518_v49 = vunpack.c.3.s8 %v7065_v60 }
 0x1e1   :  { %4044 = vmatprep.subr.bf16.mxu1 %v3026_v9  ;;  %v2401_v37 = vmul.f32 %v6990_v47, %v1381_v24  ;;  %v1383_v13 = vcvt.s32.f32 %v615_v30  ;;  %v2355_v38 = vmul.f32 %v6999_v42, %v1335_v53  ;;  %v472_v31 = vunpack.c.2.s8 %v7069_v29 }
 0x1e2   :  { %4085 = vmatprep.subr.bf16.mxu0 %v3028_v40  ;;  %v1238_v59 = vcvt.s32.f32 %v470_v10  ;;  %v1286_v63 = vcvt.s32.f32 %v518_v49  ;;  %v520_v43 = vunpack.c.3.s8 %v7069_v29  ;;  %v469_v61 = vunpack.c.2.s8 %v7076_v22 }
 0x1e3   :  { %v3025_v0 = vpack.c.bf16 %v2401_v37, %v2353_v36  ;;  %v2403_v50 = vmul.f32 %v6999_v42, %v1383_v13  ;;  %v1240_v52 = vcvt.s32.f32 %v472_v31  ;;  %v517_v35 = vunpack.c.3.s8 %v7076_v22 }
 0x1e4   :  { %v2258_v2 = vmul.f32 %v6975_v21, %v1238_v59  ;;  %v2306_v19 = vmul.f32 %v6975_v21, %v1286_v63  ;;  %v1288_v6 = vcvt.s32.f32 %v520_v43  ;;  %v1237_v25 = vcvt.s32.f32 %v469_v61 }
 0x1e5   :  { %4045 = vmatpush1.bf16.msra.mxu1 %v3025_v0  ;;  %v3027_v3 = vpack.c.bf16 %v2403_v50, %v2355_v38  ;;  %v2260_v23 = vmul.f32 %v6980_v33, %v1240_v52  ;;  %v1285_v46 = vcvt.s32.f32 %v517_v35  ;;  %v471_v54 = vunpack.c.2.s8 %v7090_v11  ;;  %v7113_v38 = vld [vmem:[#allocation7 + $0x568] sm:$0xff]  ;;  %v7118_v50 = vld [vmem:[#allocation7 + $0x578] sm:$0xff] }
 0x1e6   :  { %v2978_v20 = vpack.c.bf16 %v2306_v19, %v2258_v2  ;;  %v2308_v34 = vmul.f32 %v6980_v33, %v1288_v6  ;;  %v2257_v15 = vmul.f32 %v6990_v47, %v1237_v25  ;;  %v519_v26 = vunpack.c.3.s8 %v7090_v11  ;;  %v7123_v2 = vld [vmem:[#allocation10] sm:$0xff] }
 0x1e7   :  { %4086 = vmatpush1.bf16.msra.mxu0 %v3027_v3  ;;  %v2305_v18 = vmul.f32 %v6990_v47, %v1285_v46  ;;  %v1239_v17 = vcvt.s32.f32 %v471_v54  ;;  %v374_v5 = vunpack.c.0.s8 %v7065_v60  ;;  %v422_v7 = vunpack.c.1.s8 %v7065_v60  ;;  %v7133_v46 = vld [vmem:[#allocation7 + $0x560] sm:$0xff] }
 0x1e8   :  { %4046 = vmatprep.subr.bf16.mxu1 %v2978_v20  ;;  %v2980_v27 = vpack.c.bf16 %v2308_v34, %v2260_v23  ;;  %v1287_v39 = vcvt.s32.f32 %v519_v26  ;;  %v376_v14 = vunpack.c.0.s8 %v7069_v29  ;;  %v424_v4 = vunpack.c.1.s8 %v7069_v29 }
 0x1e9   :  { %v2977_v9 = vpack.c.bf16 %v2305_v18, %v2257_v15  ;;  %v2259_v24 = vmul.f32 %v6999_v42, %v1239_v17  ;;  %v1142_v30 = vcvt.s32.f32 %v374_v5  ;;  %v1190_v53 = vcvt.s32.f32 %v422_v7 }
 0x1ea   :  { %4087 = vmatprep.subr.bf16.mxu0 %v2980_v27  ;;  %v2307_v40 = vmul.f32 %v6999_v42, %v1287_v39  ;;  %v1144_v36 = vcvt.s32.f32 %v376_v14  ;;  %v1192_v10 = vcvt.s32.f32 %v424_v4  ;;  %v373_v49 = vunpack.c.0.s8 %v7076_v22  ;;  %v7148_v14 = vld [vmem:[#allocation7 + $0x570] sm:$0xff] }
 0x1eb   :  { %4047 = vmatpush1.bf16.msra.mxu1 %v2977_v9  ;;  %v2162_v60 = vmul.f32 %v6975_v21, %v1142_v30  ;;  %v2210_v37 = vmul.f32 %v6975_v21, %v1190_v53  ;;  %v421_v13 = vunpack.c.1.s8 %v7076_v22  ;;  %v375_v29 = vunpack.c.0.s8 %v7090_v11 }
 0x1ec   :  { %v2979_v31 = vpack.c.bf16 %v2307_v40, %v2259_v24  ;;  %v2164_v59 = vmul.f32 %v6980_v33, %v1144_v36  ;;  %v2212_v63 = vmul.f32 %v6980_v33, %v1192_v10  ;;  %v1141_v43 = vcvt.s32.f32 %v373_v49 }
 0x1ed   :  { %v2930_v61 = vpack.c.bf16 %v2210_v37, %v2162_v60  ;;  %v1189_v55 = vcvt.s32.f32 %v421_v13  ;;  %v423_v8 = vunpack.c.1.s8 %v7090_v11  ;;  %v1143_v0 = vcvt.s32.f32 %v375_v29  ;;  %v8592_v11 = vld [vmem:[#allocation20_spill] sm:$0xff] }
 0x1ee   :  { %4088 = vmatpush1.bf16.msra.mxu0 %v2979_v31  ;;  %v2932_v21 = vpack.c.bf16 %v2212_v63, %v2164_v59  ;;  %v2161_v22 = vmul.f32 %v6990_v47, %v1141_v43  ;;  %v1050_v52 = vunpack.c.2.s8 %v7113_v38  ;;  %v1098_v35 = vunpack.c.3.s8 %v7113_v38 }
 0x1ef   :  { %4048 = vmatprep.subr.bf16.mxu1 %v2930_v61  ;;  %v2209_v33 = vmul.f32 %v6990_v47, %v1189_v55  ;;  %v1191_v19 = vcvt.s32.f32 %v423_v8  ;;  %v2163_v6 = vmul.f32 %v6999_v42, %v1143_v0  ;;  %v7129_v25 = vrot.slane %v6962_v44, %v8592_v11  ;;  %v8593_v47 = vld [vmem:[#allocation21_spill] sm:$0xff] }
 0x1f0   :  { %4089 = vmatprep.subr.bf16.mxu0 %v2932_v21  ;;  %v1818_v28 = vcvt.s32.f32 %v1050_v52  ;;  %v1866_v41 = vcvt.s32.f32 %v1098_v35  ;;  %v1052_v3 = vunpack.c.2.s8 %v7118_v50  ;;  %v1100_v23 = vunpack.c.3.s8 %v7118_v50 }
 0x1f1   :  { %v2929_v54 = vpack.c.bf16 %v2209_v33, %v2161_v22  ;;  %v2211_v20 = vmul.f32 %v6999_v42, %v1191_v19  ;;  %v7138_v34 = vrot.slane %v6962_v44, %v8593_v47  ;;  %v3305_v15 = vrot.slane %v7123_v2, %v8590_v56 }
 0x1f2   :  { %v2838_v26 = vmul.f32 %v7129_v25, %v1818_v28  ;;  %v2886_v18 = vmul.f32 %v7129_v25, %v1866_v41  ;;  %v1820_v17 = vcvt.s32.f32 %v1052_v3  ;;  %v1868_v5 = vcvt.s32.f32 %v1100_v23 }
 0x1f3   :  { %4049 = vmatpush1.bf16.msra.mxu1 %v2929_v54  ;;  %v2931_v7 = vpack.c.bf16 %v2211_v20, %v2163_v6  ;;  %v3577_v27 = vadd.f32 %v7071_v12, %v3305_v15  ;;  %v3313_v42 = vrot.slane %v7123_v2, %v8591_v57  ;;  %v1049_v39 = vunpack.c.2.s8 %v7133_v46  ;;  %v8594_v12 = vld [vmem:[#allocation22_spill] sm:$0xff]  ;;  %v7183_v54 = vld [vmem:[#allocation7 + $0x3e8] sm:$0xff] }
 0x1f4   :  { %v3270_v4 = vpack.c.bf16 %v2886_v18, %v2838_v26  ;;  %v2840_v9 = vmul.f32 %v7138_v34, %v1820_v17  ;;  %v2888_v24 = vmul.f32 %v7138_v34, %v1868_v5  ;;  %v1097_v30 = vunpack.c.3.s8 %v7133_v46 }
 0x1f5   :  { %4090 = vmatpush1.bf16.msra.mxu0 %v2931_v7  ;;  %v4526_v53 = vmax.f32 %v3577_v27, 0.0  ;;  %v3618_v40 = vadd.f32 %v7073_v48, %v3313_v42  ;;  %v1817_v36 = vcvt.s32.f32 %v1049_v39  ;;  %v7156_v10 = vrot.slane %v6962_v44, %v8594_v12  ;;  %v7191_v7 = vld [vmem:[#allocation7 + $0x3f8] sm:$0xff]  ;;  %v7193_v27 = vpop.f32.mrf.mxu1  ;;  %v7195_v42 = vpop.f32.mrf.mxu0 }
 0x1f6   :  { %4067 = vmatmul.mubr.bf16.vlgmr.msra.gmra.mxu1 %v8582_v32  ;;  %4116 = vmatprep.subr.bf16.mxu1 %v3270_v4  ;;  %v3272_v49 = vpack.c.bf16 %v2888_v24, %v2840_v9  ;;  %v1865_v60 = vcvt.s32.f32 %v1097_v30  ;;  %v1051_v37 = vunpack.c.2.s8 %v7148_v14  ;;  %v1099_v13 = vunpack.c.3.s8 %v7148_v14 }
 0x1f7   :  { %4574 = vst [vmem:[#allocation11] sm:$0xff] %v4526_v53  ;;  %v4528_v29 = vmax.f32 %v3618_v40, 0.0  ;;  %v2837_v31 = vmul.f32 %v7156_v10, %v1817_v36  ;;  %v7164_v48 = vrot.slane %v6962_v44, %v8543_v16  ;;  %v3309_v59 = vrot.slane %v7123_v2, %v8588_v45  ;;  %4148 = vmatprep.mubr.bf16.mxu1 %v8584_v62  ;;  %v7201_v36 = vld [vmem:[#allocation7 + $0x3e0] sm:$0xff] }
 0x1f8   :  { %4108 = vmatmul.mubr.bf16.vlgmr.msra.gmra.mxu0 %v8582_v32  ;;  %4157 = vmatprep.subr.bf16.mxu0 %v3272_v49  ;;  %v2885_v63 = vmul.f32 %v7156_v10, %v1865_v60  ;;  %v1819_v43 = vcvt.s32.f32 %v1051_v37  ;;  %v1867_v61 = vcvt.s32.f32 %v1099_v13  ;;  %v3317_v55 = vrot.slane %v7123_v2, %v8589_v1  ;;  %v7205_v49 = vpop.f32.mrf.mxu0 }
 0x1f9   :  { %4576 = vst [vmem:[#allocation11 + $0x10] sm:$0xff] %v4528_v29  ;;  %v3579_v8 = vadd.f32 %v7081_v51, %v3309_v59  ;;  %v954_v44 = vunpack.c.0.s8 %v7113_v38  ;;  %v1002_v0 = vunpack.c.1.s8 %v7113_v38  ;;  %v956_v21 = vunpack.c.0.s8 %v7118_v50  ;;  %4189 = vmatprep.mubr.bf16.mxu0 %v8584_v62 }
 0x1fa   :  { %v3269_v22 = vpack.c.bf16 %v2885_v63, %v2837_v31  ;;  %v2839_v52 = vmul.f32 %v7164_v48, %v1819_v43  ;;  %v2887_v35 = vmul.f32 %v7164_v48, %v1867_v61  ;;  %v3620_v33 = vadd.f32 %v7083_v58, %v3317_v55  ;;  %v283_v61 = vld [vmem:[#allocation7 + $0x3f0] sm:$0xff] }
 0x1fb   :  { %v4527_v19 = vmax.f32 %v3579_v8, 0.0  ;;  %v1722_v6 = vcvt.s32.f32 %v954_v44  ;;  %v1770_v28 = vcvt.s32.f32 %v1002_v0  ;;  %v1004_v51 = vunpack.c.1.s8 %v7118_v50  ;;  %v3703_v8 = vpop.f32.mrf.mxu0 }
 0x1fc   :  { %4117 = vmatpush1.bf16.msra.mxu1 %v3269_v22  ;;  %v3271_v41 = vpack.c.bf16 %v2887_v35, %v2839_v52  ;;  %v4529_v3 = vmax.f32 %v3620_v33, 0.0  ;;  %v1724_v38 = vcvt.s32.f32 %v956_v21  ;;  %v953_v23 = vunpack.c.0.s8 %v7133_v46 }
 0x1fd   :  { %4575 = vst [vmem:[#allocation11 + $0x8] sm:$0xff] %v4527_v19  ;;  %v2742_v20 = vmul.f32 %v7129_v25, %v1722_v6  ;;  %v2790_v15 = vmul.f32 %v7129_v25, %v1770_v28  ;;  %v1772_v26 = vcvt.s32.f32 %v1004_v51  ;;  %v1001_v58 = vunpack.c.1.s8 %v7133_v46  ;;  %v3704_v28 = vpop.f32.mrf.mxu0 }
 0x1fe   :  { %4158 = vmatpush1.bf16.msra.mxu0 %v3271_v41  ;;  %4577 = vst [vmem:[#allocation11 + $0x18] sm:$0xff] %v4529_v3  ;;  %v2744_v50 = vmul.f32 %v7138_v34, %v1724_v38  ;;  %v1721_v18 = vcvt.s32.f32 %v953_v23  ;;  %v955_v17 = vunpack.c.0.s8 %v7148_v14  ;;  %v1003_v5 = vunpack.c.1.s8 %v7148_v14  ;;  %v7203_v14 = vpop.f32.mrf.mxu1  ;;  %v233_v28 = vld [vmem:[#allocation7 + $0x260] sm:$0xff] }
 0x1ff   :  { %v3222_v39 = vpack.c.bf16 %v2790_v15, %v2742_v20  ;;  %v2792_v4 = vmul.f32 %v7138_v34, %v1772_v26  ;;  %v1769_v9 = vcvt.s32.f32 %v1001_v58  ;;  %v858_v46 = vunpack.c.2.s8 %v7183_v54 }
 0x200   :  { %v2741_v24 = vmul.f32 %v7156_v10, %v1721_v18  ;;  %v1723_v30 = vcvt.s32.f32 %v955_v17  ;;  %v1771_v53 = vcvt.s32.f32 %v1003_v5  ;;  %v906_v40 = vunpack.c.3.s8 %v7183_v54  ;;  %v3662_v55 = vpop.f32.mrf.mxu1 }
 0x201   :  { %4118 = vmatprep.subr.bf16.mxu1 %v3222_v39  ;;  %v3224_v60 = vpack.c.bf16 %v2792_v4, %v2744_v50  ;;  %v2789_v37 = vmul.f32 %v7156_v10, %v1769_v9  ;;  %v1626_v13 = vcvt.s32.f32 %v858_v46  ;;  %v860_v29 = vunpack.c.2.s8 %v7191_v7 }
 0x202   :  { %v2743_v31 = vmul.f32 %v7164_v48, %v1723_v30  ;;  %v2791_v59 = vmul.f32 %v7164_v48, %v1771_v53  ;;  %v1674_v63 = vcvt.s32.f32 %v906_v40  ;;  %v908_v43 = vunpack.c.3.s8 %v7191_v7  ;;  %v3663_v6 = vpop.f32.mrf.mxu1 }
 0x203   :  { %4159 = vmatprep.subr.bf16.mxu0 %v3224_v60  ;;  %v3221_v44 = vpack.c.bf16 %v2789_v37, %v2741_v24  ;;  %v2646_v0 = vmul.f32 %v7129_v25, %v1626_v13  ;;  %v1628_v21 = vcvt.s32.f32 %v860_v29  ;;  %v857_v22 = vunpack.c.2.s8 %v7201_v36  ;;  %v234_v13 = vld [vmem:[#allocation7 + $0x268] sm:$0xff] }
 0x204   :  { %v3223_v52 = vpack.c.bf16 %v2791_v59, %v2743_v31  ;;  %v2694_v35 = vmul.f32 %v7129_v25, %v1674_v63  ;;  %v1676_v33 = vcvt.s32.f32 %v908_v43  ;;  %v905_v19 = vunpack.c.3.s8 %v7201_v36 }
 0x205   :  { %4119 = vmatpush1.bf16.msra.mxu1 %v3221_v44  ;;  %v2648_v51 = vmul.f32 %v7138_v34, %v1628_v21  ;;  %v1625_v41 = vcvt.s32.f32 %v857_v22  ;;  %v859_v3 = vunpack.c.2.s8 %v283_v61  ;;  %v907_v38 = vunpack.c.3.s8 %v283_v61  ;;  %v236_v44 = vld [vmem:[#allocation7 + $0x278] sm:$0xff] }
 0x206   :  { %4160 = vmatpush1.bf16.msra.mxu0 %v3223_v52  ;;  %v3174_v23 = vpack.c.bf16 %v2694_v35, %v2646_v0  ;;  %v2696_v20 = vmul.f32 %v7138_v34, %v1676_v33  ;;  %v1673_v15 = vcvt.s32.f32 %v905_v19  ;;  %v762_v26 = vunpack.c.0.s8 %v7183_v54 }
 0x207   :  { %v2645_v58 = vmul.f32 %v7156_v10, %v1625_v41  ;;  %v1627_v50 = vcvt.s32.f32 %v859_v3  ;;  %v1675_v18 = vcvt.s32.f32 %v907_v38  ;;  %v810_v17 = vunpack.c.1.s8 %v7183_v54 }
 0x208   :  { %4120 = vmatprep.subr.bf16.mxu1 %v3174_v23  ;;  %v3176_v5 = vpack.c.bf16 %v2696_v20, %v2648_v51  ;;  %v2693_v39 = vmul.f32 %v7156_v10, %v1673_v15  ;;  %v1530_v4 = vcvt.s32.f32 %v762_v26  ;;  %v764_v9 = vunpack.c.0.s8 %v7191_v7  ;;  %v235_v15 = vld [vmem:[#allocation7 + $0x270] sm:$0xff] }
 0x209   :  { %v2647_v46 = vmul.f32 %v7164_v48, %v1627_v50  ;;  %v2695_v24 = vmul.f32 %v7164_v48, %v1675_v18  ;;  %v1578_v30 = vcvt.s32.f32 %v810_v17  ;;  %v812_v53 = vunpack.c.1.s8 %v7191_v7 }
 0x20a   :  { %4161 = vmatprep.subr.bf16.mxu0 %v3176_v5  ;;  %v3173_v40 = vpack.c.bf16 %v2693_v39, %v2645_v58  ;;  %v2550_v60 = vmul.f32 %v7129_v25, %v1530_v4  ;;  %v1532_v37 = vcvt.s32.f32 %v764_v9  ;;  %v761_v54 = vunpack.c.0.s8 %v7201_v36 }
 0x20b   :  { %v3175_v29 = vpack.c.bf16 %v2695_v24, %v2647_v46  ;;  %v2598_v31 = vmul.f32 %v7129_v25, %v1578_v30  ;;  %v1580_v59 = vcvt.s32.f32 %v812_v53  ;;  %v809_v63 = vunpack.c.1.s8 %v7201_v36 }
 0x20c   :  { %4121 = vmatpush1.bf16.msra.mxu1 %v3173_v40  ;;  %v2552_v43 = vmul.f32 %v7138_v34, %v1532_v37  ;;  %v1529_v55 = vcvt.s32.f32 %v761_v54  ;;  %v763_v8 = vunpack.c.0.s8 %v283_v61  ;;  %v811_v7 = vunpack.c.1.s8 %v283_v61 }
 0x20d   :  { %4162 = vmatpush1.bf16.msra.mxu0 %v3175_v29  ;;  %v3126_v0 = vpack.c.bf16 %v2598_v31, %v2550_v60  ;;  %v2600_v21 = vmul.f32 %v7138_v34, %v1580_v59  ;;  %v1577_v22 = vcvt.s32.f32 %v809_v63  ;;  %v666_v52 = vunpack.c.2.s8 %v234_v13 }
 0x20e   :  { %v2549_v35 = vmul.f32 %v7156_v10, %v1529_v55  ;;  %v1531_v33 = vcvt.s32.f32 %v763_v8  ;;  %v1579_v19 = vcvt.s32.f32 %v811_v7  ;;  %v714_v6 = vunpack.c.3.s8 %v234_v13 }
 0x20f   :  { %4122 = vmatprep.subr.bf16.mxu1 %v3126_v0  ;;  %v3128_v36 = vpack.c.bf16 %v2600_v21, %v2552_v43  ;;  %v2597_v51 = vmul.f32 %v7156_v10, %v1577_v22  ;;  %v1434_v41 = vcvt.s32.f32 %v666_v52  ;;  %v668_v3 = vunpack.c.2.s8 %v236_v44 }
 0x210   :  { %v2551_v61 = vmul.f32 %v7164_v48, %v1531_v33  ;;  %v2599_v38 = vmul.f32 %v7164_v48, %v1579_v19  ;;  %v1482_v23 = vcvt.s32.f32 %v714_v6  ;;  %v716_v20 = vunpack.c.3.s8 %v236_v44  ;;  %v7245_v6 = vld [vmem:[#allocation7 + $0xe8] sm:$0xff] }
 0x211   :  { %4163 = vmatprep.subr.bf16.mxu0 %v3128_v36  ;;  %v3125_v26 = vpack.c.bf16 %v2597_v51, %v2549_v35  ;;  %v2454_v58 = vmul.f32 %v7129_v25, %v1434_v41  ;;  %v1436_v50 = vcvt.s32.f32 %v668_v3  ;;  %v665_v18 = vunpack.c.2.s8 %v233_v28 }
 0x212   :  { %v3127_v17 = vpack.c.bf16 %v2599_v38, %v2551_v61  ;;  %v2502_v5 = vmul.f32 %v7129_v25, %v1482_v23  ;;  %v1484_v39 = vcvt.s32.f32 %v716_v20  ;;  %v713_v4 = vunpack.c.3.s8 %v233_v28 }
 0x213   :  { %4123 = vmatpush1.bf16.msra.mxu1 %v3125_v26  ;;  %v2456_v9 = vmul.f32 %v7138_v34, %v1436_v50  ;;  %v1433_v46 = vcvt.s32.f32 %v665_v18  ;;  %v667_v24 = vunpack.c.2.s8 %v235_v15  ;;  %v715_v30 = vunpack.c.3.s8 %v235_v15 }
 0x214   :  { %4164 = vmatpush1.bf16.msra.mxu0 %v3127_v17  ;;  %v3078_v53 = vpack.c.bf16 %v2502_v5, %v2454_v58  ;;  %v2504_v40 = vmul.f32 %v7138_v34, %v1484_v39  ;;  %v1481_v60 = vcvt.s32.f32 %v713_v4  ;;  %v570_v37 = vunpack.c.0.s8 %v234_v13  ;;  %v7255_v39 = vld [vmem:[#allocation7 + $0xe0] sm:$0xff] }
 0x215   :  { %v2453_v54 = vmul.f32 %v7156_v10, %v1433_v46  ;;  %v1435_v29 = vcvt.s32.f32 %v667_v24  ;;  %v1483_v31 = vcvt.s32.f32 %v715_v30  ;;  %v618_v59 = vunpack.c.1.s8 %v234_v13 }
 0x216   :  { %4124 = vmatprep.subr.bf16.mxu1 %v3078_v53  ;;  %v3080_v63 = vpack.c.bf16 %v2504_v40, %v2456_v9  ;;  %v2501_v43 = vmul.f32 %v7156_v10, %v1481_v60  ;;  %v1338_v55 = vcvt.s32.f32 %v570_v37  ;;  %v572_v8 = vunpack.c.0.s8 %v236_v44  ;;  %v7262_v60 = vld [vmem:[#allocation7 + $0xf0] sm:$0xff]  ;;  %v7264_v37 = vpop.f32.mrf.mxu1 }
 0x217   :  { %v2455_v7 = vmul.f32 %v7164_v48, %v1435_v29  ;;  %v2503_v0 = vmul.f32 %v7164_v48, %v1483_v31  ;;  %v1386_v21 = vcvt.s32.f32 %v618_v59  ;;  %v620_v22 = vunpack.c.1.s8 %v236_v44  ;;  %v7249_v44 = vld [vmem:[#allocation7 + $0xf8] sm:$0xff] }
 0x218   :  { %4165 = vmatprep.subr.bf16.mxu0 %v3080_v63  ;;  %v3077_v52 = vpack.c.bf16 %v2501_v43, %v2453_v54  ;;  %v2358_v35 = vmul.f32 %v7129_v25, %v1338_v55  ;;  %v1340_v33 = vcvt.s32.f32 %v572_v8  ;;  %v569_v19 = vunpack.c.0.s8 %v233_v28  ;;  %v7266_v54 = vpop.f32.mrf.mxu0 }
 0x219   :  { %v3079_v13 = vpack.c.bf16 %v2503_v0, %v2455_v7  ;;  %v2406_v36 = vmul.f32 %v7129_v25, %v1386_v21  ;;  %v1388_v51 = vcvt.s32.f32 %v620_v22  ;;  %v617_v41 = vunpack.c.1.s8 %v233_v28  ;;  %v7272_v0 = vpop.f32.mrf.mxu1 }
 0x21a   :  { %4125 = vmatpush1.bf16.msra.mxu1 %v3077_v52  ;;  %v2360_v3 = vmul.f32 %v7138_v34, %v1340_v33  ;;  %v1337_v61 = vcvt.s32.f32 %v569_v19  ;;  %v571_v38 = vunpack.c.0.s8 %v235_v15  ;;  %v619_v23 = vunpack.c.1.s8 %v235_v15  ;;  %v7274_v21 = vpop.f32.mrf.mxu0 }
 0x21b   :  { %4166 = vmatpush1.bf16.msra.mxu0 %v3079_v13  ;;  %v3030_v20 = vpack.c.bf16 %v2406_v36, %v2358_v35  ;;  %v2408_v26 = vmul.f32 %v7138_v34, %v1388_v51  ;;  %v1385_v58 = vcvt.s32.f32 %v617_v41  ;;  %v474_v50 = vunpack.c.2.s8 %v7245_v6  ;;  %v3744_v41 = vpop.f32.mrf.mxu1 }
 0x21c   :  { %v2357_v18 = vmul.f32 %v7156_v10, %v1337_v61  ;;  %v1339_v17 = vcvt.s32.f32 %v571_v38  ;;  %v1387_v5 = vcvt.s32.f32 %v619_v23  ;;  %v522_v28 = vunpack.c.3.s8 %v7245_v6 }
 0x21d   :  { %4126 = vmatprep.subr.bf16.mxu1 %v3030_v20  ;;  %v3032_v4 = vpack.c.bf16 %v2408_v26, %v2360_v3  ;;  %v2405_v15 = vmul.f32 %v7156_v10, %v1385_v58  ;;  %v1242_v9 = vcvt.s32.f32 %v474_v50  ;;  %v476_v46 = vunpack.c.2.s8 %v7249_v44  ;;  %v3785_v3 = vpop.f32.mrf.mxu0 }
 0x21e   :  { %v2359_v24 = vmul.f32 %v7164_v48, %v1339_v17  ;;  %v2407_v30 = vmul.f32 %v7164_v48, %v1387_v5  ;;  %v1290_v53 = vcvt.s32.f32 %v522_v28  ;;  %v524_v40 = vunpack.c.3.s8 %v7249_v44  ;;  %v3745_v17 = vpop.f32.mrf.mxu1 }
 0x21f   :  { %4167 = vmatprep.subr.bf16.mxu0 %v3032_v4  ;;  %v3029_v29 = vpack.c.bf16 %v2405_v15, %v2357_v18  ;;  %v2262_v31 = vmul.f32 %v7129_v25, %v1242_v9  ;;  %v1244_v59 = vcvt.s32.f32 %v476_v46  ;;  %v473_v63 = vunpack.c.2.s8 %v7255_v39  ;;  %v3786_v5 = vpop.f32.mrf.mxu0 }
 0x220   :  { %v3031_v43 = vpack.c.bf16 %v2407_v30, %v2359_v24  ;;  %v2310_v55 = vmul.f32 %v7129_v25, %v1290_v53  ;;  %v1292_v8 = vcvt.s32.f32 %v524_v40  ;;  %v521_v7 = vunpack.c.3.s8 %v7255_v39 }
 0x221   :  { %4127 = vmatpush1.bf16.msra.mxu1 %v3029_v29  ;;  %v2264_v22 = vmul.f32 %v7138_v34, %v1244_v59  ;;  %v1241_v52 = vcvt.s32.f32 %v473_v63  ;;  %v475_v35 = vunpack.c.2.s8 %v7262_v60  ;;  %v523_v33 = vunpack.c.3.s8 %v7262_v60 }
 0x222   :  { %4168 = vmatpush1.bf16.msra.mxu0 %v3031_v43  ;;  %v2982_v19 = vpack.c.bf16 %v2310_v55, %v2262_v31  ;;  %v2312_v13 = vmul.f32 %v7138_v34, %v1292_v8  ;;  %v1289_v36 = vcvt.s32.f32 %v521_v7  ;;  %v378_v51 = vunpack.c.0.s8 %v7245_v6  ;;  %v7295_v55 = vld [vmem:[#allocation7 + $0x588] sm:$0xff] }
 0x223   :  { %v2261_v61 = vmul.f32 %v7156_v10, %v1241_v52  ;;  %v1243_v38 = vcvt.s32.f32 %v475_v35  ;;  %v1291_v23 = vcvt.s32.f32 %v523_v33  ;;  %v426_v20 = vunpack.c.1.s8 %v7245_v6 }
 0x224   :  { %4128 = vmatprep.subr.bf16.mxu1 %v2982_v19  ;;  %v2984_v26 = vpack.c.bf16 %v2312_v13, %v2264_v22  ;;  %v2309_v58 = vmul.f32 %v7156_v10, %v1289_v36  ;;  %v1146_v50 = vcvt.s32.f32 %v378_v51  ;;  %v380_v18 = vunpack.c.0.s8 %v7249_v44  ;;  %v7303_v19 = vld [vmem:[#allocation8 + $0x20] sm:$0xff]  ;;  %v7308_v51 = vld [vmem:[#allocation7 + $0x598] sm:$0xff] }
 0x225   :  { %v2263_v28 = vmul.f32 %v7164_v48, %v1243_v38  ;;  %v2311_v4 = vmul.f32 %v7164_v48, %v1291_v23  ;;  %v1194_v15 = vcvt.s32.f32 %v426_v20  ;;  %v428_v9 = vunpack.c.1.s8 %v7249_v44  ;;  %v7314_v23 = vld [vmem:[#allocation7 + $0x580] sm:$0xff] }
 0x226   :  { %4169 = vmatprep.subr.bf16.mxu0 %v2984_v26  ;;  %v2981_v46 = vpack.c.bf16 %v2309_v58, %v2261_v61  ;;  %v2166_v6 = vmul.f32 %v7129_v25, %v1146_v50  ;;  %v1148_v24 = vcvt.s32.f32 %v380_v18  ;;  %v377_v30 = vunpack.c.0.s8 %v7255_v39 }
 0x227   :  { %v2983_v53 = vpack.c.bf16 %v2311_v4, %v2263_v28  ;;  %v2214_v40 = vmul.f32 %v7129_v25, %v1194_v15  ;;  %v1196_v29 = vcvt.s32.f32 %v428_v9  ;;  %v425_v31 = vunpack.c.1.s8 %v7255_v39 }
 0x228   :  { %4129 = vmatpush1.bf16.msra.mxu1 %v2981_v46  ;;  %v2168_v59 = vmul.f32 %v7138_v34, %v1148_v24  ;;  %v1145_v63 = vcvt.s32.f32 %v377_v30  ;;  %v379_v43 = vunpack.c.0.s8 %v7262_v60  ;;  %v427_v44 = vunpack.c.1.s8 %v7262_v60 }
 0x229   :  { %4170 = vmatpush1.bf16.msra.mxu0 %v2983_v53  ;;  %v2934_v8 = vpack.c.bf16 %v2214_v40, %v2166_v6  ;;  %v2216_v7 = vmul.f32 %v7138_v34, %v1196_v29  ;;  %v1193_v22 = vcvt.s32.f32 %v425_v31  ;;  %v3321_v25 = vrot.slane %v7123_v2, %v8594_v12 }
 0x22a   :  { %v2165_v39 = vmul.f32 %v7156_v10, %v1145_v63  ;;  %v1147_v52 = vcvt.s32.f32 %v379_v43  ;;  %v1195_v35 = vcvt.s32.f32 %v427_v44  ;;  %v3329_v33 = vrot.slane %v7123_v2, %v8543_v16 }
 0x22b   :  { %4130 = vmatprep.subr.bf16.mxu1 %v2934_v8  ;;  %v2936_v60 = vpack.c.bf16 %v2216_v7, %v2168_v59  ;;  %v2213_v13 = vmul.f32 %v7156_v10, %v1193_v22  ;;  %v3659_v36 = vadd.f32 %v7193_v27, %v3321_v25  ;;  %v1054_v34 = vunpack.c.2.s8 %v7295_v55 }
 0x22c   :  { %v2167_v41 = vmul.f32 %v7164_v48, %v1147_v52  ;;  %v2215_v3 = vmul.f32 %v7164_v48, %v1195_v35  ;;  %v3700_v61 = vadd.f32 %v7195_v42, %v3329_v33  ;;  %v1102_v38 = vunpack.c.3.s8 %v7295_v55  ;;  %v7321_v48 = vld [vmem:[#allocation7 + $0x590] sm:$0xff] }
 0x22d   :  { %4171 = vmatprep.subr.bf16.mxu0 %v2936_v60  ;;  %v2933_v20 = vpack.c.bf16 %v2213_v13, %v2165_v39  ;;  %v4530_v26 = vmax.f32 %v3659_v36, 0.0  ;;  %v1822_v10 = vcvt.s32.f32 %v1054_v34  ;;  %v7318_v27 = vrot.slane %v7303_v19, %v8588_v45 }
 0x22e   :  { %v2935_v58 = vpack.c.bf16 %v2215_v3, %v2167_v41  ;;  %v4532_v50 = vmax.f32 %v3700_v61, 0.0  ;;  %v1870_v18 = vcvt.s32.f32 %v1102_v38  ;;  %v1056_v17 = vunpack.c.2.s8 %v7308_v51 }
 0x22f   :  { %4131 = vmatpush1.bf16.msra.mxu1 %v2933_v20  ;;  %4578 = vst [vmem:[#allocation11 + $0x20] sm:$0xff] %v4530_v26  ;;  %v2842_v42 = vmul.f32 %v7318_v27, %v1822_v10  ;;  %v1104_v5 = vunpack.c.3.s8 %v7308_v51  ;;  %v7327_v28 = vrot.slane %v7303_v19, %v8589_v1  ;;  %v1053_v4 = vunpack.c.2.s8 %v7314_v23  ;;  %v7362_v26 = vld [vmem:[#allocation7 + $0x408] sm:$0xff] }
 0x230   :  { %4172 = vmatpush1.bf16.msra.mxu0 %v2935_v58  ;;  %4580 = vst [vmem:[#allocation11 + $0x30] sm:$0xff] %v4532_v50  ;;  %v2890_v15 = vmul.f32 %v7318_v27, %v1870_v18  ;;  %v1824_v9 = vcvt.s32.f32 %v1056_v17  ;;  %v1101_v46 = vunpack.c.3.s8 %v7314_v23  ;;  %v7334_v6 = vrot.slane %v7303_v19, %v8590_v56 }
 0x231   :  { %v1872_v24 = vcvt.s32.f32 %v1104_v5  ;;  %v1821_v30 = vcvt.s32.f32 %v1053_v4  ;;  %v1055_v53 = vunpack.c.2.s8 %v7321_v48  ;;  %v1103_v40 = vunpack.c.3.s8 %v7321_v48 }
 0x232   :  { %4149 = vmatmul.mubr.bf16.vlgmr.msra.gmra.mxu1 %v8582_v32  ;;  %v3274_v29 = vpack.c.bf16 %v2890_v15, %v2842_v42  ;;  %v2844_v31 = vmul.f32 %v7327_v28, %v1824_v9  ;;  %v1869_v59 = vcvt.s32.f32 %v1101_v46  ;;  %v7342_v63 = vrot.slane %v7303_v19, %v8591_v57  ;;  %v7371_v15 = vld [vmem:[#allocation7 + $0x418] sm:$0xff] }
 0x233   :  { %4190 = vmatmul.mubr.bf16.vlgmr.msra.gmra.mxu0 %v8582_v32  ;;  %v2892_v43 = vmul.f32 %v7327_v28, %v1872_v24  ;;  %v2841_v44 = vmul.f32 %v7334_v6, %v1821_v30  ;;  %v1823_v8 = vcvt.s32.f32 %v1055_v53  ;;  %v1871_v7 = vcvt.s32.f32 %v1103_v40  ;;  %4230 = vmatprep.mubr.bf16.mxu1 %v8584_v62 }
 0x234   :  { %4198 = vmatprep.subr.bf16.mxu1 %v3274_v29  ;;  %v2889_v22 = vmul.f32 %v7334_v6, %v1869_v59  ;;  %v3325_v25 = vrot.slane %v7123_v2, %v8592_v11  ;;  %v3333_v39 = vrot.slane %v7123_v2, %v8593_v47  ;;  %v958_v52 = vunpack.c.0.s8 %v7295_v55  ;;  %4271 = vmatprep.mubr.bf16.mxu0 %v8584_v62 }
 0x235   :  { %v3276_v35 = vpack.c.bf16 %v2892_v43, %v2844_v31  ;;  %v2843_v33 = vmul.f32 %v7342_v63, %v1823_v8  ;;  %v2891_v60 = vmul.f32 %v7342_v63, %v1871_v7  ;;  %v1006_v13 = vunpack.c.1.s8 %v7295_v55  ;;  %v7377_v31 = vld [vmem:[#allocation7 + $0x400] sm:$0xff] }
 0x236   :  { %v3273_v36 = vpack.c.bf16 %v2889_v22, %v2841_v44  ;;  %v3661_v34 = vadd.f32 %v7203_v14, %v3325_v25  ;;  %v3702_v41 = vadd.f32 %v7205_v49, %v3333_v39  ;;  %v1726_v3 = vcvt.s32.f32 %v958_v52  ;;  %v7384_v39 = vld [vmem:[#allocation7 + $0x410] sm:$0xff] }
 0x237   :  { %4239 = vmatprep.subr.bf16.mxu0 %v3276_v35  ;;  %v3275_v61 = vpack.c.bf16 %v2891_v60, %v2843_v33  ;;  %v1774_v2 = vcvt.s32.f32 %v1006_v13  ;;  %v960_v38 = vunpack.c.0.s8 %v7308_v51  ;;  %v1008_v20 = vunpack.c.1.s8 %v7308_v51  ;;  %v7386_v52 = vpop.f32.mrf.mxu1 }
 0x238   :  { %4199 = vmatpush1.bf16.msra.mxu1 %v3273_v36  ;;  %v4531_v10 = vmax.f32 %v3661_v34, 0.0  ;;  %v4533_v58 = vmax.f32 %v3702_v41, 0.0  ;;  %v2746_v55 = vmul.f32 %v7318_v27, %v1726_v3  ;;  %v957_v50 = vunpack.c.0.s8 %v7314_v23  ;;  %v7388_v35 = vpop.f32.mrf.mxu0 }
 0x239   :  { %4240 = vmatpush1.bf16.msra.mxu0 %v3275_v61  ;;  %v2794_v14 = vmul.f32 %v7318_v27, %v1774_v2  ;;  %v1728_v49 = vcvt.s32.f32 %v960_v38  ;;  %v1776_v18 = vcvt.s32.f32 %v1008_v20  ;;  %v1005_v17 = vunpack.c.1.s8 %v7314_v23  ;;  %v7394_v2 = vpop.f32.mrf.mxu1 }
 0x23a   :  { %4579 = vst [vmem:[#allocation11 + $0x28] sm:$0xff] %v4531_v10  ;;  %4581 = vst [vmem:[#allocation11 + $0x38] sm:$0xff] %v4533_v58  ;;  %v1725_v42 = vcvt.s32.f32 %v957_v50  ;;  %v959_v51 = vunpack.c.0.s8 %v7321_v48  ;;  %v1007_v5 = vunpack.c.1.s8 %v7321_v48  ;;  %v862_v4 = vunpack.c.2.s8 %v7362_v26  ;;  %v7396_v38 = vpop.f32.mrf.mxu0 }
 0x23b   :  { %v3226_v9 = vpack.c.bf16 %v2794_v14, %v2746_v55  ;;  %v2748_v46 = vmul.f32 %v7327_v28, %v1728_v49  ;;  %v2796_v24 = vmul.f32 %v7327_v28, %v1776_v18  ;;  %v1773_v30 = vcvt.s32.f32 %v1005_v17  ;;  %v3826_v17 = vpop.f32.mrf.mxu1 }
 0x23c   :  { %v2745_v53 = vmul.f32 %v7334_v6, %v1725_v42  ;;  %v1727_v23 = vcvt.s32.f32 %v959_v51  ;;  %v1775_v40 = vcvt.s32.f32 %v1007_v5  ;;  %v910_v29 = vunpack.c.3.s8 %v7362_v26  ;;  %v3867_v42 = vpop.f32.mrf.mxu0 }
 0x23d   :  { %4200 = vmatprep.subr.bf16.mxu1 %v3226_v9  ;;  %v3228_v48 = vpack.c.bf16 %v2796_v24, %v2748_v46  ;;  %v2793_v59 = vmul.f32 %v7334_v6, %v1773_v30  ;;  %v1630_v43 = vcvt.s32.f32 %v862_v4  ;;  %v864_v44 = vunpack.c.2.s8 %v7371_v15 }
 0x23e   :  { %v2747_v8 = vmul.f32 %v7342_v63, %v1727_v23  ;;  %v2795_v7 = vmul.f32 %v7342_v63, %v1775_v40  ;;  %v1678_v22 = vcvt.s32.f32 %v910_v29  ;;  %v912_v25 = vunpack.c.3.s8 %v7371_v15  ;;  %v3827_v23 = vpop.f32.mrf.mxu1  ;;  %v3868_v40 = vpop.f32.mrf.mxu0 }
 0x23f   :  { %4241 = vmatprep.subr.bf16.mxu0 %v3228_v48  ;;  %v3225_v33 = vpack.c.bf16 %v2793_v59, %v2745_v53  ;;  %v2650_v60 = vmul.f32 %v7318_v27, %v1630_v43  ;;  %v1632_v13 = vcvt.s32.f32 %v864_v44  ;;  %v861_v36 = vunpack.c.2.s8 %v7377_v31 }
 0x240   :  { %v3227_v34 = vpack.c.bf16 %v2795_v7, %v2747_v8  ;;  %v2698_v41 = vmul.f32 %v7318_v27, %v1678_v22  ;;  %v1680_v3 = vcvt.s32.f32 %v912_v25  ;;  %v909_v61 = vunpack.c.3.s8 %v7377_v31  ;;  %v238_v22 = vld [vmem:[#allocation7 + $0x288] sm:$0xff] }
 0x241   :  { %4201 = vmatpush1.bf16.msra.mxu1 %v3225_v33  ;;  %v2652_v20 = vmul.f32 %v7327_v28, %v1632_v13  ;;  %v1629_v10 = vcvt.s32.f32 %v861_v36  ;;  %v863_v58 = vunpack.c.2.s8 %v7384_v39  ;;  %v911_v55 = vunpack.c.3.s8 %v7384_v39 }
 0x242   :  { %4242 = vmatpush1.bf16.msra.mxu0 %v3227_v34  ;;  %v3178_v50 = vpack.c.bf16 %v2698_v41, %v2650_v60  ;;  %v2700_v14 = vmul.f32 %v7327_v28, %v1680_v3  ;;  %v1677_v49 = vcvt.s32.f32 %v909_v61  ;;  %v766_v18 = vunpack.c.0.s8 %v7362_v26  ;;  %v240_v3 = vld [vmem:[#allocation7 + $0x298] sm:$0xff] }
 0x243   :  { %v2649_v51 = vmul.f32 %v7334_v6, %v1629_v10  ;;  %v1631_v5 = vcvt.s32.f32 %v863_v58  ;;  %v1679_v4 = vcvt.s32.f32 %v911_v55  ;;  %v814_v9 = vunpack.c.1.s8 %v7362_v26 }
 0x244   :  { %4202 = vmatprep.subr.bf16.mxu1 %v3178_v50  ;;  %v3180_v46 = vpack.c.bf16 %v2700_v14, %v2652_v20  ;;  %v2697_v24 = vmul.f32 %v7334_v6, %v1677_v49  ;;  %v1534_v30 = vcvt.s32.f32 %v766_v18  ;;  %v768_v53 = vunpack.c.0.s8 %v7371_v15  ;;  %v237_v49 = vld [vmem:[#allocation7 + $0x280] sm:$0xff] }
 0x245   :  { %v2651_v29 = vmul.f32 %v7342_v63, %v1631_v5  ;;  %v2699_v48 = vmul.f32 %v7342_v63, %v1679_v4  ;;  %v1582_v59 = vcvt.s32.f32 %v814_v9  ;;  %v816_v43 = vunpack.c.1.s8 %v7371_v15 }
 0x246   :  { %4243 = vmatprep.subr.bf16.mxu0 %v3180_v46  ;;  %v3177_v44 = vpack.c.bf16 %v2697_v24, %v2649_v51  ;;  %v2554_v26 = vmul.f32 %v7318_v27, %v1534_v30  ;;  %v1536_v8 = vcvt.s32.f32 %v768_v53  ;;  %v765_v7 = vunpack.c.0.s8 %v7377_v31  ;;  %v239_v46 = vld [vmem:[#allocation7 + $0x290] sm:$0xff] }
 0x247   :  { %v3179_v25 = vpack.c.bf16 %v2699_v48, %v2651_v29  ;;  %v2602_v33 = vmul.f32 %v7318_v27, %v1582_v59  ;;  %v1584_v60 = vcvt.s32.f32 %v816_v43  ;;  %v813_v13 = vunpack.c.1.s8 %v7377_v31 }
 0x248   :  { %4203 = vmatpush1.bf16.msra.mxu1 %v3177_v44  ;;  %v2556_v36 = vmul.f32 %v7327_v28, %v1536_v8  ;;  %v1533_v34 = vcvt.s32.f32 %v765_v7  ;;  %v767_v15 = vunpack.c.0.s8 %v7384_v39  ;;  %v815_v41 = vunpack.c.1.s8 %v7384_v39 }
 0x249   :  { %4244 = vmatpush1.bf16.msra.mxu0 %v3179_v25  ;;  %v3130_v61 = vpack.c.bf16 %v2602_v33, %v2554_v26  ;;  %v2604_v20 = vmul.f32 %v7327_v28, %v1584_v60  ;;  %v1581_v10 = vcvt.s32.f32 %v813_v13  ;;  %v670_v58 = vunpack.c.2.s8 %v238_v22 }
 0x24a   :  { %v2553_v55 = vmul.f32 %v7334_v6, %v1533_v34  ;;  %v1535_v50 = vcvt.s32.f32 %v767_v15  ;;  %v1583_v14 = vcvt.s32.f32 %v815_v41  ;;  %v718_v31 = vunpack.c.3.s8 %v238_v22 }
 0x24b   :  { %4204 = vmatprep.subr.bf16.mxu1 %v3130_v61  ;;  %v3132_v18 = vpack.c.bf16 %v2604_v20, %v2556_v36  ;;  %v2601_v17 = vmul.f32 %v7334_v6, %v1581_v10  ;;  %v1438_v42 = vcvt.s32.f32 %v670_v58  ;;  %v672_v51 = vunpack.c.2.s8 %v240_v3 }
 0x24c   :  { %v2555_v39 = vmul.f32 %v7342_v63, %v1535_v50  ;;  %v2603_v5 = vmul.f32 %v7342_v63, %v1583_v14  ;;  %v1486_v4 = vcvt.s32.f32 %v718_v31  ;;  %v720_v9 = vunpack.c.3.s8 %v240_v3 }
 0x24d   :  { %4245 = vmatprep.subr.bf16.mxu0 %v3132_v18  ;;  %v3129_v24 = vpack.c.bf16 %v2601_v17, %v2553_v55  ;;  %v2458_v30 = vmul.f32 %v7318_v27, %v1438_v42  ;;  %v1440_v53 = vcvt.s32.f32 %v672_v51  ;;  %v669_v23 = vunpack.c.2.s8 %v237_v49  ;;  %v190_v51 = vld [vmem:[#allocation7 + $0x108] sm:$0xff] }
 0x24e   :  { %v3131_v40 = vpack.c.bf16 %v2603_v5, %v2555_v39  ;;  %v2506_v29 = vmul.f32 %v7318_v27, %v1486_v4  ;;  %v1488_v48 = vcvt.s32.f32 %v720_v9  ;;  %v717_v59 = vunpack.c.3.s8 %v237_v49 }
 0x24f   :  { %4205 = vmatpush1.bf16.msra.mxu1 %v3129_v24  ;;  %v2460_v43 = vmul.f32 %v7327_v28, %v1440_v53  ;;  %v1437_v44 = vcvt.s32.f32 %v669_v23  ;;  %v671_v26 = vunpack.c.2.s8 %v239_v46  ;;  %v719_v8 = vunpack.c.3.s8 %v239_v46  ;;  %v192_v23 = vld [vmem:[#allocation7 + $0x118] sm:$0xff] }
 0x250   :  { %4246 = vmatpush1.bf16.msra.mxu0 %v3131_v40  ;;  %v3082_v7 = vpack.c.bf16 %v2506_v29, %v2458_v30  ;;  %v2508_v25 = vmul.f32 %v7327_v28, %v1488_v48  ;;  %v1485_v33 = vcvt.s32.f32 %v717_v59  ;;  %v574_v60 = vunpack.c.0.s8 %v238_v22 }
 0x251   :  { %v2457_v13 = vmul.f32 %v7334_v6, %v1437_v44  ;;  %v1439_v36 = vcvt.s32.f32 %v671_v26  ;;  %v1487_v34 = vcvt.s32.f32 %v719_v8  ;;  %v622_v15 = vunpack.c.1.s8 %v238_v22  ;;  %v189_v8 = vld [vmem:[#allocation7 + $0x100] sm:$0xff] }
 0x252   :  { %4206 = vmatprep.subr.bf16.mxu1 %v3082_v7  ;;  %v3084_v41 = vpack.c.bf16 %v2508_v25, %v2460_v43  ;;  %v2505_v61 = vmul.f32 %v7334_v6, %v1485_v33  ;;  %v1342_v20 = vcvt.s32.f32 %v574_v60  ;;  %v576_v10 = vunpack.c.0.s8 %v240_v3 }
 0x253   :  { %v2459_v58 = vmul.f32 %v7342_v63, %v1439_v36  ;;  %v2507_v55 = vmul.f32 %v7342_v63, %v1487_v34  ;;  %v1390_v50 = vcvt.s32.f32 %v622_v15  ;;  %v624_v14 = vunpack.c.1.s8 %v240_v3  ;;  %v191_v34 = vld [vmem:[#allocation7 + $0x110] sm:$0xff] }
 0x254   :  { %4247 = vmatprep.subr.bf16.mxu0 %v3084_v41  ;;  %v3081_v31 = vpack.c.bf16 %v2505_v61, %v2457_v13  ;;  %v2362_v18 = vmul.f32 %v7318_v27, %v1342_v20  ;;  %v1344_v17 = vcvt.s32.f32 %v576_v10  ;;  %v573_v42 = vunpack.c.0.s8 %v237_v49 }
 0x255   :  { %v3083_v22 = vpack.c.bf16 %v2507_v55, %v2459_v58  ;;  %v2410_v39 = vmul.f32 %v7318_v27, %v1390_v50  ;;  %v1392_v5 = vcvt.s32.f32 %v624_v14  ;;  %v621_v4 = vunpack.c.1.s8 %v237_v49 }
 0x256   :  { %4207 = vmatpush1.bf16.msra.mxu1 %v3081_v31  ;;  %v2364_v9 = vmul.f32 %v7327_v28, %v1344_v17  ;;  %v1341_v24 = vcvt.s32.f32 %v573_v42  ;;  %v575_v30 = vunpack.c.0.s8 %v239_v46  ;;  %v623_v53 = vunpack.c.1.s8 %v239_v46 }
 0x257   :  { %4248 = vmatpush1.bf16.msra.mxu0 %v3083_v22  ;;  %v3034_v3 = vpack.c.bf16 %v2410_v39, %v2362_v18  ;;  %v2412_v40 = vmul.f32 %v7327_v28, %v1392_v5  ;;  %v1389_v29 = vcvt.s32.f32 %v621_v4  ;;  %v478_v48 = vunpack.c.2.s8 %v190_v51 }
 0x258   :  { %v2361_v59 = vmul.f32 %v7334_v6, %v1341_v24  ;;  %v1343_v43 = vcvt.s32.f32 %v575_v30  ;;  %v1391_v44 = vcvt.s32.f32 %v623_v53  ;;  %v526_v26 = vunpack.c.3.s8 %v190_v51 }
 0x259   :  { %4208 = vmatprep.subr.bf16.mxu1 %v3034_v3  ;;  %v3036_v49 = vpack.c.bf16 %v2412_v40, %v2364_v9  ;;  %v2409_v7 = vmul.f32 %v7334_v6, %v1389_v29  ;;  %v1246_v25 = vcvt.s32.f32 %v478_v48  ;;  %v480_v33 = vunpack.c.2.s8 %v192_v23 }
 0x25a   :  { %v2363_v46 = vmul.f32 %v7342_v63, %v1343_v43  ;;  %v2411_v60 = vmul.f32 %v7342_v63, %v1391_v44  ;;  %v1294_v13 = vcvt.s32.f32 %v526_v26  ;;  %v528_v36 = vunpack.c.3.s8 %v192_v23 }
 0x25b   :  { %4249 = vmatprep.subr.bf16.mxu0 %v3036_v49  ;;  %v3033_v15 = vpack.c.bf16 %v2409_v7, %v2361_v59  ;;  %v2266_v41 = vmul.f32 %v7318_v27, %v1246_v25  ;;  %v1248_v61 = vcvt.s32.f32 %v480_v33  ;;  %v477_v20 = vunpack.c.2.s8 %v189_v8  ;;  %v7447_v33 = vld [vmem:[#allocation10 + $0x8] sm:$0xff] }
 0x25c   :  { %v3035_v10 = vpack.c.bf16 %v2411_v60, %v2363_v46  ;;  %v2314_v58 = vmul.f32 %v7318_v27, %v1294_v13  ;;  %v1296_v55 = vcvt.s32.f32 %v528_v36  ;;  %v525_v50 = vunpack.c.3.s8 %v189_v8 }
 0x25d   :  { %4209 = vmatpush1.bf16.msra.mxu1 %v3033_v15  ;;  %v2268_v14 = vmul.f32 %v7327_v28, %v1248_v61  ;;  %v1245_v31 = vcvt.s32.f32 %v477_v20  ;;  %v479_v18 = vunpack.c.2.s8 %v191_v34  ;;  %v527_v17 = vunpack.c.3.s8 %v191_v34 }
 0x25e   :  { %4250 = vmatpush1.bf16.msra.mxu0 %v3035_v10  ;;  %v2986_v42 = vpack.c.bf16 %v2314_v58, %v2266_v41  ;;  %v2316_v22 = vmul.f32 %v7327_v28, %v1296_v55  ;;  %v1293_v39 = vcvt.s32.f32 %v525_v50  ;;  %v382_v5 = vunpack.c.0.s8 %v190_v51 }
 0x25f   :  { %v2265_v4 = vmul.f32 %v7334_v6, %v1245_v31  ;;  %v1247_v9 = vcvt.s32.f32 %v479_v18  ;;  %v1295_v24 = vcvt.s32.f32 %v527_v17  ;;  %v430_v30 = vunpack.c.1.s8 %v190_v51 }
 0x260   :  { %4210 = vmatprep.subr.bf16.mxu1 %v2986_v42  ;;  %v2988_v53 = vpack.c.bf16 %v2316_v22, %v2268_v14  ;;  %v2313_v3 = vmul.f32 %v7334_v6, %v1293_v39  ;;  %v1150_v40 = vcvt.s32.f32 %v382_v5  ;;  %v384_v29 = vunpack.c.0.s8 %v192_v23 }
 0x261   :  { %v2267_v48 = vmul.f32 %v7342_v63, %v1247_v9  ;;  %v2315_v59 = vmul.f32 %v7342_v63, %v1295_v24  ;;  %v1198_v43 = vcvt.s32.f32 %v430_v30  ;;  %v432_v44 = vunpack.c.1.s8 %v192_v23  ;;  %v7451_v23 = vld [vmem:[#allocation7 + $0x5a8] sm:$0xff]  ;;  %v7474_v30 = vpop.f32.mrf.mxu1 }
 0x262   :  { %4251 = vmatprep.subr.bf16.mxu0 %v2988_v53  ;;  %v2985_v26 = vpack.c.bf16 %v2313_v3, %v2265_v4  ;;  %v2170_v49 = vmul.f32 %v7318_v27, %v1150_v40  ;;  %v1152_v7 = vcvt.s32.f32 %v384_v29  ;;  %v381_v25 = vunpack.c.0.s8 %v189_v8  ;;  %v7468_v4 = vld [vmem:[#allocation7 + $0x5a0] sm:$0xff]  ;;  %v7479_v29 = vpop.f32.mrf.mxu0 }
 0x263   :  { %v2987_v51 = vpack.c.bf16 %v2315_v59, %v2267_v48  ;;  %v2218_v46 = vmul.f32 %v7318_v27, %v1198_v43  ;;  %v1200_v60 = vcvt.s32.f32 %v432_v44  ;;  %v429_v13 = vunpack.c.1.s8 %v189_v8 }
 0x264   :  { %4211 = vmatpush1.bf16.msra.mxu1 %v2985_v26  ;;  %v2172_v36 = vmul.f32 %v7327_v28, %v1152_v7  ;;  %v1149_v15 = vcvt.s32.f32 %v381_v25  ;;  %v383_v41 = vunpack.c.0.s8 %v191_v34  ;;  %v431_v61 = vunpack.c.1.s8 %v191_v34 }
 0x265   :  { %4252 = vmatpush1.bf16.msra.mxu0 %v2987_v51  ;;  %v2938_v20 = vpack.c.bf16 %v2218_v46, %v2170_v49  ;;  %v2220_v10 = vmul.f32 %v7327_v28, %v1200_v60  ;;  %v1197_v58 = vcvt.s32.f32 %v429_v13  ;;  %v3337_v55 = vrot.slane %v7447_v33, %v8590_v56  ;;  %v7462_v28 = vld [vmem:[#allocation7 + $0x5b8] sm:$0xff] }
 0x266   :  { %v2169_v27 = vmul.f32 %v7334_v6, %v1149_v15  ;;  %v1151_v50 = vcvt.s32.f32 %v383_v41  ;;  %v1199_v8 = vcvt.s32.f32 %v431_v61  ;;  %v3345_v14 = vrot.slane %v7447_v33, %v8591_v57 }
 0x267   :  { %4212 = vmatprep.subr.bf16.mxu1 %v2938_v20  ;;  %v2940_v31 = vpack.c.bf16 %v2220_v10, %v2172_v36  ;;  %v2217_v34 = vmul.f32 %v7334_v6, %v1197_v58  ;;  %v3741_v18 = vadd.f32 %v7264_v37, %v3337_v55  ;;  %v1058_v17 = vunpack.c.2.s8 %v7451_v23  ;;  %v7496_v36 = vpop.f32.mrf.mxu1  ;;  %v7504_v10 = vpop.f32.mrf.mxu0 }
 0x268   :  { %v2171_v42 = vmul.f32 %v7342_v63, %v1151_v50  ;;  %v2219_v22 = vmul.f32 %v7342_v63, %v1199_v8  ;;  %v3782_v39 = vadd.f32 %v7266_v54, %v3345_v14  ;;  %v1106_v5 = vunpack.c.3.s8 %v7451_v23  ;;  %v7477_v54 = vld [vmem:[#allocation7 + $0x5b0] sm:$0xff] }
 0x269   :  { %4253 = vmatprep.subr.bf16.mxu0 %v2940_v31  ;;  %v2937_v9 = vpack.c.bf16 %v2217_v34, %v2169_v27  ;;  %v4534_v24 = vmax.f32 %v3741_v18, 0.0  ;;  %v1826_v6 = vcvt.s32.f32 %v1058_v17  ;;  %v7472_v37 = vrot.slane %v7303_v19, %v8592_v11  ;;  %v3908_v8 = vpop.f32.mrf.mxu1  ;;  %v3949_v18 = vpop.f32.mrf.mxu0 }
 0x26a   :  { %v2939_v53 = vpack.c.bf16 %v2219_v22, %v2171_v42  ;;  %v4536_v3 = vmax.f32 %v3782_v39, 0.0  ;;  %v1874_v40 = vcvt.s32.f32 %v1106_v5  ;;  %v1060_v63 = vunpack.c.2.s8 %v7462_v28 }
 0x26b   :  { %4213 = vmatpush1.bf16.msra.mxu1 %v2937_v9  ;;  %4582 = vst [vmem:[#allocation11 + $0x40] sm:$0xff] %v4534_v24  ;;  %v2846_v48 = vmul.f32 %v7472_v37, %v1826_v6  ;;  %v1108_v59 = vunpack.c.3.s8 %v7462_v28  ;;  %v7485_v43 = vrot.slane %v7303_v19, %v8593_v47  ;;  %v1057_v44 = vunpack.c.2.s8 %v7468_v4  ;;  %v3909_v5 = vpop.f32.mrf.mxu1 }
 0x26c   :  { %4254 = vmatpush1.bf16.msra.mxu0 %v2939_v53  ;;  %4584 = vst [vmem:[#allocation11 + $0x50] sm:$0xff] %v4536_v3  ;;  %v2894_v26 = vmul.f32 %v7472_v37, %v1874_v40  ;;  %v1828_v49 = vcvt.s32.f32 %v1060_v63  ;;  %v1105_v7 = vunpack.c.3.s8 %v7468_v4  ;;  %v7492_v25 = vrot.slane %v7303_v19, %v8594_v12  ;;  %v3950_v3 = vpop.f32.mrf.mxu0  ;;  %v291_v5 = vld [vmem:[#allocation7 + $0x430] sm:$0xff] }
 0x26d   :  { %v1876_v51 = vcvt.s32.f32 %v1108_v59  ;;  %v1825_v46 = vcvt.s32.f32 %v1057_v44  ;;  %v1059_v60 = vunpack.c.2.s8 %v7477_v54  ;;  %v1107_v13 = vunpack.c.3.s8 %v7477_v54  ;;  %v7524_v44 = vld [vmem:[#allocation7 + $0x428] sm:$0xff] }
 0x26e   :  { %4231 = vmatmul.mubr.bf16.vlgmr.msra.gmra.mxu1 %v8582_v32  ;;  %v3278_v15 = vpack.c.bf16 %v2894_v26, %v2846_v48  ;;  %v2848_v41 = vmul.f32 %v7485_v43, %v1828_v49  ;;  %v1873_v61 = vcvt.s32.f32 %v1105_v7  ;;  %v7502_v20 = vrot.slane %v7303_v19, %v8543_v16 }
 0x26f   :  { %4272 = vmatmul.mubr.bf16.vlgmr.msra.gmra.mxu0 %v8582_v32  ;;  %v2896_v58 = vmul.f32 %v7485_v43, %v1876_v51  ;;  %v2845_v55 = vmul.f32 %v7492_v25, %v1825_v46  ;;  %v1827_v27 = vcvt.s32.f32 %v1059_v60  ;;  %v1875_v50 = vcvt.s32.f32 %v1107_v13  ;;  %4312 = vmatprep.mubr.bf16.mxu1 %v8584_v62 }
 0x270   :  { %4280 = vmatprep.subr.bf16.mxu1 %v3278_v15  ;;  %v2893_v14 = vmul.f32 %v7492_v25, %v1873_v61  ;;  %v3341_v19 = vrot.slane %v7447_v33, %v8588_v45  ;;  %v3349_v31 = vrot.slane %v7447_v33, %v8589_v1  ;;  %v962_v34 = vunpack.c.0.s8 %v7451_v23  ;;  %4353 = vmatprep.mubr.bf16.mxu0 %v8584_v62 }
 0x271   :  { %v3280_v17 = vpack.c.bf16 %v2896_v58, %v2848_v41  ;;  %v2847_v42 = vmul.f32 %v7502_v20, %v1827_v27  ;;  %v2895_v22 = vmul.f32 %v7502_v20, %v1875_v50  ;;  %v1010_v39 = vunpack.c.1.s8 %v7451_v23  ;;  %v292_v41 = vld [vmem:[#allocation7 + $0x438] sm:$0xff] }
 0x272   :  { %v3277_v9 = vpack.c.bf16 %v2893_v14, %v2845_v55  ;;  %v3743_v24 = vadd.f32 %v7272_v0, %v3341_v19  ;;  %v3784_v6 = vadd.f32 %v7274_v21, %v3349_v31  ;;  %v1730_v53 = vcvt.s32.f32 %v962_v34  ;;  %v289_v19 = vld [vmem:[#allocation7 + $0x420] sm:$0xff] }
 0x273   :  { %4321 = vmatprep.subr.bf16.mxu0 %v3280_v17  ;;  %v3279_v40 = vpack.c.bf16 %v2895_v22, %v2847_v42  ;;  %v1778_v63 = vcvt.s32.f32 %v1010_v39  ;;  %v964_v48 = vunpack.c.0.s8 %v7462_v28  ;;  %v1012_v59 = vunpack.c.1.s8 %v7462_v28 }
 0x274   :  { %4281 = vmatpush1.bf16.msra.mxu1 %v3277_v9  ;;  %v4535_v26 = vmax.f32 %v3743_v24, 0.0  ;;  %v4537_v23 = vmax.f32 %v3784_v6, 0.0  ;;  %v2750_v49 = vmul.f32 %v7472_v37, %v1730_v53  ;;  %v961_v0 = vunpack.c.0.s8 %v7468_v4 }
 0x275   :  { %4322 = vmatpush1.bf16.msra.mxu0 %v3279_v40  ;;  %v2798_v21 = vmul.f32 %v7472_v37, %v1778_v63  ;;  %v1732_v7 = vcvt.s32.f32 %v964_v48  ;;  %v1780_v51 = vcvt.s32.f32 %v1012_v59  ;;  %v1009_v46 = vunpack.c.1.s8 %v7468_v4 }
 0x276   :  { %4583 = vst [vmem:[#allocation11 + $0x48] sm:$0xff] %v4535_v26  ;;  %4585 = vst [vmem:[#allocation11 + $0x58] sm:$0xff] %v4537_v23  ;;  %v1729_v60 = vcvt.s32.f32 %v961_v0  ;;  %v963_v28 = vunpack.c.0.s8 %v7477_v54  ;;  %v1011_v13 = vunpack.c.1.s8 %v7477_v54  ;;  %v866_v15 = vunpack.c.2.s8 %v7524_v44 }
 0x277   :  { %v3230_v61 = vpack.c.bf16 %v2798_v21, %v2750_v49  ;;  %v2752_v58 = vmul.f32 %v7485_v43, %v1732_v7  ;;  %v2800_v55 = vmul.f32 %v7485_v43, %v1780_v51  ;;  %v1777_v27 = vcvt.s32.f32 %v1009_v46 }
 0x278   :  { %v2749_v50 = vmul.f32 %v7492_v25, %v1729_v60  ;;  %v1731_v8 = vcvt.s32.f32 %v963_v28  ;;  %v1779_v4 = vcvt.s32.f32 %v1011_v13  ;;  %v914_v14 = vunpack.c.3.s8 %v7524_v44 }
 0x279   :  { %4282 = vmatprep.subr.bf16.mxu1 %v3230_v61  ;;  %v3232_v31 = vpack.c.bf16 %v2800_v55, %v2752_v58  ;;  %v2797_v54 = vmul.f32 %v7492_v25, %v1777_v27  ;;  %v1634_v34 = vcvt.s32.f32 %v866_v15  ;;  %v868_v18 = vunpack.c.2.s8 %v292_v41 }
 0x27a   :  { %v2751_v17 = vmul.f32 %v7502_v20, %v1731_v8  ;;  %v2799_v42 = vmul.f32 %v7502_v20, %v1779_v4  ;;  %v1682_v22 = vcvt.s32.f32 %v914_v14  ;;  %v916_v39 = vunpack.c.3.s8 %v292_v41 }
 0x27b   :  { %4323 = vmatprep.subr.bf16.mxu0 %v3232_v31  ;;  %v3229_v9 = vpack.c.bf16 %v2797_v54, %v2749_v50  ;;  %v2654_v24 = vmul.f32 %v7472_v37, %v1634_v34  ;;  %v1636_v6 = vcvt.s32.f32 %v868_v18  ;;  %v865_v53 = vunpack.c.2.s8 %v289_v19  ;;  %v242_v18 = vld [vmem:[#allocation7 + $0x2a8] sm:$0xff] }
 0x27c   :  { %v3231_v3 = vpack.c.bf16 %v2799_v42, %v2751_v17  ;;  %v2702_v40 = vmul.f32 %v7472_v37, %v1682_v22  ;;  %v1684_v63 = vcvt.s32.f32 %v916_v39  ;;  %v913_v48 = vunpack.c.3.s8 %v289_v19 }
 0x27d   :  { %4283 = vmatpush1.bf16.msra.mxu1 %v3229_v9  ;;  %v2656_v59 = vmul.f32 %v7485_v43, %v1636_v6  ;;  %v1633_v26 = vcvt.s32.f32 %v865_v53  ;;  %v867_v23 = vunpack.c.2.s8 %v291_v5  ;;  %v915_v49 = vunpack.c.3.s8 %v291_v5  ;;  %v244_v53 = vld [vmem:[#allocation7 + $0x2b8] sm:$0xff] }
 0x27e   :  { %4324 = vmatpush1.bf16.msra.mxu0 %v3231_v3  ;;  %v3182_v0 = vpack.c.bf16 %v2702_v40, %v2654_v24  ;;  %v2704_v21 = vmul.f32 %v7485_v43, %v1684_v63  ;;  %v1681_v7 = vcvt.s32.f32 %v913_v48  ;;  %v770_v51 = vunpack.c.0.s8 %v7524_v44 }
 0x27f   :  { %v2653_v46 = vmul.f32 %v7492_v25, %v1633_v26  ;;  %v1635_v60 = vcvt.s32.f32 %v867_v23  ;;  %v1683_v28 = vcvt.s32.f32 %v915_v49  ;;  %v818_v13 = vunpack.c.1.s8 %v7524_v44  ;;  %v241_v49 = vld [vmem:[#allocation7 + $0x2a0] sm:$0xff] }
 0x280   :  { %4284 = vmatprep.subr.bf16.mxu1 %v3182_v0  ;;  %v3184_v15 = vpack.c.bf16 %v2704_v21, %v2656_v59  ;;  %v2701_v61 = vmul.f32 %v7492_v25, %v1681_v7  ;;  %v1538_v58 = vcvt.s32.f32 %v770_v51  ;;  %v772_v55 = vunpack.c.0.s8 %v292_v41 }
 0x281   :  { %v2655_v27 = vmul.f32 %v7502_v20, %v1635_v60  ;;  %v2703_v50 = vmul.f32 %v7502_v20, %v1683_v28  ;;  %v1586_v8 = vcvt.s32.f32 %v818_v13  ;;  %v820_v4 = vunpack.c.1.s8 %v292_v41  ;;  %v243_v28 = vld [vmem:[#allocation7 + $0x2b0] sm:$0xff] }
 0x282   :  { %4325 = vmatprep.subr.bf16.mxu0 %v3184_v15  ;;  %v3181_v14 = vpack.c.bf16 %v2701_v61, %v2653_v46  ;;  %v2558_v31 = vmul.f32 %v7472_v37, %v1538_v58  ;;  %v1540_v54 = vcvt.s32.f32 %v772_v55  ;;  %v769_v34 = vunpack.c.0.s8 %v289_v19 }
 0x283   :  { %v3183_v44 = vpack.c.bf16 %v2703_v50, %v2655_v27  ;;  %v2606_v17 = vmul.f32 %v7472_v37, %v1586_v8  ;;  %v1588_v42 = vcvt.s32.f32 %v820_v4  ;;  %v817_v22 = vunpack.c.1.s8 %v289_v19 }
 0x284   :  { %4285 = vmatpush1.bf16.msra.mxu1 %v3181_v14  ;;  %v2560_v39 = vmul.f32 %v7485_v43, %v1540_v54  ;;  %v1537_v9 = vcvt.s32.f32 %v769_v34  ;;  %v771_v24 = vunpack.c.0.s8 %v291_v5  ;;  %v819_v6 = vunpack.c.1.s8 %v291_v5 }
 0x285   :  { %4326 = vmatpush1.bf16.msra.mxu0 %v3183_v44  ;;  %v3134_v41 = vpack.c.bf16 %v2606_v17, %v2558_v31  ;;  %v2608_v3 = vmul.f32 %v7485_v43, %v1588_v42  ;;  %v1585_v40 = vcvt.s32.f32 %v817_v22  ;;  %v674_v63 = vunpack.c.2.s8 %v242_v18 }
 0x286   :  { %v2557_v48 = vmul.f32 %v7492_v25, %v1537_v9  ;;  %v1539_v59 = vcvt.s32.f32 %v771_v24  ;;  %v1587_v26 = vcvt.s32.f32 %v819_v6  ;;  %v722_v23 = vunpack.c.3.s8 %v242_v18 }
 0x287   :  { %4286 = vmatprep.subr.bf16.mxu1 %v3134_v41  ;;  %v3136_v19 = vpack.c.bf16 %v2608_v3, %v2560_v39  ;;  %v2605_v0 = vmul.f32 %v7492_v25, %v1585_v40  ;;  %v1442_v21 = vcvt.s32.f32 %v674_v63  ;;  %v676_v7 = vunpack.c.2.s8 %v244_v53 }
 0x288   :  { %v2559_v5 = vmul.f32 %v7502_v20, %v1539_v59  ;;  %v2607_v51 = vmul.f32 %v7502_v20, %v1587_v26  ;;  %v1490_v46 = vcvt.s32.f32 %v722_v23  ;;  %v724_v60 = vunpack.c.3.s8 %v244_v53 }
 0x289   :  { %4327 = vmatprep.subr.bf16.mxu0 %v3136_v19  ;;  %v3133_v13 = vpack.c.bf16 %v2605_v0, %v2557_v48  ;;  %v2462_v15 = vmul.f32 %v7472_v37, %v1442_v21  ;;  %v1444_v61 = vcvt.s32.f32 %v676_v7  ;;  %v673_v58 = vunpack.c.2.s8 %v241_v49  ;;  %v194_v7 = vld [vmem:[#allocation7 + $0x128] sm:$0xff] }
 0x28a   :  { %v3135_v55 = vpack.c.bf16 %v2607_v51, %v2559_v5  ;;  %v2510_v27 = vmul.f32 %v7472_v37, %v1490_v46  ;;  %v1492_v50 = vcvt.s32.f32 %v724_v60  ;;  %v721_v8 = vunpack.c.3.s8 %v241_v49 }
 0x28b   :  { %4287 = vmatpush1.bf16.msra.mxu1 %v3133_v13  ;;  %v2464_v4 = vmul.f32 %v7485_v43, %v1444_v61  ;;  %v1441_v14 = vcvt.s32.f32 %v673_v58  ;;  %v675_v31 = vunpack.c.2.s8 %v243_v28  ;;  %v723_v54 = vunpack.c.3.s8 %v243_v28  ;;  %v196_v58 = vld [vmem:[#allocation7 + $0x138] sm:$0xff] }
 0x28c   :  { %4328 = vmatpush1.bf16.msra.mxu0 %v3135_v55  ;;  %v3086_v34 = vpack.c.bf16 %v2510_v27, %v2462_v15  ;;  %v2512_v44 = vmul.f32 %v7485_v43, %v1492_v50  ;;  %v1489_v17 = vcvt.s32.f32 %v721_v8  ;;  %v578_v42 = vunpack.c.0.s8 %v242_v18 }
 0x28d   :  { %v2461_v22 = vmul.f32 %v7492_v25, %v1441_v14  ;;  %v1443_v39 = vcvt.s32.f32 %v675_v31  ;;  %v1491_v9 = vcvt.s32.f32 %v723_v54  ;;  %v626_v24 = vunpack.c.1.s8 %v242_v18  ;;  %v7571_v54 = vld [vmem:[#allocation7 + $0x120] sm:$0xff] }
 0x28e   :  { %4288 = vmatprep.subr.bf16.mxu1 %v3086_v34  ;;  %v3088_v6 = vpack.c.bf16 %v2512_v44, %v2464_v4  ;;  %v2509_v41 = vmul.f32 %v7492_v25, %v1489_v17  ;;  %v1346_v3 = vcvt.s32.f32 %v578_v42  ;;  %v580_v40 = vunpack.c.0.s8 %v244_v53 }
 0x28f   :  { %v2463_v63 = vmul.f32 %v7502_v20, %v1443_v39  ;;  %v2511_v48 = vmul.f32 %v7502_v20, %v1491_v9  ;;  %v1394_v59 = vcvt.s32.f32 %v626_v24  ;;  %v628_v26 = vunpack.c.1.s8 %v244_v53  ;;  %v195_v9 = vld [vmem:[#allocation7 + $0x130] sm:$0xff] }
 0x290   :  { %4329 = vmatprep.subr.bf16.mxu0 %v3088_v6  ;;  %v3085_v23 = vpack.c.bf16 %v2509_v41, %v2461_v22  ;;  %v2366_v19 = vmul.f32 %v7472_v37, %v1346_v3  ;;  %v1348_v0 = vcvt.s32.f32 %v580_v40  ;;  %v577_v21 = vunpack.c.0.s8 %v241_v49 }
 0x291   :  { %v3087_v18 = vpack.c.bf16 %v2511_v48, %v2463_v63  ;;  %v2414_v5 = vmul.f32 %v7472_v37, %v1394_v59  ;;  %v1396_v51 = vcvt.s32.f32 %v628_v26  ;;  %v625_v46 = vunpack.c.1.s8 %v241_v49 }
 0x292   :  { %4289 = vmatpush1.bf16.msra.mxu1 %v3085_v23  ;;  %v2368_v60 = vmul.f32 %v7485_v43, %v1348_v0  ;;  %v1345_v13 = vcvt.s32.f32 %v577_v21  ;;  %v579_v15 = vunpack.c.0.s8 %v243_v28  ;;  %v627_v61 = vunpack.c.1.s8 %v243_v28 }
 0x293   :  { %4330 = vmatpush1.bf16.msra.mxu0 %v3087_v18  ;;  %v3038_v53 = vpack.c.bf16 %v2414_v5, %v2366_v19  ;;  %v2416_v55 = vmul.f32 %v7485_v43, %v1396_v51  ;;  %v1393_v27 = vcvt.s32.f32 %v625_v46  ;;  %v482_v50 = vunpack.c.2.s8 %v194_v7 }
 0x294   :  { %v2365_v8 = vmul.f32 %v7492_v25, %v1345_v13  ;;  %v1347_v4 = vcvt.s32.f32 %v579_v15  ;;  %v1395_v14 = vcvt.s32.f32 %v627_v61  ;;  %v530_v31 = vunpack.c.3.s8 %v194_v7 }
 0x295   :  { %4290 = vmatprep.subr.bf16.mxu1 %v3038_v53  ;;  %v3040_v49 = vpack.c.bf16 %v2416_v55, %v2368_v60  ;;  %v2413_v34 = vmul.f32 %v7492_v25, %v1393_v27  ;;  %v1250_v44 = vcvt.s32.f32 %v482_v50  ;;  %v484_v28 = vunpack.c.2.s8 %v196_v58 }
 0x296   :  { %v2367_v17 = vmul.f32 %v7502_v20, %v1347_v4  ;;  %v2415_v42 = vmul.f32 %v7502_v20, %v1395_v14  ;;  %v1298_v22 = vcvt.s32.f32 %v530_v31  ;;  %v532_v39 = vunpack.c.3.s8 %v196_v58 }
 0x297   :  { %4331 = vmatprep.subr.bf16.mxu0 %v3040_v49  ;;  %v3037_v24 = vpack.c.bf16 %v2413_v34, %v2365_v8  ;;  %v2270_v6 = vmul.f32 %v7472_v37, %v1250_v44  ;;  %v1252_v41 = vcvt.s32.f32 %v484_v28  ;;  %v481_v3 = vunpack.c.2.s8 %v7571_v54 }
 0x298   :  { %v3039_v40 = vpack.c.bf16 %v2415_v42, %v2367_v17  ;;  %v2318_v63 = vmul.f32 %v7472_v37, %v1298_v22  ;;  %v1300_v48 = vcvt.s32.f32 %v532_v39  ;;  %v529_v59 = vunpack.c.3.s8 %v7571_v54 }
 0x299   :  { %4291 = vmatpush1.bf16.msra.mxu1 %v3037_v24  ;;  %v2272_v26 = vmul.f32 %v7485_v43, %v1252_v41  ;;  %v1249_v23 = vcvt.s32.f32 %v481_v3  ;;  %v483_v19 = vunpack.c.2.s8 %v195_v9  ;;  %v531_v0 = vunpack.c.3.s8 %v195_v9  ;;  %v7593_v41 = vpop.f32.mrf.mxu1  ;;  %v7595_v3 = vpop.f32.mrf.mxu0 }
 0x29a   :  { %4332 = vmatpush1.bf16.msra.mxu0 %v3039_v40  ;;  %v2990_v21 = vpack.c.bf16 %v2318_v63, %v2270_v6  ;;  %v2320_v18 = vmul.f32 %v7485_v43, %v1300_v48  ;;  %v1297_v5 = vcvt.s32.f32 %v529_v59  ;;  %v386_v51 = vunpack.c.0.s8 %v194_v7 }
 0x29b   :  { %v2269_v46 = vmul.f32 %v7492_v25, %v1249_v23  ;;  %v1251_v60 = vcvt.s32.f32 %v483_v19  ;;  %v1299_v13 = vcvt.s32.f32 %v531_v0  ;;  %v434_v15 = vunpack.c.1.s8 %v194_v7  ;;  %v7603_v23 = vld [vmem:[#allocation8 + $0x28] sm:$0xff] }
 0x29c   :  { %4292 = vmatprep.subr.bf16.mxu1 %v2990_v21  ;;  %v2992_v61 = vpack.c.bf16 %v2320_v18, %v2272_v26  ;;  %v2317_v53 = vmul.f32 %v7492_v25, %v1297_v5  ;;  %v1154_v55 = vcvt.s32.f32 %v386_v51  ;;  %v388_v27 = vunpack.c.0.s8 %v196_v58  ;;  %v7608_v18 = vld [vmem:[#allocation7 + $0x5d8] sm:$0xff]  ;;  %v7610_v5 = vpop.f32.mrf.mxu1  ;;  %v7612_v51 = vpop.f32.mrf.mxu0 }
 0x29d   :  { %v2271_v50 = vmul.f32 %v7502_v20, %v1251_v60  ;;  %v2319_v8 = vmul.f32 %v7502_v20, %v1299_v13  ;;  %v1202_v4 = vcvt.s32.f32 %v434_v15  ;;  %v436_v14 = vunpack.c.1.s8 %v196_v58  ;;  %v7591_v58 = vld [vmem:[#allocation7 + $0x5c8] sm:$0xff] }
 0x29e   :  { %4333 = vmatprep.subr.bf16.mxu0 %v2992_v61  ;;  %v2989_v31 = vpack.c.bf16 %v2317_v53, %v2269_v46  ;;  %v2174_v49 = vmul.f32 %v7472_v37, %v1154_v55  ;;  %v1156_v34 = vcvt.s32.f32 %v388_v27  ;;  %v385_v44 = vunpack.c.0.s8 %v7571_v54  ;;  %v7618_v61 = vld [vmem:[#allocation7 + $0x5c0] sm:$0xff]  ;;  %v3990_v27 = vpop.f32.mrf.mxu1 }
 0x29f   :  { %v2991_v7 = vpack.c.bf16 %v2319_v8, %v2271_v50  ;;  %v2222_v28 = vmul.f32 %v7472_v37, %v1202_v4  ;;  %v1204_v17 = vcvt.s32.f32 %v436_v14  ;;  %v433_v42 = vunpack.c.1.s8 %v7571_v54  ;;  %v4031_v50 = vpop.f32.mrf.mxu0 }
 0x2a0   :  { %4293 = vmatpush1.bf16.msra.mxu1 %v2989_v31  ;;  %v2176_v22 = vmul.f32 %v7485_v43, %v1156_v34  ;;  %v1153_v39 = vcvt.s32.f32 %v385_v44  ;;  %v387_v24 = vunpack.c.0.s8 %v195_v9  ;;  %v435_v6 = vunpack.c.1.s8 %v195_v9 }
 0x2a1   :  { %4334 = vmatpush1.bf16.msra.mxu0 %v2991_v7  ;;  %v2942_v40 = vpack.c.bf16 %v2222_v28, %v2174_v49  ;;  %v2224_v63 = vmul.f32 %v7485_v43, %v1204_v17  ;;  %v1201_v37 = vcvt.s32.f32 %v433_v42  ;;  %v3353_v54 = vrot.slane %v7447_v33, %v8594_v12  ;;  %v3991_v7 = vpop.f32.mrf.mxu1  ;;  %v4032_v28 = vpop.f32.mrf.mxu0 }
 0x2a2   :  { %v2173_v48 = vmul.f32 %v7492_v25, %v1153_v39  ;;  %v1155_v59 = vcvt.s32.f32 %v387_v24  ;;  %v1203_v26 = vcvt.s32.f32 %v435_v6  ;;  %v3361_v9 = vrot.slane %v7447_v33, %v8543_v16 }
 0x2a3   :  { %4294 = vmatprep.subr.bf16.mxu1 %v2942_v40  ;;  %v2944_v19 = vpack.c.bf16 %v2224_v63, %v2176_v22  ;;  %v2221_v0 = vmul.f32 %v7492_v25, %v1201_v37  ;;  %v3823_v21 = vadd.f32 %v7386_v52, %v3353_v54  ;;  %v1062_v43 = vunpack.c.2.s8 %v7591_v58 }
 0x2a4   :  { %v2175_v46 = vmul.f32 %v7502_v20, %v1155_v59  ;;  %v2223_v60 = vmul.f32 %v7502_v20, %v1203_v26  ;;  %v3864_v13 = vadd.f32 %v7388_v35, %v3361_v9  ;;  %v1110_v15 = vunpack.c.3.s8 %v7591_v58  ;;  %v7625_v35 = vld [vmem:[#allocation7 + $0x5d0] sm:$0xff] }
 0x2a5   :  { %4335 = vmatprep.subr.bf16.mxu0 %v2944_v19  ;;  %v2941_v52 = vpack.c.bf16 %v2221_v0, %v2173_v48  ;;  %v4538_v25 = vmax.f32 %v3823_v21, 0.0  ;;  %v1830_v53 = vcvt.s32.f32 %v1062_v43  ;;  %v7622_v55 = vrot.slane %v7603_v23, %v8588_v45 }
 0x2a6   :  { %v2943_v8 = vpack.c.bf16 %v2223_v60, %v2175_v46  ;;  %v4540_v4 = vmax.f32 %v3864_v13, 0.0  ;;  %v1878_v14 = vcvt.s32.f32 %v1110_v15  ;;  %v1064_v20 = vunpack.c.2.s8 %v7608_v18 }
 0x2a7   :  { %4295 = vmatpush1.bf16.msra.mxu1 %v2941_v52  ;;  %4586 = vst [vmem:[#allocation11 + $0x60] sm:$0xff] %v4538_v25  ;;  %v2850_v31 = vmul.f32 %v7622_v55, %v1830_v53  ;;  %v1112_v49 = vunpack.c.3.s8 %v7608_v18  ;;  %v7631_v34 = vrot.slane %v7603_v23, %v8589_v1  ;;  %v1061_v44 = vunpack.c.2.s8 %v7618_v61 }
 0x2a8   :  { %4336 = vmatpush1.bf16.msra.mxu0 %v2943_v8  ;;  %4588 = vst [vmem:[#allocation11 + $0x70] sm:$0xff] %v4540_v4  ;;  %v2898_v17 = vmul.f32 %v7622_v55, %v1878_v14  ;;  %v1832_v42 = vcvt.s32.f32 %v1064_v20  ;;  %v1109_v22 = vunpack.c.3.s8 %v7618_v61  ;;  %v7638_v39 = vrot.slane %v7603_v23, %v8590_v56 }
 0x2a9   :  { %v1880_v24 = vcvt.s32.f32 %v1112_v49  ;;  %v1829_v6 = vcvt.s32.f32 %v1061_v44  ;;  %v1063_v40 = vunpack.c.2.s8 %v7625_v35  ;;  %v1111_v63 = vunpack.c.3.s8 %v7625_v35 }
 0x2aa   :  { %4313 = vmatmul.mubr.bf16.vlgmr.msra.gmra.mxu1 %v8582_v32  ;;  %v3282_v37 = vpack.c.bf16 %v2898_v17, %v2850_v31  ;;  %v2852_v54 = vmul.f32 %v7631_v34, %v1832_v42  ;;  %v1877_v48 = vcvt.s32.f32 %v1109_v22  ;;  %v7646_v59 = vrot.slane %v7603_v23, %v8591_v57  ;;  %v7666_v31 = vld [vmem:[#allocation7 + $0x448] sm:$0xff] }
 0x2ab   :  { %4354 = vmatmul.mubr.bf16.vlgmr.msra.gmra.mxu0 %v8582_v32  ;;  %v2900_v26 = vmul.f32 %v7631_v34, %v1880_v24  ;;  %v2849_v9 = vmul.f32 %v7638_v39, %v1829_v6  ;;  %v1831_v19 = vcvt.s32.f32 %v1063_v40  ;;  %v1879_v0 = vcvt.s32.f32 %v1111_v63  ;;  %4394 = vmatprep.mubr.bf16.mxu1 %v8584_v62  ;;  %v7675_v6 = vld [vmem:[#allocation7 + $0x458] sm:$0xff] }
 0x2ac   :  { %4362 = vmatprep.subr.bf16.mxu1 %v3282_v37  ;;  %v2897_v21 = vmul.f32 %v7638_v39, %v1877_v48  ;;  %v3357_v43 = vrot.slane %v7447_v33, %v8592_v11  ;;  %v3365_v46 = vrot.slane %v7447_v33, %v8593_v47  ;;  %v966_v60 = vunpack.c.0.s8 %v7591_v58  ;;  %4435 = vmatprep.mubr.bf16.mxu0 %v8584_v62 }
 0x2ad   :  { %v3284_v13 = vpack.c.bf16 %v2900_v26, %v2852_v54  ;;  %v2851_v15 = vmul.f32 %v7646_v59, %v1831_v19  ;;  %v2899_v52 = vmul.f32 %v7646_v59, %v1879_v0  ;;  %v1014_v25 = vunpack.c.1.s8 %v7591_v58  ;;  %v7681_v19 = vld [vmem:[#allocation7 + $0x440] sm:$0xff] }
 0x2ae   :  { %v3281_v53 = vpack.c.bf16 %v2897_v21, %v2849_v9  ;;  %v3825_v27 = vadd.f32 %v7394_v2, %v3357_v43  ;;  %v3866_v50 = vadd.f32 %v7396_v38, %v3365_v46  ;;  %v1734_v8 = vcvt.s32.f32 %v966_v60 }
 0x2af   :  { %4403 = vmatprep.subr.bf16.mxu0 %v3284_v13  ;;  %v3283_v4 = vpack.c.bf16 %v2899_v52, %v2851_v15  ;;  %v1782_v33 = vcvt.s32.f32 %v1014_v25  ;;  %v968_v14 = vunpack.c.0.s8 %v7608_v18  ;;  %v1016_v20 = vunpack.c.1.s8 %v7608_v18  ;;  %v7688_v52 = vld [vmem:[#allocation7 + $0x450] sm:$0xff] }
 0x2b0   :  { %4363 = vmatpush1.bf16.msra.mxu1 %v3281_v53  ;;  %v4539_v49 = vmax.f32 %v3825_v27, 0.0  ;;  %v4541_v44 = vmax.f32 %v3866_v50, 0.0  ;;  %v2754_v58 = vmul.f32 %v7622_v55, %v1734_v8  ;;  %v965_v7 = vunpack.c.0.s8 %v7618_v61 }
 0x2b1   :  { %4404 = vmatpush1.bf16.msra.mxu0 %v3283_v4  ;;  %v2802_v2 = vmul.f32 %v7622_v55, %v1782_v33  ;;  %v1736_v38 = vcvt.s32.f32 %v968_v14  ;;  %v1784_v28 = vcvt.s32.f32 %v1016_v20  ;;  %v1013_v17 = vunpack.c.1.s8 %v7618_v61 }
 0x2b2   :  { %4587 = vst [vmem:[#allocation11 + $0x68] sm:$0xff] %v4539_v49  ;;  %4589 = vst [vmem:[#allocation11 + $0x78] sm:$0xff] %v4541_v44  ;;  %v1733_v42 = vcvt.s32.f32 %v965_v7  ;;  %v967_v18 = vunpack.c.0.s8 %v7625_v35  ;;  %v1015_v22 = vunpack.c.1.s8 %v7625_v35  ;;  %v870_v24 = vunpack.c.2.s8 %v7666_v31 }
 0x2b3   :  { %v3234_v40 = vpack.c.bf16 %v2802_v2, %v2754_v58  ;;  %v2756_v63 = vmul.f32 %v7631_v34, %v1736_v38  ;;  %v2804_v37 = vmul.f32 %v7631_v34, %v1784_v28  ;;  %v1781_v54 = vcvt.s32.f32 %v1013_v17 }
 0x2b4   :  { %v2753_v48 = vmul.f32 %v7638_v39, %v1733_v42  ;;  %v1735_v61 = vcvt.s32.f32 %v967_v18  ;;  %v1783_v26 = vcvt.s32.f32 %v1015_v22  ;;  %v918_v9 = vunpack.c.3.s8 %v7666_v31 }
 0x2b5   :  { %4364 = vmatprep.subr.bf16.mxu1 %v3234_v40  ;;  %v3236_v35 = vpack.c.bf16 %v2804_v37, %v2756_v63  ;;  %v2801_v0 = vmul.f32 %v7638_v39, %v1781_v54  ;;  %v1638_v21 = vcvt.s32.f32 %v870_v24  ;;  %v872_v43 = vunpack.c.2.s8 %v7675_v6 }
 0x2b6   :  { %v2755_v46 = vmul.f32 %v7646_v59, %v1735_v61  ;;  %v2803_v60 = vmul.f32 %v7646_v59, %v1783_v26  ;;  %v1686_v13 = vcvt.s32.f32 %v918_v9  ;;  %v920_v15 = vunpack.c.3.s8 %v7675_v6  ;;  %v7690_v25 = vpop.f32.mrf.mxu1 }
 0x2b7   :  { %4405 = vmatprep.subr.bf16.mxu0 %v3236_v35  ;;  %v3233_v53 = vpack.c.bf16 %v2801_v0, %v2753_v48  ;;  %v2658_v27 = vmul.f32 %v7622_v55, %v1638_v21  ;;  %v1640_v50 = vcvt.s32.f32 %v872_v43  ;;  %v869_v8 = vunpack.c.2.s8 %v7681_v19 }
 0x2b8   :  { %v3235_v4 = vpack.c.bf16 %v2803_v60, %v2755_v46  ;;  %v2706_v33 = vmul.f32 %v7622_v55, %v1686_v13  ;;  %v1688_v14 = vcvt.s32.f32 %v920_v15  ;;  %v917_v20 = vunpack.c.3.s8 %v7681_v19  ;;  %v7696_v49 = vpop.f32.mrf.mxu0  ;;  %v7698_v44 = vpop.f32.mrf.mxu1 }
 0x2b9   :  { %4365 = vmatpush1.bf16.msra.mxu1 %v3233_v53  ;;  %v2660_v58 = vmul.f32 %v7631_v34, %v1640_v50  ;;  %v1637_v7 = vcvt.s32.f32 %v869_v8  ;;  %v871_v2 = vunpack.c.2.s8 %v7688_v52  ;;  %v919_v38 = vunpack.c.3.s8 %v7688_v52 }
 0x2ba   :  { %4406 = vmatpush1.bf16.msra.mxu0 %v3235_v4  ;;  %v3186_v28 = vpack.c.bf16 %v2706_v33, %v2658_v27  ;;  %v2708_v17 = vmul.f32 %v7631_v34, %v1688_v14  ;;  %v1685_v42 = vcvt.s32.f32 %v917_v20  ;;  %v774_v18 = vunpack.c.0.s8 %v7666_v31  ;;  %v7705_v22 = vpop.f32.mrf.mxu0  ;;  %v4072_v24 = vpop.f32.mrf.mxu1  ;;  %v246_v27 = vld [vmem:[#allocation7 + $0x2c8] sm:$0xff] }
 0x2bb   :  { %v2657_v40 = vmul.f32 %v7638_v39, %v1637_v7  ;;  %v1639_v63 = vcvt.s32.f32 %v871_v2  ;;  %v1687_v37 = vcvt.s32.f32 %v919_v38  ;;  %v822_v54 = vunpack.c.1.s8 %v7666_v31  ;;  %v248_v2 = vld [vmem:[#allocation7 + $0x2d8] sm:$0xff] }
 0x2bc   :  { %4366 = vmatprep.subr.bf16.mxu1 %v3186_v28  ;;  %v3188_v48 = vpack.c.bf16 %v2708_v17, %v2660_v58  ;;  %v2705_v61 = vmul.f32 %v7638_v39, %v1685_v42  ;;  %v1542_v26 = vcvt.s32.f32 %v774_v18  ;;  %v776_v9 = vunpack.c.0.s8 %v7675_v6  ;;  %v4113_v35 = vpop.f32.mrf.mxu0  ;;  %v4073_v0 = vpop.f32.mrf.mxu1 }
 0x2bd   :  { %v2659_v21 = vmul.f32 %v7646_v59, %v1639_v63  ;;  %v2707_v43 = vmul.f32 %v7646_v59, %v1687_v37  ;;  %v1590_v46 = vcvt.s32.f32 %v822_v54  ;;  %v824_v60 = vunpack.c.1.s8 %v7675_v6  ;;  %v245_v63 = vld [vmem:[#allocation7 + $0x2c0] sm:$0xff]  ;;  %v247_v0 = vld [vmem:[#allocation7 + $0x2d0] sm:$0xff] }
 0x2be   :  { %4407 = vmatprep.subr.bf16.mxu0 %v3188_v48  ;;  %v3185_v13 = vpack.c.bf16 %v2705_v61, %v2657_v40  ;;  %v2562_v31 = vmul.f32 %v7622_v55, %v1542_v26  ;;  %v1544_v15 = vcvt.s32.f32 %v776_v9  ;;  %v773_v53 = vunpack.c.0.s8 %v7681_v19  ;;  %v4114_v50 = vpop.f32.mrf.mxu0 }
 0x2bf   :  { %v3187_v8 = vpack.c.bf16 %v2707_v43, %v2659_v21  ;;  %v2610_v4 = vmul.f32 %v7622_v55, %v1590_v46  ;;  %v1592_v33 = vcvt.s32.f32 %v824_v60  ;;  %v821_v14 = vunpack.c.1.s8 %v7681_v19 }
 0x2c0   :  { %4367 = vmatpush1.bf16.msra.mxu1 %v3185_v13  ;;  %v2564_v20 = vmul.f32 %v7631_v34, %v1544_v15  ;;  %v1541_v58 = vcvt.s32.f32 %v773_v53  ;;  %v775_v6 = vunpack.c.0.s8 %v7688_v52  ;;  %v823_v7 = vunpack.c.1.s8 %v7688_v52 }
 0x2c1   :  { %4408 = vmatpush1.bf16.msra.mxu0 %v3187_v8  ;;  %v3138_v38 = vpack.c.bf16 %v2610_v4, %v2562_v31  ;;  %v2612_v28 = vmul.f32 %v7631_v34, %v1592_v33  ;;  %v1589_v17 = vcvt.s32.f32 %v821_v14  ;;  %v678_v42 = vunpack.c.2.s8 %v246_v27 }
 0x2c2   :  { %v2561_v18 = vmul.f32 %v7638_v39, %v1541_v58  ;;  %v1543_v24 = vcvt.s32.f32 %v775_v6  ;;  %v1591_v40 = vcvt.s32.f32 %v823_v7  ;;  %v726_v19 = vunpack.c.3.s8 %v246_v27 }
 0x2c3   :  { %4368 = vmatprep.subr.bf16.mxu1 %v3138_v38  ;;  %v3140_v37 = vpack.c.bf16 %v2612_v28, %v2564_v20  ;;  %v2609_v54 = vmul.f32 %v7638_v39, %v1589_v17  ;;  %v1446_v48 = vcvt.s32.f32 %v678_v42  ;;  %v680_v61 = vunpack.c.2.s8 %v248_v2 }
 0x2c4   :  { %v2563_v52 = vmul.f32 %v7646_v59, %v1543_v24  ;;  %v2611_v26 = vmul.f32 %v7646_v59, %v1591_v40  ;;  %v1494_v9 = vcvt.s32.f32 %v726_v19  ;;  %v728_v35 = vunpack.c.3.s8 %v248_v2 }
 0x2c5   :  { %4409 = vmatprep.subr.bf16.mxu0 %v3140_v37  ;;  %v3137_v21 = vpack.c.bf16 %v2609_v54, %v2561_v18  ;;  %v2466_v43 = vmul.f32 %v7622_v55, %v1446_v48  ;;  %v1448_v46 = vcvt.s32.f32 %v680_v61  ;;  %v677_v60 = vunpack.c.2.s8 %v245_v63 }
 0x2c6   :  { %v3139_v13 = vpack.c.bf16 %v2611_v26, %v2563_v52  ;;  %v2514_v31 = vmul.f32 %v7622_v55, %v1494_v9  ;;  %v1496_v15 = vcvt.s32.f32 %v728_v35  ;;  %v725_v53 = vunpack.c.3.s8 %v245_v63  ;;  %v198_v35 = vld [vmem:[#allocation7 + $0x148] sm:$0xff] }
 0x2c7   :  { %4369 = vmatpush1.bf16.msra.mxu1 %v3137_v21  ;;  %v2468_v50 = vmul.f32 %v7631_v34, %v1448_v46  ;;  %v1445_v8 = vcvt.s32.f32 %v677_v60  ;;  %v679_v4 = vunpack.c.2.s8 %v247_v0  ;;  %v727_v33 = vunpack.c.3.s8 %v247_v0 }
 0x2c8   :  { %4410 = vmatpush1.bf16.msra.mxu0 %v3139_v13  ;;  %v3090_v14 = vpack.c.bf16 %v2514_v31, %v2466_v43  ;;  %v2516_v20 = vmul.f32 %v7631_v34, %v1496_v15  ;;  %v1493_v58 = vcvt.s32.f32 %v725_v53  ;;  %v582_v6 = vunpack.c.0.s8 %v246_v27  ;;  %v200_v53 = vld [vmem:[#allocation7 + $0x158] sm:$0xff] }
 0x2c9   :  { %v2465_v7 = vmul.f32 %v7638_v39, %v1445_v8  ;;  %v1447_v38 = vcvt.s32.f32 %v679_v4  ;;  %v1495_v28 = vcvt.s32.f32 %v727_v33  ;;  %v630_v17 = vunpack.c.1.s8 %v246_v27 }
 0x2ca   :  { %4370 = vmatprep.subr.bf16.mxu1 %v3090_v14  ;;  %v3092_v42 = vpack.c.bf16 %v2516_v20, %v2468_v50  ;;  %v2513_v18 = vmul.f32 %v7638_v39, %v1493_v58  ;;  %v1350_v24 = vcvt.s32.f32 %v582_v6  ;;  %v584_v40 = vunpack.c.0.s8 %v248_v2  ;;  %v197_v6 = vld [vmem:[#allocation7 + $0x140] sm:$0xff] }
 0x2cb   :  { %v2467_v19 = vmul.f32 %v7646_v59, %v1447_v38  ;;  %v2515_v37 = vmul.f32 %v7646_v59, %v1495_v28  ;;  %v1398_v54 = vcvt.s32.f32 %v630_v17  ;;  %v632_v48 = vunpack.c.1.s8 %v248_v2 }
 0x2cc   :  { %4411 = vmatprep.subr.bf16.mxu0 %v3092_v42  ;;  %v3089_v61 = vpack.c.bf16 %v2513_v18, %v2465_v7  ;;  %v2370_v52 = vmul.f32 %v7622_v55, %v1350_v24  ;;  %v1352_v26 = vcvt.s32.f32 %v584_v40  ;;  %v581_v9 = vunpack.c.0.s8 %v245_v63  ;;  %v199_v24 = vld [vmem:[#allocation7 + $0x150] sm:$0xff] }
 0x2cd   :  { %v3091_v27 = vpack.c.bf16 %v2515_v37, %v2467_v19  ;;  %v2418_v21 = vmul.f32 %v7622_v55, %v1398_v54  ;;  %v1400_v43 = vcvt.s32.f32 %v632_v48  ;;  %v629_v46 = vunpack.c.1.s8 %v245_v63 }
 0x2ce   :  { %4371 = vmatpush1.bf16.msra.mxu1 %v3089_v61  ;;  %v2372_v60 = vmul.f32 %v7631_v34, %v1352_v26  ;;  %v1349_v13 = vcvt.s32.f32 %v581_v9  ;;  %v583_v31 = vunpack.c.0.s8 %v247_v0  ;;  %v631_v15 = vunpack.c.1.s8 %v247_v0 }
 0x2cf   :  { %4412 = vmatpush1.bf16.msra.mxu0 %v3091_v27  ;;  %v3042_v2 = vpack.c.bf16 %v2418_v21, %v2370_v52  ;;  %v2420_v50 = vmul.f32 %v7631_v34, %v1400_v43  ;;  %v1397_v8 = vcvt.s32.f32 %v629_v46  ;;  %v486_v4 = vunpack.c.2.s8 %v198_v35 }
 0x2d0   :  { %v2369_v33 = vmul.f32 %v7638_v39, %v1349_v13  ;;  %v1351_v14 = vcvt.s32.f32 %v583_v31  ;;  %v1399_v20 = vcvt.s32.f32 %v631_v15  ;;  %v534_v58 = vunpack.c.3.s8 %v198_v35 }
 0x2d1   :  { %4372 = vmatprep.subr.bf16.mxu1 %v3042_v2  ;;  %v3044_v63 = vpack.c.bf16 %v2420_v50, %v2372_v60  ;;  %v2417_v7 = vmul.f32 %v7638_v39, %v1397_v8  ;;  %v1254_v38 = vcvt.s32.f32 %v486_v4  ;;  %v488_v28 = vunpack.c.2.s8 %v200_v53 }
 0x2d2   :  { %v2371_v0 = vmul.f32 %v7646_v59, %v1351_v14  ;;  %v2419_v17 = vmul.f32 %v7646_v59, %v1399_v20  ;;  %v1302_v42 = vcvt.s32.f32 %v534_v58  ;;  %v536_v18 = vunpack.c.3.s8 %v200_v53 }
 0x2d3   :  { %4413 = vmatprep.subr.bf16.mxu0 %v3044_v63  ;;  %v3041_v40 = vpack.c.bf16 %v2417_v7, %v2369_v33  ;;  %v2274_v19 = vmul.f32 %v7622_v55, %v1254_v38  ;;  %v1256_v37 = vcvt.s32.f32 %v488_v28  ;;  %v485_v54 = vunpack.c.2.s8 %v197_v6 }
 0x2d4   :  { %v3043_v48 = vpack.c.bf16 %v2419_v17, %v2371_v0  ;;  %v2322_v61 = vmul.f32 %v7622_v55, %v1302_v42  ;;  %v1304_v52 = vcvt.s32.f32 %v536_v18  ;;  %v533_v26 = vunpack.c.3.s8 %v197_v6  ;;  %v7751_v18 = vld [vmem:[#allocation10 + $0x10] sm:$0xff] }
 0x2d5   :  { %4373 = vmatpush1.bf16.msra.mxu1 %v3041_v40  ;;  %v2276_v9 = vmul.f32 %v7631_v34, %v1256_v37  ;;  %v1253_v27 = vcvt.s32.f32 %v485_v54  ;;  %v487_v21 = vunpack.c.2.s8 %v199_v24  ;;  %v535_v43 = vunpack.c.3.s8 %v199_v24 }
 0x2d6   :  { %4414 = vmatpush1.bf16.msra.mxu0 %v3043_v48  ;;  %v2994_v46 = vpack.c.bf16 %v2322_v61, %v2274_v19  ;;  %v2324_v60 = vmul.f32 %v7631_v34, %v1304_v52  ;;  %v1301_v13 = vcvt.s32.f32 %v533_v26  ;;  %v390_v31 = vunpack.c.0.s8 %v198_v35 }
 0x2d7   :  { %v2273_v15 = vmul.f32 %v7638_v39, %v1253_v27  ;;  %v1255_v2 = vcvt.s32.f32 %v487_v21  ;;  %v1303_v50 = vcvt.s32.f32 %v535_v43  ;;  %v438_v8 = vunpack.c.1.s8 %v198_v35 }
 0x2d8   :  { %4374 = vmatprep.subr.bf16.mxu1 %v2994_v46  ;;  %v2996_v4 = vpack.c.bf16 %v2324_v60, %v2276_v9  ;;  %v2321_v33 = vmul.f32 %v7638_v39, %v1301_v13  ;;  %v1158_v14 = vcvt.s32.f32 %v390_v31  ;;  %v392_v20 = vunpack.c.0.s8 %v200_v53 }
 0x2d9   :  { %v2275_v58 = vmul.f32 %v7646_v59, %v1255_v2  ;;  %v2323_v63 = vmul.f32 %v7646_v59, %v1303_v50  ;;  %v1206_v7 = vcvt.s32.f32 %v438_v8  ;;  %v440_v38 = vunpack.c.1.s8 %v200_v53  ;;  %v7755_v53 = vld [vmem:[#allocation7 + $0x5e8] sm:$0xff] }
 0x2da   :  { %4415 = vmatprep.subr.bf16.mxu0 %v2996_v4  ;;  %v2993_v28 = vpack.c.bf16 %v2321_v33, %v2273_v15  ;;  %v2178_v0 = vmul.f32 %v7622_v55, %v1158_v14  ;;  %v1160_v17 = vcvt.s32.f32 %v392_v20  ;;  %v389_v42 = vunpack.c.0.s8 %v197_v6  ;;  %v7772_v4 = vld [vmem:[#allocation7 + $0x5e0] sm:$0xff] }
 0x2db   :  { %v2995_v35 = vpack.c.bf16 %v2323_v63, %v2275_v58  ;;  %v2226_v40 = vmul.f32 %v7622_v55, %v1206_v7  ;;  %v1208_v19 = vcvt.s32.f32 %v440_v38  ;;  %v437_v37 = vunpack.c.1.s8 %v197_v6 }
 0x2dc   :  { %4375 = vmatpush1.bf16.msra.mxu1 %v2993_v28  ;;  %v2180_v54 = vmul.f32 %v7631_v34, %v1160_v17  ;;  %v1157_v48 = vcvt.s32.f32 %v389_v42  ;;  %v391_v61 = vunpack.c.0.s8 %v199_v24  ;;  %v439_v52 = vunpack.c.1.s8 %v199_v24 }
 0x2dd   :  { %4416 = vmatpush1.bf16.msra.mxu0 %v2995_v35  ;;  %v2946_v26 = vpack.c.bf16 %v2226_v40, %v2178_v0  ;;  %v2228_v9 = vmul.f32 %v7631_v34, %v1208_v19  ;;  %v1205_v27 = vcvt.s32.f32 %v437_v37  ;;  %v3369_v21 = vrot.slane %v7751_v18, %v8590_v56  ;;  %v7766_v34 = vld [vmem:[#allocation7 + $0x5f8] sm:$0xff] }
 0x2de   :  { %v2177_v55 = vmul.f32 %v7638_v39, %v1157_v48  ;;  %v1159_v43 = vcvt.s32.f32 %v391_v61  ;;  %v1207_v6 = vcvt.s32.f32 %v439_v52  ;;  %v3377_v46 = vrot.slane %v7751_v18, %v8591_v57 }
 0x2df   :  { %4376 = vmatprep.subr.bf16.mxu1 %v2946_v26  ;;  %v2948_v60 = vpack.c.bf16 %v2228_v9, %v2180_v54  ;;  %v2225_v24 = vmul.f32 %v7638_v39, %v1205_v27  ;;  %v3905_v13 = vadd.f32 %v7474_v30, %v3369_v21  ;;  %v1066_v31 = vunpack.c.2.s8 %v7755_v53 }
 0x2e0   :  { %v2179_v15 = vmul.f32 %v7646_v59, %v1159_v43  ;;  %v2227_v2 = vmul.f32 %v7646_v59, %v1207_v6  ;;  %v3946_v50 = vadd.f32 %v7479_v29, %v3377_v46  ;;  %v1114_v8 = vunpack.c.3.s8 %v7755_v53  ;;  %v7779_v59 = vld [vmem:[#allocation7 + $0x5f0] sm:$0xff] }
 0x2e1   :  { %4417 = vmatprep.subr.bf16.mxu0 %v2948_v60  ;;  %v2945_v33 = vpack.c.bf16 %v2225_v24, %v2177_v55  ;;  %v4542_v14 = vmax.f32 %v3905_v13, 0.0  ;;  %v1834_v39 = vcvt.s32.f32 %v1066_v31  ;;  %v7776_v30 = vrot.slane %v7603_v23, %v8592_v11 }
 0x2e2   :  { %v2947_v20 = vpack.c.bf16 %v2227_v2, %v2179_v15  ;;  %v4544_v58 = vmax.f32 %v3946_v50, 0.0  ;;  %v1882_v63 = vcvt.s32.f32 %v1114_v8  ;;  %v1068_v7 = vunpack.c.2.s8 %v7766_v34 }
 0x2e3   :  { %4377 = vmatpush1.bf16.msra.mxu1 %v2945_v33  ;;  %4590 = vst [vmem:[#allocation11 + $0x80] sm:$0xff] %v4542_v14  ;;  %v2854_v29 = vmul.f32 %v7776_v30, %v1834_v39  ;;  %v1116_v38 = vunpack.c.3.s8 %v7766_v34  ;;  %v7785_v28 = vrot.slane %v7603_v23, %v8593_v47  ;;  %v1065_v0 = vunpack.c.2.s8 %v7772_v4 }
 0x2e4   :  { %4418 = vmatpush1.bf16.msra.mxu0 %v2947_v20  ;;  %4592 = vst [vmem:[#allocation11 + $0x90] sm:$0xff] %v4544_v58  ;;  %v2902_v17 = vmul.f32 %v7776_v30, %v1882_v63  ;;  %v1836_v42 = vcvt.s32.f32 %v1068_v7  ;;  %v1113_v35 = vunpack.c.3.s8 %v7772_v4  ;;  %v7792_v40 = vrot.slane %v7603_v23, %v8594_v12  ;;  %v7820_v58 = vld [vmem:[#allocation7 + $0x468] sm:$0xff] }
 0x2e5   :  { %v1884_v19 = vcvt.s32.f32 %v1116_v38  ;;  %v1833_v37 = vcvt.s32.f32 %v1065_v0  ;;  %v1067_v54 = vunpack.c.2.s8 %v7779_v59  ;;  %v1115_v48 = vunpack.c.3.s8 %v7779_v59 }
 0x2e6   :  { %4395 = vmatmul.mubr.bf16.vlgmr.msra.gmra.mxu1 %v8582_v32  ;;  %v3286_v61 = vpack.c.bf16 %v2902_v17, %v2854_v29  ;;  %v2856_v52 = vmul.f32 %v7785_v28, %v1836_v42  ;;  %v1881_v26 = vcvt.s32.f32 %v1113_v35  ;;  %v7800_v9 = vrot.slane %v7603_v23, %v8543_v16 }
 0x2e7   :  { %4436 = vmatmul.mubr.bf16.vlgmr.msra.gmra.mxu0 %v8582_v32  ;;  %v2904_v27 = vmul.f32 %v7785_v28, %v1884_v19  ;;  %v2853_v21 = vmul.f32 %v7792_v40, %v1833_v37  ;;  %v1835_v55 = vcvt.s32.f32 %v1067_v54  ;;  %v1883_v43 = vcvt.s32.f32 %v1115_v48  ;;  %4476 = vmatprep.mubr.bf16.mxu1 %v8584_v62  ;;  %v7829_v19 = vld [vmem:[#allocation7 + $0x478] sm:$0xff] }
 0x2e8   :  { %4444 = vmatprep.subr.bf16.mxu1 %v3286_v61  ;;  %v2901_v6 = vmul.f32 %v7792_v40, %v1881_v26  ;;  %v3373_v46 = vrot.slane %v7751_v18, %v8588_v45  ;;  %v3381_v23 = vrot.slane %v7751_v18, %v8589_v1  ;;  %v970_v60 = vunpack.c.0.s8 %v7755_v53  ;;  %4517 = vmatprep.mubr.bf16.mxu0 %v8584_v62 }
 0x2e9   :  { %v3288_v24 = vpack.c.bf16 %v2904_v27, %v2856_v52  ;;  %v2855_v13 = vmul.f32 %v7800_v9, %v1835_v55  ;;  %v2903_v31 = vmul.f32 %v7800_v9, %v1883_v43  ;;  %v1018_v15 = vunpack.c.1.s8 %v7755_v53 }
 0x2ea   :  { %v3285_v2 = vpack.c.bf16 %v2901_v6, %v2853_v21  ;;  %v3907_v50 = vadd.f32 %v7496_v36, %v3373_v46  ;;  %v3948_v8 = vadd.f32 %v7504_v10, %v3381_v23  ;;  %v1738_v33 = vcvt.s32.f32 %v970_v60  ;;  %v7835_v21 = vld [vmem:[#allocation7 + $0x460] sm:$0xff] }
 0x2eb   :  { %4485 = vmatprep.subr.bf16.mxu0 %v3288_v24  ;;  %v3287_v14 = vpack.c.bf16 %v2903_v31, %v2855_v13  ;;  %v1786_v39 = vcvt.s32.f32 %v1018_v15  ;;  %v972_v20 = vunpack.c.0.s8 %v7766_v34  ;;  %v1020_v62 = vunpack.c.1.s8 %v7766_v34  ;;  %v7842_v13 = vld [vmem:[#allocation7 + $0x470] sm:$0xff] }
 0x2ec   :  { %4445 = vmatpush1.bf16.msra.mxu1 %v3285_v2  ;;  %v4543_v63 = vmax.f32 %v3907_v50, 0.0  ;;  %v4545_v7 = vmax.f32 %v3948_v8, 0.0  ;;  %v2758_v53 = vmul.f32 %v7776_v30, %v1738_v33  ;;  %v969_v29 = vunpack.c.0.s8 %v7772_v4 }
 0x2ed   :  { %4486 = vmatpush1.bf16.msra.mxu0 %v3287_v14  ;;  %v2806_v36 = vmul.f32 %v7776_v30, %v1786_v39  ;;  %v1740_v10 = vcvt.s32.f32 %v972_v20  ;;  %v1788_v38 = vcvt.s32.f32 %v1020_v62  ;;  %v1017_v0 = vunpack.c.1.s8 %v7772_v4 }
 0x2ee   :  { %4591 = vst [vmem:[#allocation11 + $0x88] sm:$0xff] %v4543_v63  ;;  %4593 = vst [vmem:[#allocation11 + $0x98] sm:$0xff] %v4545_v7  ;;  %v1737_v17 = vcvt.s32.f32 %v969_v29  ;;  %v971_v34 = vunpack.c.0.s8 %v7779_v59  ;;  %v1019_v42 = vunpack.c.1.s8 %v7779_v59  ;;  %v874_v35 = vunpack.c.2.s8 %v7820_v58 }
 0x2ef   :  { %v3238_v37 = vpack.c.bf16 %v2806_v36, %v2758_v53  ;;  %v2760_v54 = vmul.f32 %v7785_v28, %v1740_v10  ;;  %v2808_v48 = vmul.f32 %v7785_v28, %v1788_v38  ;;  %v1785_v61 = vcvt.s32.f32 %v1017_v0 }
 0x2f0   :  { %v2757_v52 = vmul.f32 %v7792_v40, %v1737_v17  ;;  %v1739_v4 = vcvt.s32.f32 %v971_v34  ;;  %v1787_v26 = vcvt.s32.f32 %v1019_v42  ;;  %v922_v27 = vunpack.c.3.s8 %v7820_v58 }
 0x2f1   :  { %4446 = vmatprep.subr.bf16.mxu1 %v3238_v37  ;;  %v3240_v59 = vpack.c.bf16 %v2808_v48, %v2760_v54  ;;  %v2805_v55 = vmul.f32 %v7792_v40, %v1785_v61  ;;  %v1642_v43 = vcvt.s32.f32 %v874_v35  ;;  %v876_v6 = vunpack.c.2.s8 %v7829_v19 }
 0x2f2   :  { %v2759_v46 = vmul.f32 %v7800_v9, %v1739_v4  ;;  %v2807_v23 = vmul.f32 %v7800_v9, %v1787_v26  ;;  %v1690_v60 = vcvt.s32.f32 %v922_v27  ;;  %v924_v24 = vunpack.c.3.s8 %v7829_v19  ;;  %v7844_v31 = vpop.f32.mrf.mxu1 }
 0x2f3   :  { %4487 = vmatprep.subr.bf16.mxu0 %v3240_v59  ;;  %v3237_v15 = vpack.c.bf16 %v2805_v55, %v2757_v52  ;;  %v2662_v2 = vmul.f32 %v7776_v30, %v1642_v43  ;;  %v1644_v50 = vcvt.s32.f32 %v876_v6  ;;  %v873_v8 = vunpack.c.2.s8 %v7835_v21  ;;  %v7848_v33 = vpop.f32.mrf.mxu0 }
 0x2f4   :  { %v3239_v14 = vpack.c.bf16 %v2807_v23, %v2759_v46  ;;  %v2710_v39 = vmul.f32 %v7776_v30, %v1690_v60  ;;  %v1692_v20 = vcvt.s32.f32 %v924_v24  ;;  %v921_v62 = vunpack.c.3.s8 %v7835_v21  ;;  %v7852_v63 = vpop.f32.mrf.mxu1 }
 0x2f5   :  { %4447 = vmatpush1.bf16.msra.mxu1 %v3237_v15  ;;  %v2664_v7 = vmul.f32 %v7785_v28, %v1644_v50  ;;  %v1641_v53 = vcvt.s32.f32 %v873_v8  ;;  %v875_v29 = vunpack.c.2.s8 %v7842_v13  ;;  %v923_v36 = vunpack.c.3.s8 %v7842_v13  ;;  %v7857_v10 = vpop.f32.mrf.mxu0 }
 0x2f6   :  { %4488 = vmatpush1.bf16.msra.mxu0 %v3239_v14  ;;  %v3190_v38 = vpack.c.bf16 %v2710_v39, %v2662_v2  ;;  %v2712_v0 = vmul.f32 %v7785_v28, %v1692_v20  ;;  %v1689_v17 = vcvt.s32.f32 %v921_v62  ;;  %v778_v34 = vunpack.c.0.s8 %v7820_v58  ;;  %v4154_v42 = vpop.f32.mrf.mxu1  ;;  %v250_v2 = vld [vmem:[#allocation7 + $0x2e8] sm:$0xff] }
 0x2f7   :  { %v2661_v35 = vmul.f32 %v7792_v40, %v1641_v53  ;;  %v1643_v37 = vcvt.s32.f32 %v875_v29  ;;  %v1691_v54 = vcvt.s32.f32 %v923_v36  ;;  %v826_v48 = vunpack.c.1.s8 %v7820_v58  ;;  %v4195_v61 = vpop.f32.mrf.mxu0  ;;  %v252_v53 = vld [vmem:[#allocation7 + $0x2f8] sm:$0xff] }
 0x2f8   :  { %4448 = vmatprep.subr.bf16.mxu1 %v3190_v38  ;;  %v3192_v52 = vpack.c.bf16 %v2712_v0, %v2664_v7  ;;  %v2709_v4 = vmul.f32 %v7792_v40, %v1689_v17  ;;  %v1546_v26 = vcvt.s32.f32 %v778_v34  ;;  %v780_v27 = vunpack.c.0.s8 %v7829_v19  ;;  %v4155_v59 = vpop.f32.mrf.mxu1 }
 0x2f9   :  { %v2663_v55 = vmul.f32 %v7800_v9, %v1643_v37  ;;  %v2711_v43 = vmul.f32 %v7800_v9, %v1691_v54  ;;  %v1594_v6 = vcvt.s32.f32 %v826_v48  ;;  %v828_v46 = vunpack.c.1.s8 %v7829_v19  ;;  %v4196_v23 = vpop.f32.mrf.mxu0 }
 0x2fa   :  { %4489 = vmatprep.subr.bf16.mxu0 %v3192_v52  ;;  %v3189_v60 = vpack.c.bf16 %v2709_v4, %v2661_v35  ;;  %v2566_v58 = vmul.f32 %v7776_v30, %v1546_v26  ;;  %v1548_v24 = vcvt.s32.f32 %v780_v27  ;;  %v777_v15 = vunpack.c.0.s8 %v7835_v21  ;;  %v249_v35 = vld [vmem:[#allocation7 + $0x2e0] sm:$0xff]  ;;  %v251_v27 = vld [vmem:[#allocation7 + $0x2f0] sm:$0xff] }
 0x2fb   :  { %v3191_v50 = vpack.c.bf16 %v2711_v43, %v2663_v55  ;;  %v2614_v8 = vmul.f32 %v7776_v30, %v1594_v6  ;;  %v1596_v14 = vcvt.s32.f32 %v828_v46  ;;  %v825_v39 = vunpack.c.1.s8 %v7835_v21 }
 0x2fc   :  { %4449 = vmatpush1.bf16.msra.mxu1 %v3189_v60  ;;  %v2568_v20 = vmul.f32 %v7785_v28, %v1548_v24  ;;  %v1545_v62 = vcvt.s32.f32 %v777_v15  ;;  %v779_v19 = vunpack.c.0.s8 %v7842_v13  ;;  %v827_v7 = vunpack.c.1.s8 %v7842_v13 }
 0x2fd   :  { %4490 = vmatpush1.bf16.msra.mxu0 %v3191_v50  ;;  %v3142_v29 = vpack.c.bf16 %v2614_v8, %v2566_v58  ;;  %v2616_v36 = vmul.f32 %v7785_v28, %v1596_v14  ;;  %v1593_v38 = vcvt.s32.f32 %v825_v39  ;;  %v682_v0 = vunpack.c.2.s8 %v250_v2 }
 0x2fe   :  { %v2565_v17 = vmul.f32 %v7792_v40, %v1545_v62  ;;  %v1547_v34 = vcvt.s32.f32 %v779_v19  ;;  %v1595_v42 = vcvt.s32.f32 %v827_v7  ;;  %v730_v21 = vunpack.c.3.s8 %v250_v2 }
 0x2ff   :  { %4450 = vmatprep.subr.bf16.mxu1 %v3142_v29  ;;  %v3144_v37 = vpack.c.bf16 %v2616_v36, %v2568_v20  ;;  %v2613_v54 = vmul.f32 %v7792_v40, %v1593_v38  ;;  %v1450_v48 = vcvt.s32.f32 %v682_v0  ;;  %v684_v61 = vunpack.c.2.s8 %v252_v53 }
 0x300   :  { %v2567_v13 = vmul.f32 %v7800_v9, %v1547_v34  ;;  %v2615_v52 = vmul.f32 %v7800_v9, %v1595_v42  ;;  %v1498_v4 = vcvt.s32.f32 %v730_v21  ;;  %v732_v26 = vunpack.c.3.s8 %v252_v53 }
 0x301   :  { %4491 = vmatprep.subr.bf16.mxu0 %v3144_v37  ;;  %v3141_v59 = vpack.c.bf16 %v2613_v54, %v2565_v17  ;;  %v2470_v55 = vmul.f32 %v7776_v30, %v1450_v48  ;;  %v1452_v43 = vcvt.s32.f32 %v684_v61  ;;  %v681_v6 = vunpack.c.2.s8 %v249_v35 }
 0x302   :  { %v3143_v46 = vpack.c.bf16 %v2615_v52, %v2567_v13  ;;  %v2518_v23 = vmul.f32 %v7776_v30, %v1498_v4  ;;  %v1500_v60 = vcvt.s32.f32 %v732_v26  ;;  %v729_v58 = vunpack.c.3.s8 %v249_v35  ;;  %v202_v4 = vld [vmem:[#allocation7 + $0x168] sm:$0xff] }
 0x303   :  { %4451 = vmatpush1.bf16.msra.mxu1 %v3141_v59  ;;  %v2472_v24 = vmul.f32 %v7785_v28, %v1452_v43  ;;  %v1449_v15 = vcvt.s32.f32 %v681_v6  ;;  %v683_v50 = vunpack.c.2.s8 %v251_v27  ;;  %v731_v8 = vunpack.c.3.s8 %v251_v27 }
 0x304   :  { %4492 = vmatpush1.bf16.msra.mxu0 %v3143_v46  ;;  %v3094_v14 = vpack.c.bf16 %v2518_v23, %v2470_v55  ;;  %v2520_v39 = vmul.f32 %v7785_v28, %v1500_v60  ;;  %v1497_v20 = vcvt.s32.f32 %v729_v58  ;;  %v586_v62 = vunpack.c.0.s8 %v250_v2  ;;  %v204_v60 = vld [vmem:[#allocation7 + $0x178] sm:$0xff] }
 0x305   :  { %v2469_v19 = vmul.f32 %v7792_v40, %v1449_v15  ;;  %v1451_v7 = vcvt.s32.f32 %v683_v50  ;;  %v1499_v29 = vcvt.s32.f32 %v731_v8  ;;  %v634_v36 = vunpack.c.1.s8 %v250_v2 }
 0x306   :  { %4452 = vmatprep.subr.bf16.mxu1 %v3094_v14  ;;  %v3096_v38 = vpack.c.bf16 %v2520_v39, %v2472_v24  ;;  %v2517_v0 = vmul.f32 %v7792_v40, %v1497_v20  ;;  %v1354_v17 = vcvt.s32.f32 %v586_v62  ;;  %v588_v34 = vunpack.c.0.s8 %v252_v53  ;;  %v201_v20 = vld [vmem:[#allocation7 + $0x160] sm:$0xff] }
 0x307   :  { %v2471_v42 = vmul.f32 %v7800_v9, %v1451_v7  ;;  %v2519_v21 = vmul.f32 %v7800_v9, %v1499_v29  ;;  %v1402_v37 = vcvt.s32.f32 %v634_v36  ;;  %v636_v54 = vunpack.c.1.s8 %v252_v53 }
 0x308   :  { %4493 = vmatprep.subr.bf16.mxu0 %v3096_v38  ;;  %v3093_v48 = vpack.c.bf16 %v2517_v0, %v2469_v19  ;;  %v2374_v61 = vmul.f32 %v7776_v30, %v1354_v17  ;;  %v1356_v13 = vcvt.s32.f32 %v588_v34  ;;  %v585_v52 = vunpack.c.0.s8 %v249_v35  ;;  %v203_v0 = vld [vmem:[#allocation7 + $0x170] sm:$0xff] }
 0x309   :  { %v3095_v2 = vpack.c.bf16 %v2519_v21, %v2471_v42  ;;  %v2422_v26 = vmul.f32 %v7776_v30, %v1402_v37  ;;  %v1404_v59 = vcvt.s32.f32 %v636_v54  ;;  %v633_v55 = vunpack.c.1.s8 %v249_v35 }
 0x30a   :  { %4453 = vmatpush1.bf16.msra.mxu1 %v3093_v48  ;;  %v2376_v43 = vmul.f32 %v7785_v28, %v1356_v13  ;;  %v1353_v6 = vcvt.s32.f32 %v585_v52  ;;  %v587_v46 = vunpack.c.0.s8 %v251_v27  ;;  %v635_v23 = vunpack.c.1.s8 %v251_v27 }
 0x30b   :  { %4494 = vmatpush1.bf16.msra.mxu0 %v3095_v2  ;;  %v3046_v53 = vpack.c.bf16 %v2422_v26, %v2374_v61  ;;  %v2424_v58 = vmul.f32 %v7785_v28, %v1404_v59  ;;  %v1401_v24 = vcvt.s32.f32 %v633_v55  ;;  %v490_v15 = vunpack.c.2.s8 %v202_v4 }
 0x30c   :  { %v2373_v50 = vmul.f32 %v7792_v40, %v1353_v6  ;;  %v1355_v8 = vcvt.s32.f32 %v587_v46  ;;  %v1403_v14 = vcvt.s32.f32 %v635_v23  ;;  %v538_v39 = vunpack.c.3.s8 %v202_v4 }
 0x30d   :  { %4454 = vmatprep.subr.bf16.mxu1 %v3046_v53  ;;  %v3048_v35 = vpack.c.bf16 %v2424_v58, %v2376_v43  ;;  %v2421_v62 = vmul.f32 %v7792_v40, %v1401_v24  ;;  %v1258_v19 = vcvt.s32.f32 %v490_v15  ;;  %v492_v7 = vunpack.c.2.s8 %v204_v60 }
 0x30e   :  { %v2375_v27 = vmul.f32 %v7800_v9, %v1355_v8  ;;  %v2423_v29 = vmul.f32 %v7800_v9, %v1403_v14  ;;  %v1306_v36 = vcvt.s32.f32 %v538_v39  ;;  %v540_v38 = vunpack.c.3.s8 %v204_v60 }
 0x30f   :  { %4495 = vmatprep.subr.bf16.mxu0 %v3048_v35  ;;  %v3045_v17 = vpack.c.bf16 %v2421_v62, %v2373_v50  ;;  %v2278_v34 = vmul.f32 %v7776_v30, %v1258_v19  ;;  %v1260_v42 = vcvt.s32.f32 %v492_v7  ;;  %v489_v21 = vunpack.c.2.s8 %v201_v20 }
 0x310   :  { %v3047_v37 = vpack.c.bf16 %v2423_v29, %v2375_v27  ;;  %v2326_v54 = vmul.f32 %v7776_v30, %v1306_v36  ;;  %v1308_v48 = vcvt.s32.f32 %v540_v38  ;;  %v537_v61 = vunpack.c.3.s8 %v201_v20 }
 0x311   :  { %4455 = vmatpush1.bf16.msra.mxu1 %v3045_v17  ;;  %v2280_v13 = vmul.f32 %v7785_v28, %v1260_v42  ;;  %v1257_v52 = vcvt.s32.f32 %v489_v21  ;;  %v491_v2 = vunpack.c.2.s8 %v203_v0  ;;  %v539_v26 = vunpack.c.3.s8 %v203_v0 }
 0x312   :  { %4496 = vmatpush1.bf16.msra.mxu0 %v3047_v37  ;;  %v2998_v59 = vpack.c.bf16 %v2326_v54, %v2278_v34  ;;  %v2328_v55 = vmul.f32 %v7785_v28, %v1308_v48  ;;  %v1305_v43 = vcvt.s32.f32 %v537_v61  ;;  %v394_v6 = vunpack.c.0.s8 %v202_v4 }
 0x313   :  { %v2277_v46 = vmul.f32 %v7792_v40, %v1257_v52  ;;  %v1259_v23 = vcvt.s32.f32 %v491_v2  ;;  %v1307_v53 = vcvt.s32.f32 %v539_v26  ;;  %v442_v58 = vunpack.c.1.s8 %v202_v4  ;;  %v3293_v2 = vld [vmem:[#allocation10 + $0x18] sm:$0xff] }
 0x314   :  { %4456 = vmatprep.subr.bf16.mxu1 %v2998_v59  ;;  %v3000_v24 = vpack.c.bf16 %v2328_v55, %v2280_v13  ;;  %v2325_v15 = vmul.f32 %v7792_v40, %v1305_v43  ;;  %v1162_v50 = vcvt.s32.f32 %v394_v6  ;;  %v396_v8 = vunpack.c.0.s8 %v204_v60 }
 0x315   :  { %v2279_v14 = vmul.f32 %v7800_v9, %v1259_v23  ;;  %v2327_v39 = vmul.f32 %v7800_v9, %v1307_v53  ;;  %v1210_v35 = vcvt.s32.f32 %v442_v58  ;;  %v444_v62 = vunpack.c.1.s8 %v204_v60 }
 0x316   :  { %4497 = vmatprep.subr.bf16.mxu0 %v3000_v24  ;;  %v2997_v19 = vpack.c.bf16 %v2325_v15, %v2277_v46  ;;  %v2182_v7 = vmul.f32 %v7776_v30, %v1162_v50  ;;  %v1164_v27 = vcvt.s32.f32 %v396_v8  ;;  %v393_v29 = vunpack.c.0.s8 %v201_v20 }
 0x317   :  { %v2999_v36 = vpack.c.bf16 %v2327_v39, %v2279_v14  ;;  %v2230_v4 = vmul.f32 %v7776_v30, %v1210_v35  ;;  %v1212_v38 = vcvt.s32.f32 %v444_v62  ;;  %v441_v17 = vunpack.c.1.s8 %v201_v20 }
 0x318   :  { %4457 = vmatpush1.bf16.msra.mxu1 %v2997_v19  ;;  %v2184_v34 = vmul.f32 %v7785_v28, %v1164_v27  ;;  %v1161_v42 = vcvt.s32.f32 %v393_v29  ;;  %v395_v21 = vunpack.c.0.s8 %v203_v0  ;;  %v443_v37 = vunpack.c.1.s8 %v203_v0 }
 0x319   :  { %4498 = vmatpush1.bf16.msra.mxu0 %v2999_v36  ;;  %v2950_v54 = vpack.c.bf16 %v2230_v4, %v2182_v7  ;;  %v2232_v60 = vmul.f32 %v7785_v28, %v1212_v38  ;;  %v1209_v48 = vcvt.s32.f32 %v441_v17  ;;  %v3385_v61 = vrot.slane %v7751_v18, %v8594_v12 }
 0x31a   :  { %v2181_v13 = vmul.f32 %v7792_v40, %v1161_v42  ;;  %v1163_v52 = vcvt.s32.f32 %v395_v21  ;;  %v1211_v30 = vcvt.s32.f32 %v443_v37  ;;  %v3393_v20 = vrot.slane %v7751_v18, %v8543_v16 }
 0x31b   :  { %4458 = vmatprep.subr.bf16.mxu1 %v2950_v54  ;;  %v2952_v26 = vpack.c.bf16 %v2232_v60, %v2184_v34  ;;  %v2229_v0 = vmul.f32 %v7792_v40, %v1209_v48  ;;  %v3987_v59 = vadd.f32 %v7593_v41, %v3385_v61  ;;  %v3389_v28 = vrot.slane %v7751_v18, %v8592_v11 }
 0x31c   :  { %v2183_v55 = vmul.f32 %v7800_v9, %v1163_v52  ;;  %v2231_v43 = vmul.f32 %v7800_v9, %v1211_v30  ;;  %v4028_v6 = vadd.f32 %v7595_v3, %v3393_v20  ;;  %v3397_v46 = vrot.slane %v7751_v18, %v8593_v47 }
 0x31d   :  { %4499 = vmatprep.subr.bf16.mxu0 %v2952_v26  ;;  %v2949_v23 = vpack.c.bf16 %v2229_v0, %v2181_v13  ;;  %v4546_v53 = vmax.f32 %v3987_v59, 0.0  ;;  %v3989_v58 = vadd.f32 %v7610_v5, %v3389_v28  ;;  %v3401_v40 = vrot.slane %v3293_v2, %v8590_v56 }
 0x31e   :  { %v2951_v41 = vpack.c.bf16 %v2231_v43, %v2183_v55  ;;  %v4548_v24 = vmax.f32 %v4028_v6, 0.0  ;;  %v4030_v15 = vadd.f32 %v7612_v51, %v3397_v46  ;;  %v3409_v50 = vrot.slane %v3293_v2, %v8591_v57 }
 0x31f   :  { %4459 = vmatpush1.bf16.msra.mxu1 %v2949_v23  ;;  %4594 = vst [vmem:[#allocation11 + $0xa0] sm:$0xff] %v4546_v53  ;;  %v4547_v9 = vmax.f32 %v3989_v58, 0.0  ;;  %v4069_v3 = vadd.f32 %v7690_v25, %v3401_v40  ;;  %v3405_v18 = vrot.slane %v3293_v2, %v8588_v45  ;;  %v3413_v8 = vrot.slane %v3293_v2, %v8589_v1 }
 0x320   :  { %4500 = vmatpush1.bf16.msra.mxu0 %v2951_v41  ;;  %4596 = vst [vmem:[#allocation11 + $0xb0] sm:$0xff] %v4548_v24  ;;  %v4549_v5 = vmax.f32 %v4030_v15, 0.0  ;;  %v4110_v14 = vadd.f32 %v7696_v49, %v3409_v50  ;;  %v3417_v39 = vrot.slane %v3293_v2, %v8594_v12  ;;  %v3425_v51 = vrot.slane %v3293_v2, %v8543_v16 }
 0x321   :  { %4595 = vst [vmem:[#allocation11 + $0xa8] sm:$0xff] %v4547_v9  ;;  %v4550_v35 = vmax.f32 %v4069_v3, 0.0  ;;  %v4071_v62 = vadd.f32 %v7698_v44, %v3405_v18  ;;  %v4112_v19 = vadd.f32 %v7705_v22, %v3413_v8  ;;  %v3421_v25 = vrot.slane %v3293_v2, %v8592_v11 }
 0x322   :  { %4477 = vmatmul.mubr.bf16.vlgmr.msra.gmra.mxu1 %v8582_v32  ;;  %4597 = vst [vmem:[#allocation11 + $0xb8] sm:$0xff] %v4549_v5  ;;  %v4552_v7 = vmax.f32 %v4110_v14, 0.0  ;;  %v4151_v27 = vadd.f32 %v7844_v31, %v3417_v39  ;;  %v4192_v49 = vadd.f32 %v7848_v33, %v3425_v51  ;;  %v3429_v29 = vrot.slane %v3293_v2, %v8593_v47  ;;  %v3294_v33 = vld [vmem:[#allocation10 + $0x20] sm:$0xff] }
 0x323   :  { %4518 = vmatmul.mubr.bf16.vlgmr.msra.gmra.mxu0 %v8582_v32  ;;  %4598 = vst [vmem:[#allocation11 + $0xc0] sm:$0xff] %v4550_v35  ;;  %v4551_v36 = vmax.f32 %v4071_v62, 0.0  ;;  %v4553_v4 = vmax.f32 %v4112_v19, 0.0  ;;  %v4153_v44 = vadd.f32 %v7852_v63, %v3421_v25  ;;  %v3433_v32 = vrot.slane %v3294_v33, %v8590_v56  ;;  %v3295_v62 = vld [vmem:[#allocation10 + $0x28] sm:$0xff] }
 0x324   :  { %4600 = vst [vmem:[#allocation11 + $0xd0] sm:$0xff] %v4552_v7  ;;  %v4554_v22 = vmax.f32 %v4151_v27, 0.0  ;;  %v4556_v38 = vmax.f32 %v4192_v49, 0.0  ;;  %v4194_v17 = vadd.f32 %v7857_v10, %v3429_v29  ;;  %v3441_v42 = vrot.slane %v3294_v33, %v8591_v57 }
 0x325   :  { %4599 = vst [vmem:[#allocation11 + $0xc8] sm:$0xff] %v4551_v36  ;;  %4601 = vst [vmem:[#allocation11 + $0xd8] sm:$0xff] %v4553_v4  ;;  %v4555_v34 = vmax.f32 %v4153_v44, 0.0  ;;  %v3437_v63 = vrot.slane %v3294_v33, %v8588_v45  ;;  %v3445_v37 = vrot.slane %v3294_v33, %v8589_v1  ;;  %v3449_v43 = vrot.slane %v3294_v33, %v8594_v12 }
 0x326   :  { %4602 = vst [vmem:[#allocation11 + $0xe0] sm:$0xff] %v4554_v22  ;;  %4604 = vst [vmem:[#allocation11 + $0xf0] sm:$0xff] %v4556_v38  ;;  %v4557_v31 = vmax.f32 %v4194_v17, 0.0  ;;  %v3457_v6 = vrot.slane %v3294_v33, %v8543_v16  ;;  %v3453_v46 = vrot.slane %v3294_v33, %v8592_v11  ;;  %v3461_v53 = vrot.slane %v3294_v33, %v8593_v47 }
 0x327   :  { %4603 = vst [vmem:[#allocation11 + $0xe8] sm:$0xff] %v4555_v34  ;;  %v3465_v19 = vrot.slane %v3295_v62, %v8590_v56  ;;  %v3473_v25 = vrot.slane %v3295_v62, %v8591_v57  ;;  %v3469_v7 = vrot.slane %v3295_v62, %v8588_v45  ;;  %v3477_v49 = vrot.slane %v3295_v62, %v8589_v1 }
 0x328   :  { %4605 = vst [vmem:[#allocation11 + $0xf8] sm:$0xff] %v4557_v31  ;;  %v3481_v1 = vrot.slane %v3295_v62, %v8594_v12 }
 0x32e   :  { %v4232_v21 = vpop.f32.mrf.mxu1 }
 0x32f   :  { %v4233_v54 = vadd.f32 %v4232_v21, %v3433_v32  ;;  %v4273_v10 = vpop.f32.mrf.mxu0  ;;  %v3485_v21 = vrot.slane %v3295_v62, %v8592_v11 }
 0x330   :  { %v4274_v60 = vadd.f32 %v4273_v10, %v3441_v42  ;;  %v4234_v48 = vpop.f32.mrf.mxu1 }
 0x331   :  { %v4558_v61 = vmax.f32 %v4233_v54, 0.0  ;;  %v4235_v13 = vadd.f32 %v4234_v48, %v3437_v63  ;;  %v4275_v52 = vpop.f32.mrf.mxu0  ;;  %v3489_v63 = vrot.slane %v3295_v62, %v8543_v16  ;;  %v3493_v54 = vrot.slane %v3295_v62, %v8593_v47 }
 0x332   :  { %v4560_v30 = vmax.f32 %v4274_v60, 0.0  ;;  %v4276_v20 = vadd.f32 %v4275_v52, %v3445_v37  ;;  %v4236_v2 = vpop.f32.mrf.mxu1 }
 0x333   :  { %4606 = vst [vmem:[#allocation11 + $0x100] sm:$0xff] %v4558_v61  ;;  %v4559_v26 = vmax.f32 %v4235_v13, 0.0  ;;  %v4277_v0 = vpop.f32.mrf.mxu0 }
 0x334   :  { %4608 = vst [vmem:[#allocation11 + $0x110] sm:$0xff] %v4560_v30  ;;  %v4561_v59 = vmax.f32 %v4276_v20, 0.0  ;;  %v4237_v28 = vpop.f32.mrf.mxu1 }
 0x335   :  { %4607 = vst [vmem:[#allocation11 + $0x108] sm:$0xff] %v4559_v26  ;;  %v4278_v55 = vpop.f32.mrf.mxu0 }
 0x336   :  { %4609 = vst [vmem:[#allocation11 + $0x118] sm:$0xff] %v4561_v59 }
 0x36a   :  { %v4314_v23 = vpop.f32.mrf.mxu1 }
 0x36b   :  { %v4315_v58 = vadd.f32 %v4314_v23, %v3449_v43  ;;  %v4355_v40 = vpop.f32.mrf.mxu0 }
 0x36c   :  { %v4356_v41 = vadd.f32 %v4355_v40, %v3457_v6  ;;  %v4316_v24 = vpop.f32.mrf.mxu1 }
 0x36d   :  { %v4562_v15 = vmax.f32 %v4315_v58, 0.0  ;;  %v4317_v50 = vadd.f32 %v4316_v24, %v3453_v46  ;;  %v4357_v9 = vpop.f32.mrf.mxu0 }
 0x36e   :  { %v4564_v3 = vmax.f32 %v4356_v41, 0.0  ;;  %v4358_v18 = vadd.f32 %v4357_v9, %v3461_v53  ;;  %v4318_v8 = vpop.f32.mrf.mxu1 }
 0x36f   :  { %4610 = vst [vmem:[#allocation11 + $0x120] sm:$0xff] %v4562_v15  ;;  %v4563_v5 = vmax.f32 %v4317_v50, 0.0  ;;  %v4359_v14 = vpop.f32.mrf.mxu0 }
 0x370   :  { %4612 = vst [vmem:[#allocation11 + $0x130] sm:$0xff] %v4564_v3  ;;  %v4565_v39 = vmax.f32 %v4358_v18, 0.0  ;;  %v4319_v51 = vpop.f32.mrf.mxu1 }
 0x371   :  { %4611 = vst [vmem:[#allocation11 + $0x128] sm:$0xff] %v4563_v5  ;;  %v4360_v35 = vpop.f32.mrf.mxu0 }
 0x372   :  { %4613 = vst [vmem:[#allocation11 + $0x138] sm:$0xff] %v4565_v39 }
 0x3a6   :  { %v4396_v27 = vpop.f32.mrf.mxu1 }
 0x3a7   :  { %v4397_v29 = vadd.f32 %v4396_v27, %v3465_v19  ;;  %v4437_v36 = vpop.f32.mrf.mxu0 }
 0x3a8   :  { %v4438_v4 = vadd.f32 %v4437_v36, %v3473_v25  ;;  %v4398_v44 = vpop.f32.mrf.mxu1 }
 0x3a9   :  { %v4566_v22 = vmax.f32 %v4397_v29, 0.0  ;;  %v4399_v38 = vadd.f32 %v4398_v44, %v3469_v7  ;;  %v4439_v17 = vpop.f32.mrf.mxu0 }
 0x3aa   :  { %v4568_v34 = vmax.f32 %v4438_v4, 0.0  ;;  %v4440_v31 = vadd.f32 %v4439_v17, %v3477_v49  ;;  %v4400_v33 = vpop.f32.mrf.mxu1 }
 0x3ab   :  { %4614 = vst [vmem:[#allocation11 + $0x140] sm:$0xff] %v4566_v22  ;;  %v4567_v32 = vmax.f32 %v4399_v38, 0.0  ;;  %v4441_v56 = vpop.f32.mrf.mxu0 }
 0x3ac   :  { %4616 = vst [vmem:[#allocation11 + $0x150] sm:$0xff] %v4568_v34  ;;  %v4569_v57 = vmax.f32 %v4440_v31, 0.0  ;;  %v4401_v42 = vpop.f32.mrf.mxu1 }
 0x3ad   :  { %4615 = vst [vmem:[#allocation11 + $0x148] sm:$0xff] %v4567_v32  ;;  %v4442_v45 = vpop.f32.mrf.mxu0 }
 0x3ae   :  { %4617 = vst [vmem:[#allocation11 + $0x158] sm:$0xff] %v4569_v57 }
 0x3e2   :  { %v4478_v37 = vpop.f32.mrf.mxu1 }
 0x3e3   :  { %v4479_v10 = vadd.f32 %v4478_v37, %v3481_v1  ;;  %v4519_v60 = vpop.f32.mrf.mxu0 }
 0x3e4   :  { %v4520_v48 = vadd.f32 %v4519_v60, %v3489_v63  ;;  %v4480_v61 = vpop.f32.mrf.mxu1 }
 0x3e5   :  { %v4570_v13 = vmax.f32 %v4479_v10, 0.0  ;;  %v4481_v52 = vadd.f32 %v4480_v61, %v3485_v21  ;;  %v4521_v30 = vpop.f32.mrf.mxu0 }
 0x3e6   :  { %v4572_v20 = vmax.f32 %v4520_v48, 0.0  ;;  %v4522_v2 = vadd.f32 %v4521_v30, %v3493_v54  ;;  %v4482_v26 = vpop.f32.mrf.mxu1 }
 0x3e7   :  { %4618 = vst [vmem:[#allocation11 + $0x160] sm:$0xff] %v4570_v13  ;;  %v4571_v12 = vmax.f32 %v4481_v52, 0.0  ;;  %v4523_v16 = vpop.f32.mrf.mxu0 }
 0x3e8   :  { %4620 = vst [vmem:[#allocation11 + $0x170] sm:$0xff] %v4572_v20  ;;  %v4573_v11 = vmax.f32 %v4522_v2, 0.0  ;;  %v4483_v0 = vpop.f32.mrf.mxu1 }
 0x3e9   :  { %4619 = vst [vmem:[#allocation11 + $0x168] sm:$0xff] %v4571_v12  ;;  %v4524_v47 = vpop.f32.mrf.mxu0 }
 0x3ea   :  { %4621 = vst [vmem:[#allocation11 + $0x178] sm:$0xff] %v4573_v11 }
 0x3eb   :  { %4780 = shalt.err (!%p4777_p1)
}
 0x3ec   :  { %4631 = dma.vmem_to_hbm [thread:$0]  %s4629_s23, 6144, %s7967_s6, [#allocation4]  }
 0x3ed   :  { %4795 = dma.done.wait [#allocation4], 6144  }
 0x3ee   :  { %4796 = vsyncadd [#allocation4], 4294961152 }
 0x3ef   :  { %4635 = vsyncpa [#allocation3], 1 }
 0x3f0   :  { %4636 = vsyncpa [#allocation6], 1 }
 0x3f1   :  { %4637 = vsyncpa [#allocation9], 1 }
 0x3f2   :  { %4638 = vsyncpa [#allocation4], 1 }

</bundles_post_ra>
